<compile_context>
chip_gen: v7x
topology: tpu7x:2x2x1
jax: 0.10.0
libtpu: 0.0.40
codegen_flags: <defaults>
</compile_context>

<pallas_src>
import functools
import math

import jax
import jax.numpy as jnp
from jax.experimental import pallas as pl
from jax.experimental.pallas import tpu as pltpu


_MXU_DTYPE = jnp.bfloat16   # MXU operand dtype; accumulation & vector math stay f32


# ----------------------------- in-kernel helpers ----------------------------

def _ln(x, g, b, eps=1e-5):
    """LayerNorm in f32. x: (N, D), g/b: (1, D)."""
    mean = jnp.mean(x, axis=-1, keepdims=True)
    var = jnp.mean((x - mean) ** 2, axis=-1, keepdims=True)
    return (x - mean) * jax.lax.rsqrt(var + eps) * g + b


def _gelu(x):
    # TODO(synk): PyTorch nn.GELU default is the exact erf form; tanh approximation
    # used here (erf lowering support in Mosaic is not guaranteed).
    return 0.5 * x * (1.0 + jnp.tanh(0.7978845608028654 * (x + 0.044715 * x * x * x)))


def _mm(a_f32, w_ref, b_ref=None):
    """bf16 MXU matmul with f32 accumulation; optional bias add in f32."""
    y = jnp.dot(a_f32.astype(_MXU_DTYPE), w_ref[...].astype(_MXU_DTYPE),
                preferred_element_type=jnp.float32)
    if b_ref is not None:
        y = y + b_ref[...].astype(jnp.float32)
    return y


# ----------------------------- fused Pallas kernels -------------------------

def _block_kernel(x_ref, ln1g_ref, ln1b_ref, wqkv_ref, bqkv_ref,
                  wproj_ref, bproj_ref, ln2g_ref, ln2b_ref,
                  w1_ref, b1_ref, w2_ref, b2_ref, o_ref, *, heads):
    """One full pre-LN transformer block for one batch element."""
    x = x_ref[0].astype(jnp.float32)                      # (N, D)
    D = x.shape[-1]
    dh = D // heads
    scale = 1.0 / math.sqrt(dh)

    # ---- attention branch ----
    h = _ln(x, ln1g_ref[...], ln1b_ref[...])
    qkv = _mm(h, wqkv_ref, bqkv_ref)                      # (N, 3D) f32

    outs = []
    for hd in range(heads):                               # unrolled at trace time
        lo = hd * dh
        qh = qkv[:, lo:lo + dh]
        kh = qkv[:, D + lo:D + lo + dh]
        vh = qkv[:, 2 * D + lo:2 * D + lo + dh]
        # q @ k^T without materializing a transpose (contract last dims).
        s = jax.lax.dot_general(
            qh.astype(_MXU_DTYPE), kh.astype(_MXU_DTYPE),
            (((1,), (1,)), ((), ())),
            preferred_element_type=jnp.float32) * scale
        s = s - jnp.max(s, axis=-1, keepdims=True)
        p = jnp.exp(s)
        p = p * pl.reciprocal(jnp.sum(p, axis=-1, keepdims=True), approx=True)
        outs.append(jnp.dot(p.astype(_MXU_DTYPE), vh.astype(_MXU_DTYPE),
                            preferred_element_type=jnp.float32))
    attn = jnp.concatenate(outs, axis=-1)                 # (N, D)
    x1 = x + _mm(attn, wproj_ref, bproj_ref)              # residual folded in

    # ---- MLP branch ----
    h2 = _ln(x1, ln2g_ref[...], ln2b_ref[...])
    m = _gelu(_mm(h2, w1_ref, b1_ref))
    m = _mm(m, w2_ref, b2_ref)
    o_ref[0] = (x1 + m).astype(o_ref.dtype)               # residual folded in


def transformer_block(x, prm, heads):
    B, N, D = x.shape
    M = prm["mlp1"]["w"].shape[1]

    def bcast2(r, c):
        return pl.BlockSpec((r, c), lambda b: (0, 0))

    return pl.pallas_call(
        functools.partial(_block_kernel, heads=heads),
        out_shape=jax.ShapeDtypeStruct((B, N, D), x.dtype),
        grid=(B,),
        in_specs=[
            pl.BlockSpec((1, N, D), lambda b: (b, 0, 0)),   # x
            bcast2(1, D), bcast2(1, D),                     # ln1 g, b
            bcast2(D, 3 * D), bcast2(1, 3 * D),             # qkv w, b
            bcast2(D, D), bcast2(1, D),                     # proj w, b
            bcast2(1, D), bcast2(1, D),                     # ln2 g, b
            bcast2(D, M), bcast2(1, M),                     # mlp1 w, b
            bcast2(M, D), bcast2(1, D),                     # mlp2 w, b
        ],
        out_specs=pl.BlockSpec((1, N, D), lambda b: (b, 0, 0)),
        compiler_params=pltpu.CompilerParams(dimension_semantics=("parallel",)),
    )(x,
      prm["ln1"]["g"].reshape(1, D), prm["ln1"]["b"].reshape(1, D),
      prm["qkv"]["w"], prm["qkv"]["b"].reshape(1, 3 * D),
      prm["proj"]["w"], prm["proj"]["b"].reshape(1, D),
      prm["ln2"]["g"].reshape(1, D), prm["ln2"]["b"].reshape(1, D),
      prm["mlp1"]["w"], prm["mlp1"]["b"].reshape(1, M),
      prm["mlp2"]["w"], prm["mlp2"]["b"].reshape(1, D))


def _embed_kernel(x_ref, w_ref, b_ref, pos_ref, o_ref):
    """y = x @ W + b + pos  (patch-embed / decoder-input, pos add folded in)."""
    y = _mm(x_ref[0].astype(jnp.float32), w_ref, b_ref)
    o_ref[0] = (y + pos_ref[0].astype(jnp.float32)).astype(o_ref.dtype)


def embed(x, w, b, pos):
    B, N, K = x.shape
    D = w.shape[1]
    return pl.pallas_call(
        _embed_kernel,
        out_shape=jax.ShapeDtypeStruct((B, N, D), x.dtype),
        grid=(B,),
        in_specs=[
            pl.BlockSpec((1, N, K), lambda b: (b, 0, 0)),
            pl.BlockSpec((K, D), lambda b: (0, 0)),
            pl.BlockSpec((1, D), lambda b: (0, 0)),
            pl.BlockSpec((1, N, D), lambda b: (0, 0, 0)),
        ],
        out_specs=pl.BlockSpec((1, N, D), lambda b: (b, 0, 0)),
        compiler_params=pltpu.CompilerParams(dimension_semantics=("parallel",)),
    )(x, w, b.reshape(1, D), pos)


def _encode_tail_kernel(t_ref, g_ref, b_ref, wmu_ref, bmu_ref, wvar_ref, bvar_ref,
                        eps_ref, mu_ref, lv_ref, z_ref):
    """enc LN -> fc_mu / fc_var -> reparameterize, all fused."""
    h = _ln(t_ref[0].astype(jnp.float32), g_ref[...], b_ref[...])
    mu = _mm(h, wmu_ref, bmu_ref)
    lv = _mm(h, wvar_ref, bvar_ref)
    z = mu + eps_ref[0].astype(jnp.float32) * jnp.exp(0.5 * lv)
    mu_ref[0] = mu.astype(mu_ref.dtype)
    lv_ref[0] = lv.astype(lv_ref.dtype)
    z_ref[0] = z.astype(z_ref.dtype)


def encode_tail(t, ln_p, mu_p, var_p, eps):
    B, N, D = t.shape
    L = mu_p["w"].shape[1]
    tok = pl.BlockSpec((1, N, D), lambda b: (b, 0, 0))
    lat = pl.BlockSpec((1, N, L), lambda b: (b, 0, 0))
    return pl.pallas_call(
        _encode_tail_kernel,
        out_shape=(jax.ShapeDtypeStruct((B, N, L), t.dtype),
                   jax.ShapeDtypeStruct((B, N, L), t.dtype),
                   jax.ShapeDtypeStruct((B, N, L), t.dtype)),
        grid=(B,),
        in_specs=[
            tok,
            pl.BlockSpec((1, D), lambda b: (0, 0)),
            pl.BlockSpec((1, D), lambda b: (0, 0)),
            pl.BlockSpec((D, L), lambda b: (0, 0)),
            pl.BlockSpec((1, L), lambda b: (0, 0)),
            pl.BlockSpec((D, L), lambda b: (0, 0)),
            pl.BlockSpec((1, L), lambda b: (0, 0)),
            lat,
        ],
        out_specs=(lat, lat, lat),
        compiler_params=pltpu.CompilerParams(dimension_semantics=("parallel",)),
    )(t, ln_p["g"].reshape(1, D), ln_p["b"].reshape(1, D),
      mu_p["w"], mu_p["b"].reshape(1, L),
      var_p["w"], var_p["b"].reshape(1, L), eps)


def _decode_tail_kernel(d_ref, g_ref, b_ref, w_ref, bb_ref, o_ref):
    """dec LN -> to_pixel, fused."""
    h = _ln(d_ref[0].astype(jnp.float32), g_ref[...], b_ref[...])
    p = _mm(h, w_ref, bb_ref)
    # TODO(synk): VITVAE class is not defined in the provided snippet; final output
    # activation (e.g. sigmoid/tanh) is unknown, so the reconstruction head is linear.
    o_ref[0] = p.astype(o_ref.dtype)


def decode_tail(d, ln_p, pix_p):
    B, N, D = d.shape
    PD = pix_p["w"].shape[1]
    return pl.pallas_call(
        _decode_tail_kernel,
        out_shape=jax.ShapeDtypeStruct((B, N, PD), d.dtype),
        grid=(B,),
        in_specs=[
            pl.BlockSpec((1, N, D), lambda b: (b, 0, 0)),
            pl.BlockSpec((1, D), lambda b: (0, 0)),
            pl.BlockSpec((1, D), lambda b: (0, 0)),
            pl.BlockSpec((D, PD), lambda b: (0, 0)),
            pl.BlockSpec((1, PD), lambda b: (0, 0)),
        ],
        out_specs=pl.BlockSpec((1, N, PD), lambda b: (b, 0, 0)),
        compiler_params=pltpu.CompilerParams(dimension_semantics=("parallel",)),
    )(d, ln_p["g"].reshape(1, D), ln_p["b"].reshape(1, D),
      pix_p["w"], pix_p["b"].reshape(1, PD))


# ------------------------------ glue (JAX, layout only) ---------------------

def patchify(im, p):
    # 'b c (h p1) (w p2) -> b (h w) (p1 p2 c)'
    B, C, H, W = im.shape
    h, w = H // p, W // p
    x = im.reshape(B, C, h, p, w, p)
    x = jnp.transpose(x, (0, 2, 4, 3, 5, 1))      # b h w p1 p2 c
    return x.reshape(B, h * w, p * p * C)


def depatchify(x, p, c, h):
    # 'b (h w) (p1 p2 c) -> b c (h p1) (w p2)'
    B, N, _ = x.shape
    w = N // h
    x = x.reshape(B, h, w, p, p, c)
    x = jnp.transpose(x, (0, 5, 1, 3, 2, 4))      # b c h p1 w p2
    return x.reshape(B, c, h * p, w * p)


def make_forward(patch_size, in_channels, heads):
    def forward(params, im, eps_key):
        B, C, H, W = im.shape
        hp = H // patch_size
        tokens = patchify(im, patch_size)                            # (B, N, patch_dim)
        N = tokens.shape[1]
        L = params["fc_mu"]["w"].shape[1]

        # encode (patch embed + pos emb fused into one kernel)
        t = embed(tokens, params["patch_embed"]["w"], params["patch_embed"]["b"],
                  params["pos_emb"])
        for blk in params["enc_blocks"]:
            t = transformer_block(t, blk, heads)

        eps = jax.random.normal(eps_key, (B, N, L), t.dtype)
        mu, log_var, z = encode_tail(t, params["enc_ln"], params["fc_mu"],
                                     params["fc_var"], eps)

        # decode (dec input linear + dec pos emb fused)
        d = embed(z, params["dec_input"]["w"], params["dec_input"]["b"],
                  params["dec_pos_emb"])
        for blk in params["dec_blocks"]:
            d = transformer_block(d, blk, heads)
        pix = decode_tail(d, params["dec_ln"], params["to_pixel"])
        recon = depatchify(pix, patch_size, in_channels, hp)

        return recon, im, mu, log_var

    return forward


# ------------------------------ parameters ---------------------------------

def init_params(key, *, patch_dim, num_patches, dim, latent, mlp, depth):
    keys = iter(jax.random.split(key, 256))

    def dense(din, dout):
        return {"w": jax.random.normal(next(keys), (din, dout), jnp.float32) * 0.02,
                "b": jnp.zeros((dout,), jnp.float32)}

    def ln(d):
        return {"g": jnp.ones((d,), jnp.float32), "b": jnp.zeros((d,), jnp.float32)}

    def block():
        return {"ln1": ln(dim), "qkv": dense(dim, 3 * dim), "proj": dense(dim, dim),
                "ln2": ln(dim), "mlp1": dense(dim, mlp), "mlp2": dense(mlp, dim)}

    return {
        "patch_embed": dense(patch_dim, dim),
        "pos_emb": jax.random.normal(next(keys), (1, num_patches, dim), jnp.float32) * 0.02,
        "enc_blocks": [block() for _ in range(depth)],
        "enc_ln": ln(dim),
        "fc_mu": dense(dim, latent),
        "fc_var": dense(dim, latent),
        "dec_input": dense(latent, dim),
        "dec_pos_emb": jax.random.normal(next(keys), (1, num_patches, dim), jnp.float32) * 0.02,
        "dec_blocks": [block() for _ in range(depth)],
        "dec_ln": ln(dim),
        "to_pixel": dense(dim, patch_dim),
    }


# --------------------------------- main -------------------------------------

if __name__ == "__main__":
    # Small but shape-consistent config: patch_size=32 (module default), im_size=64,
    # in_channels=1, latent_dims=256, depth=4, mlp_dims=256 (VITVAE defaults).
    B, C, IM, P = 2, 1, 64, 32
    DIM, LATENT, MLP, DEPTH, HEADS = 256, 256, 256, 4, 4
    num_patches = (IM // P) ** 2
    patch_dim = C * P * P

    root = jax.random.PRNGKey(0)
    k_params, k_im, k_eps = jax.random.split(root, 3)

    params = init_params(k_params, patch_dim=patch_dim, num_patches=num_patches,
                         dim=DIM, latent=LATENT, mlp=MLP, depth=DEPTH)
    im = jax.random.normal(k_im, (B, C, IM, IM), jnp.float32)

    forward = jax.jit(make_forward(P, C, HEADS))
    recon, im_out, mu, log_var = forward(params, im, k_eps)
    jax.block_until_ready((recon, im_out, mu, log_var))

    assert recon.shape == (B, C, IM, IM)
    assert mu.shape == (B, num_patches, LATENT)
    assert log_var.shape == (B, num_patches, LATENT)
    print("KERNEL_OK")
</pallas_src>

<mosaic_0001>
module attributes {stable_mosaic.version = 11 : i64} {
  func.func @_embed_kernel(%arg0: i32, %arg1: memref<1x4x1024xf32, #tpu.memory_space<vmem>>, %arg2: memref<1024x256xf32, #tpu.memory_space<vmem>>, %arg3: memref<1x256xf32, #tpu.memory_space<vmem>>, %arg4: memref<1x4x256xf32, #tpu.memory_space<vmem>>, %arg5: memref<1x4x256xf32, #tpu.memory_space<vmem>>) attributes {dimension_semantics = [#tpu.dimension_semantics<parallel>], iteration_bounds = array<i64: 2>, scalar_prefetch = 0 : i64, scratch_operands = 0 : i64, tpu.core_type = #tpu.core_type<tc>, window_params = [{transform_indices = @transform_0, window_bounds = array<i64: 1, 4, 1024>}, {pipeline_mode = #tpu.pipeline_mode<synchronous>, transform_indices = @transform_1, window_bounds = array<i64: 1024, 256>}, {pipeline_mode = #tpu.pipeline_mode<synchronous>, transform_indices = @transform_2, window_bounds = array<i64: 1, 256>}, {pipeline_mode = #tpu.pipeline_mode<synchronous>, transform_indices = @transform_3, window_bounds = array<i64: 1, 4, 256>}, {transform_indices = @transform_4, window_bounds = array<i64: 1, 4, 256>}]} {
    %c0 = arith.constant 0 : index
    %c0_0 = arith.constant 0 : index
    %c0_1 = arith.constant 0 : index
    %0 = vector.load %arg1[%c0, %c0_0, %c0_1] : memref<1x4x1024xf32, #tpu.memory_space<vmem>>, vector<1x4x1024xf32>
    %1 = vector.shape_cast %0 : vector<1x4x1024xf32> to vector<4x1024xf32>
    %2 = arith.truncf %1 : vector<4x1024xf32> to vector<4x1024xbf16>
    %c0_2 = arith.constant 0 : index
    %c0_3 = arith.constant 0 : index
    %3 = vector.load %arg2[%c0_2, %c0_3] : memref<1024x256xf32, #tpu.memory_space<vmem>>, vector<1024x256xf32>
    %4 = arith.truncf %3 : vector<1024x256xf32> to vector<1024x256xbf16>
    %cst = arith.constant dense<0.000000e+00> : vector<4x256xf32>
    %5 = tpu.matmul %2, %4, %cst {dimension_numbers = #tpu.dot_dimension_numbers<[1], [0], [0], [1], [0, 0, 1, 1], [], []>} : vector<4x1024xbf16>, vector<1024x256xbf16>, vector<4x256xf32> -> vector<4x256xf32>
    %c0_4 = arith.constant 0 : index
    %c0_5 = arith.constant 0 : index
    %6 = vector.load %arg3[%c0_4, %c0_5] : memref<1x256xf32, #tpu.memory_space<vmem>>, vector<1x256xf32>
    %7 = vector.broadcast %6 : vector<1x256xf32> to vector<4x256xf32>
    %8 = arith.addf %5, %7 : vector<4x256xf32>
    %c0_6 = arith.constant 0 : index
    %c0_7 = arith.constant 0 : index
    %c0_8 = arith.constant 0 : index
    %9 = vector.load %arg4[%c0_6, %c0_7, %c0_8] : memref<1x4x256xf32, #tpu.memory_space<vmem>>, vector<1x4x256xf32>
    %10 = vector.shape_cast %9 : vector<1x4x256xf32> to vector<4x256xf32>
    %11 = arith.addf %8, %10 : vector<4x256xf32>
    %c0_9 = arith.constant 0 : index
    %c0_10 = arith.constant 0 : index
    %c0_11 = arith.constant 0 : index
    %12 = vector.load %arg5[%c0_9, %c0_10, %c0_11] : memref<1x4x256xf32, #tpu.memory_space<vmem>>, vector<1x4x256xf32>
    %13 = vector.shape_cast %12 : vector<1x4x256xf32> to vector<4x256xf32>
    %14 = vector.shape_cast %11 : vector<4x256xf32> to vector<1x4x256xf32>
    tpu.vector_store %arg5[%c0_9, %c0_10, %c0_11], %14 {strides = array<i32>} : memref<1x4x256xf32, #tpu.memory_space<vmem>>, vector<1x4x256xf32>,
    return
  }
  func.func @transform_0(%arg0: i32) -> (i32, i32, i32) {
    %c0_i32 = arith.constant 0 : i32
    %c0_i32_0 = arith.constant 0 : i32
    %c0_i32_1 = arith.constant 0 : i32
    return %arg0, %c0_i32, %c0_i32_0 : i32, i32, i32
  }
  func.func @transform_1(%arg0: i32) -> (i32, i32) {
    %c0_i32 = arith.constant 0 : i32
    %c0_i32_0 = arith.constant 0 : i32
    %c0_i32_1 = arith.constant 0 : i32
    return %c0_i32, %c0_i32_0 : i32, i32
  }
  func.func @transform_2(%arg0: i32) -> (i32, i32) {
    %c0_i32 = arith.constant 0 : i32
    %c0_i32_0 = arith.constant 0 : i32
    %c0_i32_1 = arith.constant 0 : i32
    return %c0_i32, %c0_i32_0 : i32, i32
  }
  func.func @transform_3(%arg0: i32) -> (i32, i32, i32) {
    %c0_i32 = arith.constant 0 : i32
    %c0_i32_0 = arith.constant 0 : i32
    %c0_i32_1 = arith.constant 0 : i32
    %c0_i32_2 = arith.constant 0 : i32
    return %c0_i32, %c0_i32_0, %c0_i32_1 : i32, i32, i32
  }
  func.func @transform_4(%arg0: i32) -> (i32, i32, i32) {
    %c0_i32 = arith.constant 0 : i32
    %c0_i32_0 = arith.constant 0 : i32
    %c0_i32_1 = arith.constant 0 : i32
    return %arg0, %c0_i32, %c0_i32_0 : i32, i32, i32
  }
}

module attributes {stable_mosaic.version = 11 : i64} {
  func.func @_encode_tail_kernel(%arg0: i32, %arg1: memref<1x4x256xf32, #tpu.memory_space<vmem>>, %arg2: memref<1x256xf32, #tpu.memory_space<vmem>>, %arg3: memref<1x256xf32, #tpu.memory_space<vmem>>, %arg4: memref<256x256xf32, #tpu.memory_space<vmem>>, %arg5: memref<1x256xf32, #tpu.memory_space<vmem>>, %arg6: memref<256x256xf32, #tpu.memory_space<vmem>>, %arg7: memref<1x256xf32, #tpu.memory_space<vmem>>, %arg8: memref<1x4x256xf32, #tpu.memory_space<vmem>>, %arg9: memref<1x4x256xf32, #tpu.memory_space<vmem>>, %arg10: memref<1x4x256xf32, #tpu.memory_space<vmem>>, %arg11: memref<1x4x256xf32, #tpu.memory_space<vmem>>) attributes {dimension_semantics = [#tpu.dimension_semantics<parallel>], iteration_bounds = array<i64: 2>, scalar_prefetch = 0 : i64, scratch_operands = 0 : i64, tpu.core_type = #tpu.core_type<tc>, window_params = [{transform_indices = @transform_0, window_bounds = array<i64: 1, 4, 256>}, {pipeline_mode = #tpu.pipeline_mode<synchronous>, transform_indices = @transform_1, window_bounds = array<i64: 1, 256>}, {pipeline_mode = #tpu.pipeline_mode<synchronous>, transform_indices = @transform_2, window_bounds = array<i64: 1, 256>}, {pipeline_mode = #tpu.pipeline_mode<synchronous>, transform_indices = @transform_3, window_bounds = array<i64: 256, 256>}, {pipeline_mode = #tpu.pipeline_mode<synchronous>, transform_indices = @transform_4, window_bounds = array<i64: 1, 256>}, {pipeline_mode = #tpu.pipeline_mode<synchronous>, transform_indices = @transform_5, window_bounds = array<i64: 256, 256>}, {pipeline_mode = #tpu.pipeline_mode<synchronous>, transform_indices = @transform_6, window_bounds = array<i64: 1, 256>}, {transform_indices = @transform_7, window_bounds = array<i64: 1, 4, 256>}, {transform_indices = @transform_8, window_bounds = array<i64: 1, 4, 256>}, {transform_indices = @transform_9, window_bounds = array<i64: 1, 4, 256>}, {transform_indices = @transform_10, window_bounds = array<i64: 1, 4, 256>}]} {
    %c0 = arith.constant 0 : index
    %c0_0 = arith.constant 0 : index
    %c0_1 = arith.constant 0 : index
    %0 = vector.load %arg1[%c0, %c0_0, %c0_1] : memref<1x4x256xf32, #tpu.memory_space<vmem>>, vector<1x4x256xf32>
    %1 = vector.shape_cast %0 : vector<1x4x256xf32> to vector<4x256xf32>
    %c0_2 = arith.constant 0 : index
    %c0_3 = arith.constant 0 : index
    %2 = vector.load %arg2[%c0_2, %c0_3] : memref<1x256xf32, #tpu.memory_space<vmem>>, vector<1x256xf32>
    %c0_4 = arith.constant 0 : index
    %c0_5 = arith.constant 0 : index
    %3 = vector.load %arg3[%c0_4, %c0_5] : memref<1x256xf32, #tpu.memory_space<vmem>>, vector<1x256xf32>
    %cst = arith.constant dense<0.000000e+00> : vector<4xf32>
    %4 = vector.multi_reduction <add>, %1, %cst [1] : vector<4x256xf32> to vector<4xf32>
    %5 = vector.shape_cast %4 : vector<4xf32> to vector<4x1xf32>
    %cst_6 = arith.constant 2.560000e+02 : f32
    %6 = vector.broadcast %cst_6 : f32 to vector<4x1xf32>
    %7 = arith.divf %5, %6 : vector<4x1xf32>
    %8 = vector.broadcast %7 : vector<4x1xf32> to vector<4x256xf32>
    %9 = arith.subf %1, %8 : vector<4x256xf32>
    %10 = arith.mulf %9, %9 : vector<4x256xf32>
    %cst_7 = arith.constant dense<0.000000e+00> : vector<4xf32>
    %11 = vector.multi_reduction <add>, %10, %cst_7 [1] : vector<4x256xf32> to vector<4xf32>
    %12 = vector.shape_cast %11 : vector<4xf32> to vector<4x1xf32>
    %cst_8 = arith.constant 2.560000e+02 : f32
    %13 = vector.broadcast %cst_8 : f32 to vector<4x1xf32>
    %14 = arith.divf %12, %13 : vector<4x1xf32>
    %15 = vector.broadcast %7 : vector<4x1xf32> to vector<4x256xf32>
    %16 = arith.subf %1, %15 : vector<4x256xf32>
    %cst_9 = arith.constant 9.99999974E-6 : f32
    %17 = vector.broadcast %cst_9 : f32 to vector<4x1xf32>
    %18 = arith.addf %14, %17 : vector<4x1xf32>
    %19 = math.rsqrt %18 : vector<4x1xf32>
    %20 = vector.broadcast %19 : vector<4x1xf32> to vector<4x256xf32>
    %21 = arith.mulf %16, %20 : vector<4x256xf32>
    %22 = vector.broadcast %2 : vector<1x256xf32> to vector<4x256xf32>
    %23 = arith.mulf %21, %22 : vector<4x256xf32>
    %24 = vector.broadcast %3 : vector<1x256xf32> to vector<4x256xf32>
    %25 = arith.addf %23, %24 : vector<4x256xf32>
    %26 = arith.truncf %25 : vector<4x256xf32> to vector<4x256xbf16>
    %c0_10 = arith.constant 0 : index
    %c0_11 = arith.constant 0 : index
    %27 = vector.load %arg4[%c0_10, %c0_11] : memref<256x256xf32, #tpu.memory_space<vmem>>, vector<256x256xf32>
    %28 = arith.truncf %27 : vector<256x256xf32> to vector<256x256xbf16>
    %cst_12 = arith.constant dense<0.000000e+00> : vector<4x256xf32>
    %29 = tpu.matmul %26, %28, %cst_12 {dimension_numbers = #tpu.dot_dimension_numbers<[1], [0], [0], [1], [0, 0, 1, 1], [], []>} : vector<4x256xbf16>, vector<256x256xbf16>, vector<4x256xf32> -> vector<4x256xf32>
    %c0_13 = arith.constant 0 : index
    %c0_14 = arith.constant 0 : index
    %30 = vector.load %arg5[%c0_13, %c0_14] : memref<1x256xf32, #tpu.memory_space<vmem>>, vector<1x256xf32>
    %31 = vector.broadcast %30 : vector<1x256xf32> to vector<4x256xf32>
    %32 = arith.addf %29, %31 : vector<4x256xf32>
    %33 = arith.truncf %25 : vector<4x256xf32> to vector<4x256xbf16>
    %c0_15 = arith.constant 0 : index
    %c0_16 = arith.constant 0 : index
    %34 = vector.load %arg6[%c0_15, %c0_16] : memref<256x256xf32, #tpu.memory_space<vmem>>, vector<256x256xf32>
    %35 = arith.truncf %34 : vector<256x256xf32> to vector<256x256xbf16>
    %cst_17 = arith.constant dense<0.000000e+00> : vector<4x256xf32>
    %36 = tpu.matmul %33, %35, %cst_17 {dimension_numbers = #tpu.dot_dimension_numbers<[1], [0], [0], [1], [0, 0, 1, 1], [], []>} : vector<4x256xbf16>, vector<256x256xbf16>, vector<4x256xf32> -> vector<4x256xf32>
    %c0_18 = arith.constant 0 : index
    %c0_19 = arith.constant 0 : index
    %37 = vector.load %arg7[%c0_18, %c0_19] : memref<1x256xf32, #tpu.memory_space<vmem>>, vector<1x256xf32>
    %38 = vector.broadcast %37 : vector<1x256xf32> to vector<4x256xf32>
    %39 = arith.addf %36, %38 : vector<4x256xf32>
    %c0_20 = arith.constant 0 : index
    %c0_21 = arith.constant 0 : index
    %c0_22 = arith.constant 0 : index
    %40 = vector.load %arg8[%c0_20, %c0_21, %c0_22] : memref<1x4x256xf32, #tpu.memory_space<vmem>>, vector<1x4x256xf32>
    %41 = vector.shape_cast %40 : vector<1x4x256xf32> to vector<4x256xf32>
    %cst_23 = arith.constant 5.000000e-01 : f32
    %42 = vector.broadcast %cst_23 : f32 to vector<4x256xf32>
    %43 = arith.mulf %42, %39 : vector<4x256xf32>
    %44 = math.exp %43 : vector<4x256xf32>
    %45 = arith.mulf %41, %44 : vector<4x256xf32>
    %46 = arith.addf %32, %45 : vector<4x256xf32>
    %c0_24 = arith.constant 0 : index
    %c0_25 = arith.constant 0 : index
    %c0_26 = arith.constant 0 : index
    %47 = vector.load %arg9[%c0_24, %c0_25, %c0_26] : memref<1x4x256xf32, #tpu.memory_space<vmem>>, vector<1x4x256xf32>
    %48 = vector.shape_cast %47 : vector<1x4x256xf32> to vector<4x256xf32>
    %49 = vector.shape_cast %32 : vector<4x256xf32> to vector<1x4x256xf32>
    tpu.vector_store %arg9[%c0_24, %c0_25, %c0_26], %49 {strides = array<i32>} : memref<1x4x256xf32, #tpu.memory_space<vmem>>, vector<1x4x256xf32>,
    %c0_27 = arith.constant 0 : index
    %c0_28 = arith.constant 0 : index
    %c0_29 = arith.constant 0 : index
    %50 = vector.load %arg10[%c0_27, %c0_28, %c0_29] : memref<1x4x256xf32, #tpu.memory_space<vmem>>, vector<1x4x256xf32>
    %51 = vector.shape_cast %50 : vector<1x4x256xf32> to vector<4x256xf32>
    %52 = vector.shape_cast %39 : vector<4x256xf32> to vector<1x4x256xf32>
    tpu.vector_store %arg10[%c0_27, %c0_28, %c0_29], %52 {strides = array<i32>} : memref<1x4x256xf32, #tpu.memory_space<vmem>>, vector<1x4x256xf32>,
    %c0_30 = arith.constant 0 : index
    %c0_31 = arith.constant 0 : index
    %c0_32 = arith.constant 0 : index
    %53 = vector.load %arg11[%c0_30, %c0_31, %c0_32] : memref<1x4x256xf32, #tpu.memory_space<vmem>>, vector<1x4x256xf32>
    %54 = vector.shape_cast %53 : vector<1x4x256xf32> to vector<4x256xf32>
    %55 = vector.shape_cast %46 : vector<4x256xf32> to vector<1x4x256xf32>
    tpu.vector_store %arg11[%c0_30, %c0_31, %c0_32], %55 {strides = array<i32>} : memref<1x4x256xf32, #tpu.memory_space<vmem>>, vector<1x4x256xf32>,
    return
  }
  func.func @transform_0(%arg0: i32) -> (i32, i32, i32) {
    %c0_i32 = arith.constant 0 : i32
    %c0_i32_0 = arith.constant 0 : i32
    %c0_i32_1 = arith.constant 0 : i32
    return %arg0, %c0_i32, %c0_i32_0 : i32, i32, i32
  }
  func.func @transform_1(%arg0: i32) -> (i32, i32) {
    %c0_i32 = arith.constant 0 : i32
    %c0_i32_0 = arith.constant 0 : i32
    %c0_i32_1 = arith.constant 0 : i32
    return %c0_i32, %c0_i32_0 : i32, i32
  }
  func.func @transform_2(%arg0: i32) -> (i32, i32) {
    %c0_i32 = arith.constant 0 : i32
    %c0_i32_0 = arith.constant 0 : i32
    %c0_i32_1 = arith.constant 0 : i32
    return %c0_i32, %c0_i32_0 : i32, i32
  }
  func.func @transform_3(%arg0: i32) -> (i32, i32) {
    %c0_i32 = arith.constant 0 : i32
    %c0_i32_0 = arith.constant 0 : i32
    %c0_i32_1 = arith.constant 0 : i32
    return %c0_i32, %c0_i32_0 : i32, i32
  }
  func.func @transform_4(%arg0: i32) -> (i32, i32) {
    %c0_i32 = arith.constant 0 : i32
    %c0_i32_0 = arith.constant 0 : i32
    %c0_i32_1 = arith.constant 0 : i32
    return %c0_i32, %c0_i32_0 : i32, i32
  }
  func.func @transform_5(%arg0: i32) -> (i32, i32) {
    %c0_i32 = arith.constant 0 : i32
    %c0_i32_0 = arith.constant 0 : i32
    %c0_i32_1 = arith.constant 0 : i32
    return %c0_i32, %c0_i32_0 : i32, i32
  }
  func.func @transform_6(%arg0: i32) -> (i32, i32) {
    %c0_i32 = arith.constant 0 : i32
    %c0_i32_0 = arith.constant 0 : i32
    %c0_i32_1 = arith.constant 0 : i32
    return %c0_i32, %c0_i32_0 : i32, i32
  }
  func.func @transform_7(%arg0: i32) -> (i32, i32, i32) {
    %c0_i32 = arith.constant 0 : i32
    %c0_i32_0 = arith.constant 0 : i32
    %c0_i32_1 = arith.constant 0 : i32
    return %arg0, %c0_i32, %c0_i32_0 : i32, i32, i32
  }
  func.func @transform_8(%arg0: i32) -> (i32, i32, i32) {
    %c0_i32 = arith.constant 0 : i32
    %c0_i32_0 = arith.constant 0 : i32
    %c0_i32_1 = arith.constant 0 : i32
    return %arg0, %c0_i32, %c0_i32_0 : i32, i32, i32
  }
  func.func @transform_9(%arg0: i32) -> (i32, i32, i32) {
    %c0_i32 = arith.constant 0 : i32
    %c0_i32_0 = arith.constant 0 : i32
    %c0_i32_1 = arith.constant 0 : i32
    return %arg0, %c0_i32, %c0_i32_0 : i32, i32, i32
  }
  func.func @transform_10(%arg0: i32) -> (i32, i32, i32) {
    %c0_i32 = arith.constant 0 : i32
    %c0_i32_0 = arith.constant 0 : i32
    %c0_i32_1 = arith.constant 0 : i32
    return %arg0, %c0_i32, %c0_i32_0 : i32, i32, i32
  }
}

module attributes {stable_mosaic.version = 11 : i64} {
  func.func @_block_kernel(%arg0: i32, %arg1: memref<1x4x256xf32, #tpu.memory_space<vmem>>, %arg2: memref<1x256xf32, #tpu.memory_space<vmem>>, %arg3: memref<1x256xf32, #tpu.memory_space<vmem>>, %arg4: memref<256x768xf32, #tpu.memory_space<vmem>>, %arg5: memref<1x768xf32, #tpu.memory_space<vmem>>, %arg6: memref<256x256xf32, #tpu.memory_space<vmem>>, %arg7: memref<1x256xf32, #tpu.memory_space<vmem>>, %arg8: memref<1x256xf32, #tpu.memory_space<vmem>>, %arg9: memref<1x256xf32, #tpu.memory_space<vmem>>, %arg10: memref<256x256xf32, #tpu.memory_space<vmem>>, %arg11: memref<1x256xf32, #tpu.memory_space<vmem>>, %arg12: memref<256x256xf32, #tpu.memory_space<vmem>>, %arg13: memref<1x256xf32, #tpu.memory_space<vmem>>, %arg14: memref<1x4x256xf32, #tpu.memory_space<vmem>>) attributes {dimension_semantics = [#tpu.dimension_semantics<parallel>], iteration_bounds = array<i64: 2>, scalar_prefetch = 0 : i64, scratch_operands = 0 : i64, tpu.core_type = #tpu.core_type<tc>, window_params = [{transform_indices = @transform_0, window_bounds = array<i64: 1, 4, 256>}, {pipeline_mode = #tpu.pipeline_mode<synchronous>, transform_indices = @transform_1, window_bounds = array<i64: 1, 256>}, {pipeline_mode = #tpu.pipeline_mode<synchronous>, transform_indices = @transform_2, window_bounds = array<i64: 1, 256>}, {pipeline_mode = #tpu.pipeline_mode<synchronous>, transform_indices = @transform_3, window_bounds = array<i64: 256, 768>}, {pipeline_mode = #tpu.pipeline_mode<synchronous>, transform_indices = @transform_4, window_bounds = array<i64: 1, 768>}, {pipeline_mode = #tpu.pipeline_mode<synchronous>, transform_indices = @transform_5, window_bounds = array<i64: 256, 256>}, {pipeline_mode = #tpu.pipeline_mode<synchronous>, transform_indices = @transform_6, window_bounds = array<i64: 1, 256>}, {pipeline_mode = #tpu.pipeline_mode<synchronous>, transform_indices = @transform_7, window_bounds = array<i64: 1, 256>}, {pipeline_mode = #tpu.pipeline_mode<synchronous>, transform_indices = @transform_8, window_bounds = array<i64: 1, 256>}, {pipeline_mode = #tpu.pipeline_mode<synchronous>, transform_indices = @transform_9, window_bounds = array<i64: 256, 256>}, {pipeline_mode = #tpu.pipeline_mode<synchronous>, transform_indices = @transform_10, window_bounds = array<i64: 1, 256>}, {pipeline_mode = #tpu.pipeline_mode<synchronous>, transform_indices = @transform_11, window_bounds = array<i64: 256, 256>}, {pipeline_mode = #tpu.pipeline_mode<synchronous>, transform_indices = @transform_12, window_bounds = array<i64: 1, 256>}, {transform_indices = @transform_13, window_bounds = array<i64: 1, 4, 256>}]} {
    %c0 = arith.constant 0 : index
    %c0_0 = arith.constant 0 : index
    %c0_1 = arith.constant 0 : index
    %0 = vector.load %arg1[%c0, %c0_0, %c0_1] : memref<1x4x256xf32, #tpu.memory_space<vmem>>, vector<1x4x256xf32>
    %1 = vector.shape_cast %0 : vector<1x4x256xf32> to vector<4x256xf32>
    %c0_2 = arith.constant 0 : index
    %c0_3 = arith.constant 0 : index
    %2 = vector.load %arg2[%c0_2, %c0_3] : memref<1x256xf32, #tpu.memory_space<vmem>>, vector<1x256xf32>
    %c0_4 = arith.constant 0 : index
    %c0_5 = arith.constant 0 : index
    %3 = vector.load %arg3[%c0_4, %c0_5] : memref<1x256xf32, #tpu.memory_space<vmem>>, vector<1x256xf32>
    %cst = arith.constant dense<0.000000e+00> : vector<4xf32>
    %4 = vector.multi_reduction <add>, %1, %cst [1] : vector<4x256xf32> to vector<4xf32>
    %5 = vector.shape_cast %4 : vector<4xf32> to vector<4x1xf32>
    %cst_6 = arith.constant 2.560000e+02 : f32
    %6 = vector.broadcast %cst_6 : f32 to vector<4x1xf32>
    %7 = arith.divf %5, %6 : vector<4x1xf32>
    %8 = vector.broadcast %7 : vector<4x1xf32> to vector<4x256xf32>
    %9 = arith.subf %1, %8 : vector<4x256xf32>
    %10 = arith.mulf %9, %9 : vector<4x256xf32>
    %cst_7 = arith.constant dense<0.000000e+00> : vector<4xf32>
    %11 = vector.multi_reduction <add>, %10, %cst_7 [1] : vector<4x256xf32> to vector<4xf32>
    %12 = vector.shape_cast %11 : vector<4xf32> to vector<4x1xf32>
    %cst_8 = arith.constant 2.560000e+02 : f32
    %13 = vector.broadcast %cst_8 : f32 to vector<4x1xf32>
    %14 = arith.divf %12, %13 : vector<4x1xf32>
    %15 = vector.broadcast %7 : vector<4x1xf32> to vector<4x256xf32>
    %16 = arith.subf %1, %15 : vector<4x256xf32>
    %cst_9 = arith.constant 9.99999974E-6 : f32
    %17 = vector.broadcast %cst_9 : f32 to vector<4x1xf32>
    %18 = arith.addf %14, %17 : vector<4x1xf32>
    %19 = math.rsqrt %18 : vector<4x1xf32>
    %20 = vector.broadcast %19 : vector<4x1xf32> to vector<4x256xf32>
    %21 = arith.mulf %16, %20 : vector<4x256xf32>
    %22 = vector.broadcast %2 : vector<1x256xf32> to vector<4x256xf32>
    %23 = arith.mulf %21, %22 : vector<4x256xf32>
    %24 = vector.broadcast %3 : vector<1x256xf32> to vector<4x256xf32>
    %25 = arith.addf %23, %24 : vector<4x256xf32>
    %26 = arith.truncf %25 : vector<4x256xf32> to vector<4x256xbf16>
    %c0_10 = arith.constant 0 : index
    %c0_11 = arith.constant 0 : index
    %27 = vector.load %arg4[%c0_10, %c0_11] : memref<256x768xf32, #tpu.memory_space<vmem>>, vector<256x768xf32>
    %28 = arith.truncf %27 : vector<256x768xf32> to vector<256x768xbf16>
    %cst_12 = arith.constant dense<0.000000e+00> : vector<4x768xf32>
    %29 = tpu.matmul %26, %28, %cst_12 {dimension_numbers = #tpu.dot_dimension_numbers<[1], [0], [0], [1], [0, 0, 1, 1], [], []>} : vector<4x256xbf16>, vector<256x768xbf16>, vector<4x768xf32> -> vector<4x768xf32>
    %c0_13 = arith.constant 0 : index
    %c0_14 = arith.constant 0 : index
    %30 = vector.load %arg5[%c0_13, %c0_14] : memref<1x768xf32, #tpu.memory_space<vmem>>, vector<1x768xf32>
    %31 = vector.broadcast %30 : vector<1x768xf32> to vector<4x768xf32>
    %32 = arith.addf %29, %31 : vector<4x768xf32>
    %33 = vector.extract_strided_slice %32 {offsets = [0, 0], sizes = [4, 64], strides = [1, 1]} : vector<4x768xf32> to vector<4x64xf32>
    %34 = vector.extract_strided_slice %32 {offsets = [0, 256], sizes = [4, 64], strides = [1, 1]} : vector<4x768xf32> to vector<4x64xf32>
    %35 = vector.extract_strided_slice %32 {offsets = [0, 512], sizes = [4, 64], strides = [1, 1]} : vector<4x768xf32> to vector<4x64xf32>
    %36 = arith.truncf %33 : vector<4x64xf32> to vector<4x64xbf16>
    %37 = arith.truncf %34 : vector<4x64xf32> to vector<4x64xbf16>
    %cst_15 = arith.constant dense<0.000000e+00> : vector<4x4xf32>
    %38 = tpu.matmul %36, %37, %cst_15 {dimension_numbers = #tpu.dot_dimension_numbers<[1], [1], [0], [0], [0, 0, 1, 0], [], []>} : vector<4x64xbf16>, vector<4x64xbf16>, vector<4x4xf32> -> vector<4x4xf32>
    %cst_16 = arith.constant 1.250000e-01 : f32
    %39 = vector.broadcast %cst_16 : f32 to vector<4x4xf32>
    %40 = arith.mulf %38, %39 : vector<4x4xf32>
    %cst_17 = arith.constant dense<0xFF800000> : vector<4xf32>
    %41 = vector.multi_reduction <maximumf>, %40, %cst_17 [1] : vector<4x4xf32> to vector<4xf32>
    %42 = vector.shape_cast %41 : vector<4xf32> to vector<4x1xf32>
    %43 = vector.broadcast %42 : vector<4x1xf32> to vector<4x4xf32>
    %44 = arith.subf %40, %43 : vector<4x4xf32>
    %45 = math.exp %44 : vector<4x4xf32>
    %cst_18 = arith.constant dense<0.000000e+00> : vector<4xf32>
    %46 = vector.multi_reduction <add>, %45, %cst_18 [1] : vector<4x4xf32> to vector<4xf32>
    %47 = vector.shape_cast %46 : vector<4xf32> to vector<4x1xf32>
    %48 = tpu.reciprocal %47 {approx = true} : vector<4x1xf32> -> vector<4x1xf32>
    %49 = vector.broadcast %48 : vector<4x1xf32> to vector<4x4xf32>
    %50 = arith.mulf %45, %49 : vector<4x4xf32>
    %51 = arith.truncf %50 : vector<4x4xf32> to vector<4x4xbf16>
    %52 = arith.truncf %35 : vector<4x64xf32> to vector<4x64xbf16>
    %cst_19 = arith.constant dense<0.000000e+00> : vector<4x64xf32>
    %53 = tpu.matmul %51, %52, %cst_19 {dimension_numbers = #tpu.dot_dimension_numbers<[1], [0], [0], [1], [0, 0, 1, 1], [], []>} : vector<4x4xbf16>, vector<4x64xbf16>, vector<4x64xf32> -> vector<4x64xf32>
    %54 = vector.extract_strided_slice %32 {offsets = [0, 64], sizes = [4, 64], strides = [1, 1]} : vector<4x768xf32> to vector<4x64xf32>
    %55 = vector.extract_strided_slice %32 {offsets = [0, 320], sizes = [4, 64], strides = [1, 1]} : vector<4x768xf32> to vector<4x64xf32>
    %56 = vector.extract_strided_slice %32 {offsets = [0, 576], sizes = [4, 64], strides = [1, 1]} : vector<4x768xf32> to vector<4x64xf32>
    %57 = arith.truncf %54 : vector<4x64xf32> to vector<4x64xbf16>
    %58 = arith.truncf %55 : vector<4x64xf32> to vector<4x64xbf16>
    %cst_20 = arith.constant dense<0.000000e+00> : vector<4x4xf32>
    %59 = tpu.matmul %57, %58, %cst_20 {dimension_numbers = #tpu.dot_dimension_numbers<[1], [1], [0], [0], [0, 0, 1, 0], [], []>} : vector<4x64xbf16>, vector<4x64xbf16>, vector<4x4xf32> -> vector<4x4xf32>
    %cst_21 = arith.constant 1.250000e-01 : f32
    %60 = vector.broadcast %cst_21 : f32 to vector<4x4xf32>
    %61 = arith.mulf %59, %60 : vector<4x4xf32>
    %cst_22 = arith.constant dense<0xFF800000> : vector<4xf32>
    %62 = vector.multi_reduction <maximumf>, %61, %cst_22 [1] : vector<4x4xf32> to vector<4xf32>
    %63 = vector.shape_cast %62 : vector<4xf32> to vector<4x1xf32>
    %64 = vector.broadcast %63 : vector<4x1xf32> to vector<4x4xf32>
    %65 = arith.subf %61, %64 : vector<4x4xf32>
    %66 = math.exp %65 : vector<4x4xf32>
    %cst_23 = arith.constant dense<0.000000e+00> : vector<4xf32>
    %67 = vector.multi_reduction <add>, %66, %cst_23 [1] : vector<4x4xf32> to vector<4xf32>
    %68 = vector.shape_cast %67 : vector<4xf32> to vector<4x1xf32>
    %69 = tpu.reciprocal %68 {approx = true} : vector<4x1xf32> -> vector<4x1xf32>
    %70 = vector.broadcast %69 : vector<4x1xf32> to vector<4x4xf32>
    %71 = arith.mulf %66, %70 : vector<4x4xf32>
    %72 = arith.truncf %71 : vector<4x4xf32> to vector<4x4xbf16>
    %73 = arith.truncf %56 : vector<4x64xf32> to vector<4x64xbf16>
    %cst_24 = arith.constant dense<0.000000e+00> : vector<4x64xf32>
    %74 = tpu.matmul %72, %73, %cst_24 {dimension_numbers = #tpu.dot_dimension_numbers<[1], [0], [0], [1], [0, 0, 1, 1], [], []>} : vector<4x4xbf16>, vector<4x64xbf16>, vector<4x64xf32> -> vector<4x64xf32>
    %75 = vector.extract_strided_slice %32 {offsets = [0, 128], sizes = [4, 64], strides = [1, 1]} : vector<4x768xf32> to vector<4x64xf32>
    %76 = vector.extract_strided_slice %32 {offsets = [0, 384], sizes = [4, 64], strides = [1, 1]} : vector<4x768xf32> to vector<4x64xf32>
    %77 = vector.extract_strided_slice %32 {offsets = [0, 640], sizes = [4, 64], strides = [1, 1]} : vector<4x768xf32> to vector<4x64xf32>
    %78 = arith.truncf %75 : vector<4x64xf32> to vector<4x64xbf16>
    %79 = arith.truncf %76 : vector<4x64xf32> to vector<4x64xbf16>
    %cst_25 = arith.constant dense<0.000000e+00> : vector<4x4xf32>
    %80 = tpu.matmul %78, %79, %cst_25 {dimension_numbers = #tpu.dot_dimension_numbers<[1], [1], [0], [0], [0, 0, 1, 0], [], []>} : vector<4x64xbf16>, vector<4x64xbf16>, vector<4x4xf32> -> vector<4x4xf32>
    %cst_26 = arith.constant 1.250000e-01 : f32
    %81 = vector.broadcast %cst_26 : f32 to vector<4x4xf32>
    %82 = arith.mulf %80, %81 : vector<4x4xf32>
    %cst_27 = arith.constant dense<0xFF800000> : vector<4xf32>
    %83 = vector.multi_reduction <maximumf>, %82, %cst_27 [1] : vector<4x4xf32> to vector<4xf32>
    %84 = vector.shape_cast %83 : vector<4xf32> to vector<4x1xf32>
    %85 = vector.broadcast %84 : vector<4x1xf32> to vector<4x4xf32>
    %86 = arith.subf %82, %85 : vector<4x4xf32>
    %87 = math.exp %86 : vector<4x4xf32>
    %cst_28 = arith.constant dense<0.000000e+00> : vector<4xf32>
    %88 = vector.multi_reduction <add>, %87, %cst_28 [1] : vector<4x4xf32> to vector<4xf32>
    %89 = vector.shape_cast %88 : vector<4xf32> to vector<4x1xf32>
    %90 = tpu.reciprocal %89 {approx = true} : vector<4x1xf32> -> vector<4x1xf32>
    %91 = vector.broadcast %90 : vector<4x1xf32> to vector<4x4xf32>
    %92 = arith.mulf %87, %91 : vector<4x4xf32>
    %93 = arith.truncf %92 : vector<4x4xf32> to vector<4x4xbf16>
    %94 = arith.truncf %77 : vector<4x64xf32> to vector<4x64xbf16>
    %cst_29 = arith.constant dense<0.000000e+00> : vector<4x64xf32>
    %95 = tpu.matmul %93, %94, %cst_29 {dimension_numbers = #tpu.dot_dimension_numbers<[1], [0], [0], [1], [0, 0, 1, 1], [], []>} : vector<4x4xbf16>, vector<4x64xbf16>, vector<4x64xf32> -> vector<4x64xf32>
    %96 = vector.extract_strided_slice %32 {offsets = [0, 192], sizes = [4, 64], strides = [1, 1]} : vector<4x768xf32> to vector<4x64xf32>
    %97 = vector.extract_strided_slice %32 {offsets = [0, 448], sizes = [4, 64], strides = [1, 1]} : vector<4x768xf32> to vector<4x64xf32>
    %98 = vector.extract_strided_slice %32 {offsets = [0, 704], sizes = [4, 64], strides = [1, 1]} : vector<4x768xf32> to vector<4x64xf32>
    %99 = arith.truncf %96 : vector<4x64xf32> to vector<4x64xbf16>
    %100 = arith.truncf %97 : vector<4x64xf32> to vector<4x64xbf16>
    %cst_30 = arith.constant dense<0.000000e+00> : vector<4x4xf32>
    %101 = tpu.matmul %99, %100, %cst_30 {dimension_numbers = #tpu.dot_dimension_numbers<[1], [1], [0], [0], [0, 0, 1, 0], [], []>} : vector<4x64xbf16>, vector<4x64xbf16>, vector<4x4xf32> -> vector<4x4xf32>
    %cst_31 = arith.constant 1.250000e-01 : f32
    %102 = vector.broadcast %cst_31 : f32 to vector<4x4xf32>
    %103 = arith.mulf %101, %102 : vector<4x4xf32>
    %cst_32 = arith.constant dense<0xFF800000> : vector<4xf32>
    %104 = vector.multi_reduction <maximumf>, %103, %cst_32 [1] : vector<4x4xf32> to vector<4xf32>
    %105 = vector.shape_cast %104 : vector<4xf32> to vector<4x1xf32>
    %106 = vector.broadcast %105 : vector<4x1xf32> to vector<4x4xf32>
    %107 = arith.subf %103, %106 : vector<4x4xf32>
    %108 = math.exp %107 : vector<4x4xf32>
    %cst_33 = arith.constant dense<0.000000e+00> : vector<4xf32>
    %109 = vector.multi_reduction <add>, %108, %cst_33 [1] : vector<4x4xf32> to vector<4xf32>
    %110 = vector.shape_cast %109 : vector<4xf32> to vector<4x1xf32>
    %111 = tpu.reciprocal %110 {approx = true} : vector<4x1xf32> -> vector<4x1xf32>
    %112 = vector.broadcast %111 : vector<4x1xf32> to vector<4x4xf32>
    %113 = arith.mulf %108, %112 : vector<4x4xf32>
    %114 = arith.truncf %113 : vector<4x4xf32> to vector<4x4xbf16>
    %115 = arith.truncf %98 : vector<4x64xf32> to vector<4x64xbf16>
    %cst_34 = arith.constant dense<0.000000e+00> : vector<4x64xf32>
    %116 = tpu.matmul %114, %115, %cst_34 {dimension_numbers = #tpu.dot_dimension_numbers<[1], [0], [0], [1], [0, 0, 1, 1], [], []>} : vector<4x4xbf16>, vector<4x64xbf16>, vector<4x64xf32> -> vector<4x64xf32>
    %117 = tpu.concatenate %53, %74, %95, %116 in 1 : vector<4x64xf32>, vector<4x64xf32>, vector<4x64xf32>, vector<4x64xf32> -> vector<4x256xf32>
    %118 = arith.truncf %117 : vector<4x256xf32> to vector<4x256xbf16>
    %c0_35 = arith.constant 0 : index
    %c0_36 = arith.constant 0 : index
    %119 = vector.load %arg6[%c0_35, %c0_36] : memref<256x256xf32, #tpu.memory_space<vmem>>, vector<256x256xf32>
    %120 = arith.truncf %119 : vector<256x256xf32> to vector<256x256xbf16>
    %cst_37 = arith.constant dense<0.000000e+00> : vector<4x256xf32>
    %121 = tpu.matmul %118, %120, %cst_37 {dimension_numbers = #tpu.dot_dimension_numbers<[1], [0], [0], [1], [0, 0, 1, 1], [], []>} : vector<4x256xbf16>, vector<256x256xbf16>, vector<4x256xf32> -> vector<4x256xf32>
    %c0_38 = arith.constant 0 : index
    %c0_39 = arith.constant 0 : index
    %122 = vector.load %arg7[%c0_38, %c0_39] : memref<1x256xf32, #tpu.memory_space<vmem>>, vector<1x256xf32>
    %123 = vector.broadcast %122 : vector<1x256xf32> to vector<4x256xf32>
    %124 = arith.addf %121, %123 : vector<4x256xf32>
    %125 = arith.addf %1, %124 : vector<4x256xf32>
    %c0_40 = arith.constant 0 : index
    %c0_41 = arith.constant 0 : index
    %126 = vector.load %arg8[%c0_40, %c0_41] : memref<1x256xf32, #tpu.memory_space<vmem>>, vector<1x256xf32>
    %c0_42 = arith.constant 0 : index
    %c0_43 = arith.constant 0 : index
    %127 = vector.load %arg9[%c0_42, %c0_43] : memref<1x256xf32, #tpu.memory_space<vmem>>, vector<1x256xf32>
    %cst_44 = arith.constant dense<0.000000e+00> : vector<4xf32>
    %128 = vector.multi_reduction <add>, %125, %cst_44 [1] : vector<4x256xf32> to vector<4xf32>
    %129 = vector.shape_cast %128 : vector<4xf32> to vector<4x1xf32>
    %cst_45 = arith.constant 2.560000e+02 : f32
    %130 = vector.broadcast %cst_45 : f32 to vector<4x1xf32>
    %131 = arith.divf %129, %130 : vector<4x1xf32>
    %132 = vector.broadcast %131 : vector<4x1xf32> to vector<4x256xf32>
    %133 = arith.subf %125, %132 : vector<4x256xf32>
    %134 = arith.mulf %133, %133 : vector<4x256xf32>
    %cst_46 = arith.constant dense<0.000000e+00> : vector<4xf32>
    %135 = vector.multi_reduction <add>, %134, %cst_46 [1] : vector<4x256xf32> to vector<4xf32>
    %136 = vector.shape_cast %135 : vector<4xf32> to vector<4x1xf32>
    %cst_47 = arith.constant 2.560000e+02 : f32
    %137 = vector.broadcast %cst_47 : f32 to vector<4x1xf32>
    %138 = arith.divf %136, %137 : vector<4x1xf32>
    %139 = vector.broadcast %131 : vector<4x1xf32> to vector<4x256xf32>
    %140 = arith.subf %125, %139 : vector<4x256xf32>
    %cst_48 = arith.constant 9.99999974E-6 : f32
    %141 = vector.broadcast %cst_48 : f32 to vector<4x1xf32>
    %142 = arith.addf %138, %141 : vector<4x1xf32>
    %143 = math.rsqrt %142 : vector<4x1xf32>
    %144 = vector.broadcast %143 : vector<4x1xf32> to vector<4x256xf32>
    %145 = arith.mulf %140, %144 : vector<4x256xf32>
    %146 = vector.broadcast %126 : vector<1x256xf32> to vector<4x256xf32>
    %147 = arith.mulf %145, %146 : vector<4x256xf32>
    %148 = vector.broadcast %127 : vector<1x256xf32> to vector<4x256xf32>
    %149 = arith.addf %147, %148 : vector<4x256xf32>
    %150 = arith.truncf %149 : vector<4x256xf32> to vector<4x256xbf16>
    %c0_49 = arith.constant 0 : index
    %c0_50 = arith.constant 0 : index
    %151 = vector.load %arg10[%c0_49, %c0_50] : memref<256x256xf32, #tpu.memory_space<vmem>>, vector<256x256xf32>
    %152 = arith.truncf %151 : vector<256x256xf32> to vector<256x256xbf16>
    %cst_51 = arith.constant dense<0.000000e+00> : vector<4x256xf32>
    %153 = tpu.matmul %150, %152, %cst_51 {dimension_numbers = #tpu.dot_dimension_numbers<[1], [0], [0], [1], [0, 0, 1, 1], [], []>} : vector<4x256xbf16>, vector<256x256xbf16>, vector<4x256xf32> -> vector<4x256xf32>
    %c0_52 = arith.constant 0 : index
    %c0_53 = arith.constant 0 : index
    %154 = vector.load %arg11[%c0_52, %c0_53] : memref<1x256xf32, #tpu.memory_space<vmem>>, vector<1x256xf32>
    %155 = vector.broadcast %154 : vector<1x256xf32> to vector<4x256xf32>
    %156 = arith.addf %153, %155 : vector<4x256xf32>
    %cst_54 = arith.constant 5.000000e-01 : f32
    %157 = vector.broadcast %cst_54 : f32 to vector<4x256xf32>
    %158 = arith.mulf %157, %156 : vector<4x256xf32>
    %cst_55 = arith.constant 4.471500e-02 : f32
    %159 = vector.broadcast %cst_55 : f32 to vector<4x256xf32>
    %160 = arith.mulf %159, %156 : vector<4x256xf32>
    %161 = arith.mulf %160, %156 : vector<4x256xf32>
    %162 = arith.mulf %161, %156 : vector<4x256xf32>
    %163 = arith.addf %156, %162 : vector<4x256xf32>
    %cst_56 = arith.constant 0.797884583 : f32
    %164 = vector.broadcast %cst_56 : f32 to vector<4x256xf32>
    %165 = arith.mulf %164, %163 : vector<4x256xf32>
    %166 = math.tanh %165 : vector<4x256xf32>
    %cst_57 = arith.constant 1.000000e+00 : f32
    %167 = vector.broadcast %cst_57 : f32 to vector<4x256xf32>
    %168 = arith.addf %167, %166 : vector<4x256xf32>
    %169 = arith.mulf %158, %168 : vector<4x256xf32>
    %170 = arith.truncf %169 : vector<4x256xf32> to vector<4x256xbf16>
    %c0_58 = arith.constant 0 : index
    %c0_59 = arith.constant 0 : index
    %171 = vector.load %arg12[%c0_58, %c0_59] : memref<256x256xf32, #tpu.memory_space<vmem>>, vector<256x256xf32>
    %172 = arith.truncf %171 : vector<256x256xf32> to vector<256x256xbf16>
    %cst_60 = arith.constant dense<0.000000e+00> : vector<4x256xf32>
    %173 = tpu.matmul %170, %172, %cst_60 {dimension_numbers = #tpu.dot_dimension_numbers<[1], [0], [0], [1], [0, 0, 1, 1], [], []>} : vector<4x256xbf16>, vector<256x256xbf16>, vector<4x256xf32> -> vector<4x256xf32>
    %c0_61 = arith.constant 0 : index
    %c0_62 = arith.constant 0 : index
    %174 = vector.load %arg13[%c0_61, %c0_62] : memref<1x256xf32, #tpu.memory_space<vmem>>, vector<1x256xf32>
    %175 = vector.broadcast %174 : vector<1x256xf32> to vector<4x256xf32>
    %176 = arith.addf %173, %175 : vector<4x256xf32>
    %177 = arith.addf %125, %176 : vector<4x256xf32>
    %c0_63 = arith.constant 0 : index
    %c0_64 = arith.constant 0 : index
    %c0_65 = arith.constant 0 : index
    %178 = vector.load %arg14[%c0_63, %c0_64, %c0_65] : memref<1x4x256xf32, #tpu.memory_space<vmem>>, vector<1x4x256xf32>
    %179 = vector.shape_cast %178 : vector<1x4x256xf32> to vector<4x256xf32>
    %180 = vector.shape_cast %177 : vector<4x256xf32> to vector<1x4x256xf32>
    tpu.vector_store %arg14[%c0_63, %c0_64, %c0_65], %180 {strides = array<i32>} : memref<1x4x256xf32, #tpu.memory_space<vmem>>, vector<1x4x256xf32>,
    return
  }
  func.func @transform_0(%arg0: i32) -> (i32, i32, i32) {
    %c0_i32 = arith.constant 0 : i32
    %c0_i32_0 = arith.constant 0 : i32
    %c0_i32_1 = arith.constant 0 : i32
    return %arg0, %c0_i32, %c0_i32_0 : i32, i32, i32
  }
  func.func @transform_1(%arg0: i32) -> (i32, i32) {
    %c0_i32 = arith.constant 0 : i32
    %c0_i32_0 = arith.constant 0 : i32
    %c0_i32_1 = arith.constant 0 : i32
    return %c0_i32, %c0_i32_0 : i32, i32
  }
  func.func @transform_2(%arg0: i32) -> (i32, i32) {
    %c0_i32 = arith.constant 0 : i32
    %c0_i32_0 = arith.constant 0 : i32
    %c0_i32_1 = arith.constant 0 : i32
    return %c0_i32, %c0_i32_0 : i32, i32
  }
  func.func @transform_3(%arg0: i32) -> (i32, i32) {
    %c0_i32 = arith.constant 0 : i32
    %c0_i32_0 = arith.constant 0 : i32
    %c0_i32_1 = arith.constant 0 : i32
    return %c0_i32, %c0_i32_0 : i32, i32
  }
  func.func @transform_4(%arg0: i32) -> (i32, i32) {
    %c0_i32 = arith.constant 0 : i32
    %c0_i32_0 = arith.constant 0 : i32
    %c0_i32_1 = arith.constant 0 : i32
    return %c0_i32, %c0_i32_0 : i32, i32
  }
  func.func @transform_5(%arg0: i32) -> (i32, i32) {
    %c0_i32 = arith.constant 0 : i32
    %c0_i32_0 = arith.constant 0 : i32
    %c0_i32_1 = arith.constant 0 : i32
    return %c0_i32, %c0_i32_0 : i32, i32
  }
  func.func @transform_6(%arg0: i32) -> (i32, i32) {
    %c0_i32 = arith.constant 0 : i32
    %c0_i32_0 = arith.constant 0 : i32
    %c0_i32_1 = arith.constant 0 : i32
    return %c0_i32, %c0_i32_0 : i32, i32
  }
  func.func @transform_7(%arg0: i32) -> (i32, i32) {
    %c0_i32 = arith.constant 0 : i32
    %c0_i32_0 = arith.constant 0 : i32
    %c0_i32_1 = arith.constant 0 : i32
    return %c0_i32, %c0_i32_0 : i32, i32
  }
  func.func @transform_8(%arg0: i32) -> (i32, i32) {
    %c0_i32 = arith.constant 0 : i32
    %c0_i32_0 = arith.constant 0 : i32
    %c0_i32_1 = arith.constant 0 : i32
    return %c0_i32, %c0_i32_0 : i32, i32
  }
  func.func @transform_9(%arg0: i32) -> (i32, i32) {
    %c0_i32 = arith.constant 0 : i32
    %c0_i32_0 = arith.constant 0 : i32
    %c0_i32_1 = arith.constant 0 : i32
    return %c0_i32, %c0_i32_0 : i32, i32
  }
  func.func @transform_10(%arg0: i32) -> (i32, i32) {
    %c0_i32 = arith.constant 0 : i32
    %c0_i32_0 = arith.constant 0 : i32
    %c0_i32_1 = arith.constant 0 : i32
    return %c0_i32, %c0_i32_0 : i32, i32
  }
  func.func @transform_11(%arg0: i32) -> (i32, i32) {
    %c0_i32 = arith.constant 0 : i32
    %c0_i32_0 = arith.constant 0 : i32
    %c0_i32_1 = arith.constant 0 : i32
    return %c0_i32, %c0_i32_0 : i32, i32
  }
  func.func @transform_12(%arg0: i32) -> (i32, i32) {
    %c0_i32 = arith.constant 0 : i32
    %c0_i32_0 = arith.constant 0 : i32
    %c0_i32_1 = arith.constant 0 : i32
    return %c0_i32, %c0_i32_0 : i32, i32
  }
  func.func @transform_13(%arg0: i32) -> (i32, i32, i32) {
    %c0_i32 = arith.constant 0 : i32
    %c0_i32_0 = arith.constant 0 : i32
    %c0_i32_1 = arith.constant 0 : i32
    return %arg0, %c0_i32, %c0_i32_0 : i32, i32, i32
  }
}

module attributes {stable_mosaic.version = 11 : i64} {
  func.func @_embed_kernel(%arg0: i32, %arg1: memref<1x4x256xf32, #tpu.memory_space<vmem>>, %arg2: memref<256x256xf32, #tpu.memory_space<vmem>>, %arg3: memref<1x256xf32, #tpu.memory_space<vmem>>, %arg4: memref<1x4x256xf32, #tpu.memory_space<vmem>>, %arg5: memref<1x4x256xf32, #tpu.memory_space<vmem>>) attributes {dimension_semantics = [#tpu.dimension_semantics<parallel>], iteration_bounds = array<i64: 2>, scalar_prefetch = 0 : i64, scratch_operands = 0 : i64, tpu.core_type = #tpu.core_type<tc>, window_params = [{transform_indices = @transform_0, window_bounds = array<i64: 1, 4, 256>}, {pipeline_mode = #tpu.pipeline_mode<synchronous>, transform_indices = @transform_1, window_bounds = array<i64: 256, 256>}, {pipeline_mode = #tpu.pipeline_mode<synchronous>, transform_indices = @transform_2, window_bounds = array<i64: 1, 256>}, {pipeline_mode = #tpu.pipeline_mode<synchronous>, transform_indices = @transform_3, window_bounds = array<i64: 1, 4, 256>}, {transform_indices = @transform_4, window_bounds = array<i64: 1, 4, 256>}]} {
    %c0 = arith.constant 0 : index
    %c0_0 = arith.constant 0 : index
    %c0_1 = arith.constant 0 : index
    %0 = vector.load %arg1[%c0, %c0_0, %c0_1] : memref<1x4x256xf32, #tpu.memory_space<vmem>>, vector<1x4x256xf32>
    %1 = vector.shape_cast %0 : vector<1x4x256xf32> to vector<4x256xf32>
    %2 = arith.truncf %1 : vector<4x256xf32> to vector<4x256xbf16>
    %c0_2 = arith.constant 0 : index
    %c0_3 = arith.constant 0 : index
    %3 = vector.load %arg2[%c0_2, %c0_3] : memref<256x256xf32, #tpu.memory_space<vmem>>, vector<256x256xf32>
    %4 = arith.truncf %3 : vector<256x256xf32> to vector<256x256xbf16>
    %cst = arith.constant dense<0.000000e+00> : vector<4x256xf32>
    %5 = tpu.matmul %2, %4, %cst {dimension_numbers = #tpu.dot_dimension_numbers<[1], [0], [0], [1], [0, 0, 1, 1], [], []>} : vector<4x256xbf16>, vector<256x256xbf16>, vector<4x256xf32> -> vector<4x256xf32>
    %c0_4 = arith.constant 0 : index
    %c0_5 = arith.constant 0 : index
    %6 = vector.load %arg3[%c0_4, %c0_5] : memref<1x256xf32, #tpu.memory_space<vmem>>, vector<1x256xf32>
    %7 = vector.broadcast %6 : vector<1x256xf32> to vector<4x256xf32>
    %8 = arith.addf %5, %7 : vector<4x256xf32>
    %c0_6 = arith.constant 0 : index
    %c0_7 = arith.constant 0 : index
    %c0_8 = arith.constant 0 : index
    %9 = vector.load %arg4[%c0_6, %c0_7, %c0_8] : memref<1x4x256xf32, #tpu.memory_space<vmem>>, vector<1x4x256xf32>
    %10 = vector.shape_cast %9 : vector<1x4x256xf32> to vector<4x256xf32>
    %11 = arith.addf %8, %10 : vector<4x256xf32>
    %c0_9 = arith.constant 0 : index
    %c0_10 = arith.constant 0 : index
    %c0_11 = arith.constant 0 : index
    %12 = vector.load %arg5[%c0_9, %c0_10, %c0_11] : memref<1x4x256xf32, #tpu.memory_space<vmem>>, vector<1x4x256xf32>
    %13 = vector.shape_cast %12 : vector<1x4x256xf32> to vector<4x256xf32>
    %14 = vector.shape_cast %11 : vector<4x256xf32> to vector<1x4x256xf32>
    tpu.vector_store %arg5[%c0_9, %c0_10, %c0_11], %14 {strides = array<i32>} : memref<1x4x256xf32, #tpu.memory_space<vmem>>, vector<1x4x256xf32>,
    return
  }
  func.func @transform_0(%arg0: i32) -> (i32, i32, i32) {
    %c0_i32 = arith.constant 0 : i32
    %c0_i32_0 = arith.constant 0 : i32
    %c0_i32_1 = arith.constant 0 : i32
    return %arg0, %c0_i32, %c0_i32_0 : i32, i32, i32
  }
  func.func @transform_1(%arg0: i32) -> (i32, i32) {
    %c0_i32 = arith.constant 0 : i32
    %c0_i32_0 = arith.constant 0 : i32
    %c0_i32_1 = arith.constant 0 : i32
    return %c0_i32, %c0_i32_0 : i32, i32
  }
  func.func @transform_2(%arg0: i32) -> (i32, i32) {
    %c0_i32 = arith.constant 0 : i32
    %c0_i32_0 = arith.constant 0 : i32
    %c0_i32_1 = arith.constant 0 : i32
    return %c0_i32, %c0_i32_0 : i32, i32
  }
  func.func @transform_3(%arg0: i32) -> (i32, i32, i32) {
    %c0_i32 = arith.constant 0 : i32
    %c0_i32_0 = arith.constant 0 : i32
    %c0_i32_1 = arith.constant 0 : i32
    %c0_i32_2 = arith.constant 0 : i32
    return %c0_i32, %c0_i32_0, %c0_i32_1 : i32, i32, i32
  }
  func.func @transform_4(%arg0: i32) -> (i32, i32, i32) {
    %c0_i32 = arith.constant 0 : i32
    %c0_i32_0 = arith.constant 0 : i32
    %c0_i32_1 = arith.constant 0 : i32
    return %arg0, %c0_i32, %c0_i32_0 : i32, i32, i32
  }
}

module attributes {stable_mosaic.version = 11 : i64} {
  func.func @_decode_tail_kernel(%arg0: i32, %arg1: memref<1x4x256xf32, #tpu.memory_space<vmem>>, %arg2: memref<1x256xf32, #tpu.memory_space<vmem>>, %arg3: memref<1x256xf32, #tpu.memory_space<vmem>>, %arg4: memref<256x1024xf32, #tpu.memory_space<vmem>>, %arg5: memref<1x1024xf32, #tpu.memory_space<vmem>>, %arg6: memref<1x4x1024xf32, #tpu.memory_space<vmem>>) attributes {dimension_semantics = [#tpu.dimension_semantics<parallel>], iteration_bounds = array<i64: 2>, scalar_prefetch = 0 : i64, scratch_operands = 0 : i64, tpu.core_type = #tpu.core_type<tc>, window_params = [{transform_indices = @transform_0, window_bounds = array<i64: 1, 4, 256>}, {pipeline_mode = #tpu.pipeline_mode<synchronous>, transform_indices = @transform_1, window_bounds = array<i64: 1, 256>}, {pipeline_mode = #tpu.pipeline_mode<synchronous>, transform_indices = @transform_2, window_bounds = array<i64: 1, 256>}, {pipeline_mode = #tpu.pipeline_mode<synchronous>, transform_indices = @transform_3, window_bounds = array<i64: 256, 1024>}, {pipeline_mode = #tpu.pipeline_mode<synchronous>, transform_indices = @transform_4, window_bounds = array<i64: 1, 1024>}, {transform_indices = @transform_5, window_bounds = array<i64: 1, 4, 1024>}]} {
    %c0 = arith.constant 0 : index
    %c0_0 = arith.constant 0 : index
    %c0_1 = arith.constant 0 : index
    %0 = vector.load %arg1[%c0, %c0_0, %c0_1] : memref<1x4x256xf32, #tpu.memory_space<vmem>>, vector<1x4x256xf32>
    %1 = vector.shape_cast %0 : vector<1x4x256xf32> to vector<4x256xf32>
    %c0_2 = arith.constant 0 : index
    %c0_3 = arith.constant 0 : index
    %2 = vector.load %arg2[%c0_2, %c0_3] : memref<1x256xf32, #tpu.memory_space<vmem>>, vector<1x256xf32>
    %c0_4 = arith.constant 0 : index
    %c0_5 = arith.constant 0 : index
    %3 = vector.load %arg3[%c0_4, %c0_5] : memref<1x256xf32, #tpu.memory_space<vmem>>, vector<1x256xf32>
    %cst = arith.constant dense<0.000000e+00> : vector<4xf32>
    %4 = vector.multi_reduction <add>, %1, %cst [1] : vector<4x256xf32> to vector<4xf32>
    %5 = vector.shape_cast %4 : vector<4xf32> to vector<4x1xf32>
    %cst_6 = arith.constant 2.560000e+02 : f32
    %6 = vector.broadcast %cst_6 : f32 to vector<4x1xf32>
    %7 = arith.divf %5, %6 : vector<4x1xf32>
    %8 = vector.broadcast %7 : vector<4x1xf32> to vector<4x256xf32>
    %9 = arith.subf %1, %8 : vector<4x256xf32>
    %10 = arith.mulf %9, %9 : vector<4x256xf32>
    %cst_7 = arith.constant dense<0.000000e+00> : vector<4xf32>
    %11 = vector.multi_reduction <add>, %10, %cst_7 [1] : vector<4x256xf32> to vector<4xf32>
    %12 = vector.shape_cast %11 : vector<4xf32> to vector<4x1xf32>
    %cst_8 = arith.constant 2.560000e+02 : f32
    %13 = vector.broadcast %cst_8 : f32 to vector<4x1xf32>
    %14 = arith.divf %12, %13 : vector<4x1xf32>
    %15 = vector.broadcast %7 : vector<4x1xf32> to vector<4x256xf32>
    %16 = arith.subf %1, %15 : vector<4x256xf32>
    %cst_9 = arith.constant 9.99999974E-6 : f32
    %17 = vector.broadcast %cst_9 : f32 to vector<4x1xf32>
    %18 = arith.addf %14, %17 : vector<4x1xf32>
    %19 = math.rsqrt %18 : vector<4x1xf32>
    %20 = vector.broadcast %19 : vector<4x1xf32> to vector<4x256xf32>
    %21 = arith.mulf %16, %20 : vector<4x256xf32>
    %22 = vector.broadcast %2 : vector<1x256xf32> to vector<4x256xf32>
    %23 = arith.mulf %21, %22 : vector<4x256xf32>
    %24 = vector.broadcast %3 : vector<1x256xf32> to vector<4x256xf32>
    %25 = arith.addf %23, %24 : vector<4x256xf32>
    %26 = arith.truncf %25 : vector<4x256xf32> to vector<4x256xbf16>
    %c0_10 = arith.constant 0 : index
    %c0_11 = arith.constant 0 : index
    %27 = vector.load %arg4[%c0_10, %c0_11] : memref<256x1024xf32, #tpu.memory_space<vmem>>, vector<256x1024xf32>
    %28 = arith.truncf %27 : vector<256x1024xf32> to vector<256x1024xbf16>
    %cst_12 = arith.constant dense<0.000000e+00> : vector<4x1024xf32>
    %29 = tpu.matmul %26, %28, %cst_12 {dimension_numbers = #tpu.dot_dimension_numbers<[1], [0], [0], [1], [0, 0, 1, 1], [], []>} : vector<4x256xbf16>, vector<256x1024xbf16>, vector<4x1024xf32> -> vector<4x1024xf32>
    %c0_13 = arith.constant 0 : index
    %c0_14 = arith.constant 0 : index
    %30 = vector.load %arg5[%c0_13, %c0_14] : memref<1x1024xf32, #tpu.memory_space<vmem>>, vector<1x1024xf32>
    %31 = vector.broadcast %30 : vector<1x1024xf32> to vector<4x1024xf32>
    %32 = arith.addf %29, %31 : vector<4x1024xf32>
    %c0_15 = arith.constant 0 : index
    %c0_16 = arith.constant 0 : index
    %c0_17 = arith.constant 0 : index
    %33 = vector.load %arg6[%c0_15, %c0_16, %c0_17] : memref<1x4x1024xf32, #tpu.memory_space<vmem>>, vector<1x4x1024xf32>
    %34 = vector.shape_cast %33 : vector<1x4x1024xf32> to vector<4x1024xf32>
    %35 = vector.shape_cast %32 : vector<4x1024xf32> to vector<1x4x1024xf32>
    tpu.vector_store %arg6[%c0_15, %c0_16, %c0_17], %35 {strides = array<i32>} : memref<1x4x1024xf32, #tpu.memory_space<vmem>>, vector<1x4x1024xf32>,
    return
  }
  func.func @transform_0(%arg0: i32) -> (i32, i32, i32) {
    %c0_i32 = arith.constant 0 : i32
    %c0_i32_0 = arith.constant 0 : i32
    %c0_i32_1 = arith.constant 0 : i32
    return %arg0, %c0_i32, %c0_i32_0 : i32, i32, i32
  }
  func.func @transform_1(%arg0: i32) -> (i32, i32) {
    %c0_i32 = arith.constant 0 : i32
    %c0_i32_0 = arith.constant 0 : i32
    %c0_i32_1 = arith.constant 0 : i32
    return %c0_i32, %c0_i32_0 : i32, i32
  }
  func.func @transform_2(%arg0: i32) -> (i32, i32) {
    %c0_i32 = arith.constant 0 : i32
    %c0_i32_0 = arith.constant 0 : i32
    %c0_i32_1 = arith.constant 0 : i32
    return %c0_i32, %c0_i32_0 : i32, i32
  }
  func.func @transform_3(%arg0: i32) -> (i32, i32) {
    %c0_i32 = arith.constant 0 : i32
    %c0_i32_0 = arith.constant 0 : i32
    %c0_i32_1 = arith.constant 0 : i32
    return %c0_i32, %c0_i32_0 : i32, i32
  }
  func.func @transform_4(%arg0: i32) -> (i32, i32) {
    %c0_i32 = arith.constant 0 : i32
    %c0_i32_0 = arith.constant 0 : i32
    %c0_i32_1 = arith.constant 0 : i32
    return %c0_i32, %c0_i32_0 : i32, i32
  }
  func.func @transform_5(%arg0: i32) -> (i32, i32, i32) {
    %c0_i32 = arith.constant 0 : i32
    %c0_i32_0 = arith.constant 0 : i32
    %c0_i32_1 = arith.constant 0 : i32
    return %arg0, %c0_i32, %c0_i32_0 : i32, i32, i32
  }
}

</mosaic_0001>

<bundles_post_ra>
// kernel: forward.12
= control target key start
LH: loop header
LB: loop body
LE: loop exit
PB: predicated region body
PF: predicated region fallthrough
CT: control target
= control target key end

     0   :  { %9 = vsyncpa [#allocation3], 0  ;;  %s984_s15 = smov 0   ;;  %s1082_s0 = inlined_call_operand.vmem [shape: f32[2,4,1024], index: 0, kind: input, shape index: {}]   ;;  %s1083_s1 = inlined_call_operand.hbm [shape: f32[1024,256], index: 1, kind: input, shape index: {}]   ;;  %s1084_s2 = inlined_call_operand.vmem [shape: f32[1,256], index: 2, kind: input, shape index: {}]   ;;  %s1085_s3 = inlined_call_operand.vmem [shape: f32[1,4,256], index: 3, kind: input, shape index: {}]   ;;  %s1086_s4 = inlined_call_operand.vmem [shape: f32[2,4,256], index: 4, kind: output, shape index: {}]  }
   0x1 LB: > { %s990_s16 = sadd.s32 4294967295, %s954_s15   ;;  %p877_p0 = scmp.ge.s32.totalorder %s954_s15, 1  ;;  %s954_s15 = sphi %s984_s15, %s15_s15  }
   0x2   : > { %p135_p1 = scmp.lt.s32.totalorder %s954_s15, 3  ;;  %s956_s17 = smov [#allocation2]  }
   0x3   : > { %s147_s18 = sshll.u32 %s956_s17, 4  ;;  %p1087_p3 = scmp.eq.s32.totalorder %s990_s16, 0  ;;  %s148_s18 = int_to_ptr.vmem [resolvable:$true] %s147_s18 }
   0x4   : > { %p994_p2 = pnand %p877_p0, %p135_p1  ;;  %s916_s23 = scalar_lea.hbm %s1083_s1, 32768 }
   0x5   : > { %p917_p6 = scmp.ne.s32.totalorder %s1083_s1, %s916_s23  ;;  %p923_p10 = scmp.lt.u32.totalorder %s916_s23, %s1083_s1 }
   0x6   : > { %s1089_s19 = scalar_select %p994_p2, 1, 0 }
   0x7   : > { %p894_p4 = pneg %p994_p2 }
   0x9   : > { %p1003_p5 = pnand %p1087_p3, %p894_p4 }
   0xb   : > { %p918_p7 = pneg %p1003_p5 }
   0xd   : > { %p919_p8 = pnand %p918_p7, %p917_p6 }
   0xf   : > { %p920_p9 = pneg %p919_p8 }
  0x11   : > { %p925_p11 = pnand %p923_p10, %p920_p9 }
  0x13   : > { %928 = shalt.err (!%p925_p11)
}
  0x14   : > { %s929_s28 = scalar_lea.vmem %s148_s18, 32768  ;;  %p937_p1 = scmp.lt.s32.totalorder %s148_s18, %s148_s18 }
  0x15   : > { %p930_p12 = scmp.ne.s32.totalorder %s148_s18, %s929_s28  ;;  %p938_p4 = scmp.lt.s32.totalorder %s929_s28, %s929_s28 }
  0x17   : > { %p932_p13 = pnand %p930_p12, %p918_p7  ;;  %p939_p3 = por %p938_p4, %p937_p1 }
  0x19   : > { %p933_p0 = pneg %p932_p13 }
  0x1b   : > { %p940_p2 = pnand %p939_p3, %p933_p0 }
  0x1d   : > { %943 = shalt.err (!%p940_p2)
}
  0x1e   : > { %s957_s29 = smov 256   ;;  %s958_s30 = smov 16  }
  0x1f   : > { %897 = dma.hbm_to_vmem [thread:$0]  (!%p1003_p5), %s1083_s1, 32768, %s148_s18, [#allocation3], %s957_s29, %s957_s29, %s958_s30  }
  0x20   : > { %p1091_p6 = scmp.ne.s32.totalorder %s1089_s19, 0 }
  0x21   : > { %p1092_p8 = scmp.eq.s32.totalorder (!%p1091_p6), %s990_s16, 0 }
  0x22   : > { %177 = sbr.rel (%p1091_p6) target bundleno = 396 (0x18c), region = 36 }
  0x29   : > { %949 = dma.done.wait (%p1092_p8), [#allocation3], 32768   ;;  %p1093_p7 = pmov %p1092_p8 }
  0x2a   : > { %v238_v0 = vld [vmem:[#allocation2 + $0x8] sm:$0xff]  ;;  %v240_v1 = vld [vmem:[#allocation2 + $0x18] sm:$0xff]  ;;  %v237_v5 = vld [vmem:[#allocation2] sm:$0xff]  ;;  %p203_p2 = scmp.lt.s32.totalorder %s990_s16, 1 }
  0x2b   : > { %951 = vsyncadd (%p1093_p7), [#allocation3], 4294934528  ;;  %v302_v2 = vld [vmem:[#allocation2 + $0x208] sm:$0xff]  ;;  %v494_v3 = vpack.c.bf16 %v240_v1, %v238_v0  ;;  %v304_v4 = vld [vmem:[#allocation2 + $0x218] sm:$0xff] }
  0x2c   : > { %v239_v6 = vld [vmem:[#allocation2 + $0x10] sm:$0xff]  ;;  %v526_v7 = vpack.c.bf16 %v304_v4, %v302_v2  ;;  %v301_v9 = vld [vmem:[#allocation2 + $0x200] sm:$0xff]  ;;  %v242_v11 = vld [vmem:[#allocation2 + $0x28] sm:$0xff]  ;;  %s1095_s16 = smov (!%p203_p2, %s990_s16), 1 }
  0x2d   : > { %v493_v8 = vpack.c.bf16 %v239_v6, %v237_v5  ;;  %v303_v10 = vld [vmem:[#allocation2 + $0x210] sm:$0xff]  ;;  %633 = vmatprep.subr.bf16.mxu0 %v494_v3  ;;  %v244_v13 = vld [vmem:[#allocation2 + $0x38] sm:$0xff]  ;;  %v306_v14 = vld [vmem:[#allocation2 + $0x228] sm:$0xff]  ;;  %s888_s7 = sshll.u32 %s1095_s16, 5  ;;  %s889_s17 = sshll.u32 %s1095_s16, 3 }
  0x2e   : > { %v525_v12 = vpack.c.bf16 %v303_v10, %v301_v9  ;;  %v308_v15 = vld [vmem:[#allocation2 + $0x238] sm:$0xff]  ;;  %674 = vmatprep.subr.bf16.mxu1 %v526_v7  ;;  %v496_v16 = vpack.c.bf16 %v244_v13, %v242_v11  ;;  %v241_v18 = vld [vmem:[#allocation2 + $0x20] sm:$0xff]  ;;  %v243_v19 = vld [vmem:[#allocation2 + $0x30] sm:$0xff]  ;;  %s1039_s10 = scalar_lea.vmem %s1082_s0, %s888_s7  ;;  %s212_s20 = scalar_lea.vmem %s1086_s4, %s889_s17 }
  0x2f   : > { %634 = vmatpush1.bf16.msra.mxu0 %v493_v8  ;;  %v528_v17 = vpack.c.bf16 %v308_v15, %v306_v14  ;;  %v305_v20 = vld [vmem:[#allocation2 + $0x220] sm:$0xff]  ;;  %v495_v21 = vpack.c.bf16 %v243_v19, %v241_v18  ;;  %v307_v22 = vld [vmem:[#allocation2 + $0x230] sm:$0xff]  ;;  %v246_v23 = vld [vmem:[#allocation2 + $0x48] sm:$0xff] }
  0x30   : > { %675 = vmatpush1.bf16.msra.mxu1 %v525_v12  ;;  %v248_v24 = vld [vmem:[#allocation2 + $0x58] sm:$0xff]  ;;  %635 = vmatprep.subr.bf16.mxu0 %v496_v16  ;;  %v527_v25 = vpack.c.bf16 %v307_v22, %v305_v20  ;;  %v310_v27 = vld [vmem:[#allocation2 + $0x248] sm:$0xff]  ;;  %v245_v29 = vld [vmem:[#allocation2 + $0x40] sm:$0xff] }
  0x31   : > { %676 = vmatprep.subr.bf16.mxu1 %v528_v17  ;;  %v498_v26 = vpack.c.bf16 %v248_v24, %v246_v23  ;;  %v312_v28 = vld [vmem:[#allocation2 + $0x258] sm:$0xff]  ;;  %v247_v31 = vld [vmem:[#allocation2 + $0x50] sm:$0xff]  ;;  %v309_v32 = vld [vmem:[#allocation2 + $0x240] sm:$0xff] }
  0x32   : > { %v530_v30 = vpack.c.bf16 %v312_v28, %v310_v27  ;;  %v311_v33 = vld [vmem:[#allocation2 + $0x250] sm:$0xff]  ;;  %v497_v34 = vpack.c.bf16 %v247_v31, %v245_v29  ;;  %v250_v35 = vld [vmem:[#allocation2 + $0x68] sm:$0xff]  ;;  %v252_v36 = vld [vmem:[#allocation2 + $0x78] sm:$0xff] }
  0x33   : > { %636 = vmatpush1.bf16.msra.mxu0 %v495_v21  ;;  %v314_v37 = vld [vmem:[#allocation2 + $0x268] sm:$0xff]  ;;  %v529_v38 = vpack.c.bf16 %v311_v33, %v309_v32  ;;  %v500_v39 = vpack.c.bf16 %v252_v36, %v250_v35  ;;  %v316_v40 = vld [vmem:[#allocation2 + $0x278] sm:$0xff]  ;;  %v249_v41 = vld [vmem:[#allocation2 + $0x60] sm:$0xff] }
  0x34   : > { %677 = vmatpush1.bf16.msra.mxu1 %v527_v25  ;;  %637 = vmatprep.subr.bf16.mxu0 %v498_v26  ;;  %v251_v42 = vld [vmem:[#allocation2 + $0x70] sm:$0xff]  ;;  %v532_v43 = vpack.c.bf16 %v316_v40, %v314_v37  ;;  %v313_v44 = vld [vmem:[#allocation2 + $0x260] sm:$0xff]  ;;  %v254_v46 = vld [vmem:[#allocation2 + $0x88] sm:$0xff] }
  0x35   : > { %678 = vmatprep.subr.bf16.mxu1 %v530_v30  ;;  %v315_v45 = vld [vmem:[#allocation2 + $0x270] sm:$0xff]  ;;  %v256_v47 = vld [vmem:[#allocation2 + $0x98] sm:$0xff]  ;;  %v318_v48 = vld [vmem:[#allocation2 + $0x288] sm:$0xff]  ;;  %v499_v50 = vpack.c.bf16 %v251_v42, %v249_v41 }
  0x36   : > { %v320_v49 = vld [vmem:[#allocation2 + $0x298] sm:$0xff]  ;;  %v531_v51 = vpack.c.bf16 %v315_v45, %v313_v44  ;;  %v502_v52 = vpack.c.bf16 %v256_v47, %v254_v46  ;;  %v253_v53 = vld [vmem:[#allocation2 + $0x80] sm:$0xff]  ;;  %v255_v54 = vld [vmem:[#allocation2 + $0x90] sm:$0xff] }
  0x37   : > { %638 = vmatpush1.bf16.msra.mxu0 %v497_v34  ;;  %v317_v55 = vld [vmem:[#allocation2 + $0x280] sm:$0xff]  ;;  %v534_v56 = vpack.c.bf16 %v320_v49, %v318_v48  ;;  %v319_v57 = vld [vmem:[#allocation2 + $0x290] sm:$0xff]  ;;  %v258_v58 = vld [vmem:[#allocation2 + $0xa8] sm:$0xff]  ;;  %v501_v62 = vpack.c.bf16 %v255_v54, %v253_v53 }
  0x38   : > { %679 = vmatpush1.bf16.msra.mxu1 %v529_v38  ;;  %639 = vmatprep.subr.bf16.mxu0 %v500_v39  ;;  %v260_v59 = vld [vmem:[#allocation2 + $0xb8] sm:$0xff]  ;;  %v322_v60 = vld [vmem:[#allocation2 + $0x2a8] sm:$0xff]  ;;  %v533_v63 = vpack.c.bf16 %v319_v57, %v317_v55  ;;  %v257_v1 = vld [vmem:[#allocation2 + $0xa0] sm:$0xff] }
  0x39   : > { %680 = vmatprep.subr.bf16.mxu1 %v532_v43  ;;  %v324_v61 = vld [vmem:[#allocation2 + $0x2b8] sm:$0xff]  ;;  %v504_v0 = vpack.c.bf16 %v260_v59, %v258_v58  ;;  %v259_v2 = vld [vmem:[#allocation2 + $0xb0] sm:$0xff]  ;;  %v321_v3 = vld [vmem:[#allocation2 + $0x2a0] sm:$0xff] }
  0x3a   : > { %v536_v4 = vpack.c.bf16 %v324_v61, %v322_v60  ;;  %v323_v5 = vld [vmem:[#allocation2 + $0x2b0] sm:$0xff]  ;;  %v262_v6 = vld [vmem:[#allocation2 + $0xc8] sm:$0xff]  ;;  %v264_v7 = vld [vmem:[#allocation2 + $0xd8] sm:$0xff]  ;;  %v503_v10 = vpack.c.bf16 %v259_v2, %v257_v1 }
  0x3b   : > { %640 = vmatpush1.bf16.msra.mxu0 %v499_v50  ;;  %v326_v8 = vld [vmem:[#allocation2 + $0x2c8] sm:$0xff]  ;;  %v328_v9 = vld [vmem:[#allocation2 + $0x2d8] sm:$0xff]  ;;  %v535_v11 = vpack.c.bf16 %v323_v5, %v321_v3  ;;  %v506_v12 = vpack.c.bf16 %v264_v7, %v262_v6  ;;  %v261_v13 = vld [vmem:[#allocation2 + $0xc0] sm:$0xff] }
  0x3c   : > { %681 = vmatpush1.bf16.msra.mxu1 %v531_v51  ;;  %641 = vmatprep.subr.bf16.mxu0 %v502_v52  ;;  %v263_v14 = vld [vmem:[#allocation2 + $0xd0] sm:$0xff]  ;;  %v325_v15 = vld [vmem:[#allocation2 + $0x2c0] sm:$0xff]  ;;  %v538_v16 = vpack.c.bf16 %v328_v9, %v326_v8  ;;  %v266_v18 = vld [vmem:[#allocation2 + $0xe8] sm:$0xff] }
  0x3d   : > { %682 = vmatprep.subr.bf16.mxu1 %v534_v56  ;;  %v327_v17 = vld [vmem:[#allocation2 + $0x2d0] sm:$0xff]  ;;  %v268_v19 = vld [vmem:[#allocation2 + $0xf8] sm:$0xff]  ;;  %v330_v20 = vld [vmem:[#allocation2 + $0x2e8] sm:$0xff]  ;;  %v505_v22 = vpack.c.bf16 %v263_v14, %v261_v13 }
  0x3e   : > { %v332_v21 = vld [vmem:[#allocation2 + $0x2f8] sm:$0xff]  ;;  %v537_v23 = vpack.c.bf16 %v327_v17, %v325_v15  ;;  %v508_v24 = vpack.c.bf16 %v268_v19, %v266_v18  ;;  %v265_v25 = vld [vmem:[#allocation2 + $0xe0] sm:$0xff]  ;;  %v267_v26 = vld [vmem:[#allocation2 + $0xf0] sm:$0xff] }
  0x3f   : > { %642 = vmatpush1.bf16.msra.mxu0 %v501_v62  ;;  %v329_v27 = vld [vmem:[#allocation2 + $0x2e0] sm:$0xff]  ;;  %v540_v28 = vpack.c.bf16 %v332_v21, %v330_v20  ;;  %v331_v29 = vld [vmem:[#allocation2 + $0x2f0] sm:$0xff]  ;;  %v270_v30 = vld [vmem:[#allocation2 + $0x108] sm:$0xff]  ;;  %v507_v34 = vpack.c.bf16 %v267_v26, %v265_v25 }
  0x40   : > { %683 = vmatpush1.bf16.msra.mxu1 %v533_v63  ;;  %643 = vmatprep.subr.bf16.mxu0 %v504_v0  ;;  %v272_v31 = vld [vmem:[#allocation2 + $0x118] sm:$0xff]  ;;  %v334_v32 = vld [vmem:[#allocation2 + $0x308] sm:$0xff]  ;;  %v539_v35 = vpack.c.bf16 %v331_v29, %v329_v27  ;;  %v269_v37 = vld [vmem:[#allocation2 + $0x100] sm:$0xff] }
  0x41   : > { %684 = vmatprep.subr.bf16.mxu1 %v536_v4  ;;  %v336_v33 = vld [vmem:[#allocation2 + $0x318] sm:$0xff]  ;;  %v510_v36 = vpack.c.bf16 %v272_v31, %v270_v30  ;;  %v271_v38 = vld [vmem:[#allocation2 + $0x110] sm:$0xff]  ;;  %v333_v39 = vld [vmem:[#allocation2 + $0x300] sm:$0xff] }
  0x42   : > { %v542_v40 = vpack.c.bf16 %v336_v33, %v334_v32  ;;  %v335_v41 = vld [vmem:[#allocation2 + $0x310] sm:$0xff]  ;;  %v274_v42 = vld [vmem:[#allocation2 + $0x128] sm:$0xff]  ;;  %v276_v43 = vld [vmem:[#allocation2 + $0x138] sm:$0xff]  ;;  %v509_v46 = vpack.c.bf16 %v271_v38, %v269_v37 }
  0x43   : > { %644 = vmatpush1.bf16.msra.mxu0 %v503_v10  ;;  %v338_v44 = vld [vmem:[#allocation2 + $0x328] sm:$0xff]  ;;  %v340_v45 = vld [vmem:[#allocation2 + $0x338] sm:$0xff]  ;;  %v541_v47 = vpack.c.bf16 %v335_v41, %v333_v39  ;;  %v512_v48 = vpack.c.bf16 %v276_v43, %v274_v42  ;;  %v273_v49 = vld [vmem:[#allocation2 + $0x120] sm:$0xff] }
  0x44   : > { %685 = vmatpush1.bf16.msra.mxu1 %v535_v11  ;;  %645 = vmatprep.subr.bf16.mxu0 %v506_v12  ;;  %v275_v50 = vld [vmem:[#allocation2 + $0x130] sm:$0xff]  ;;  %v337_v51 = vld [vmem:[#allocation2 + $0x320] sm:$0xff]  ;;  %v544_v52 = vpack.c.bf16 %v340_v45, %v338_v44  ;;  %v278_v54 = vld [vmem:[#allocation2 + $0x148] sm:$0xff] }
  0x45   : > { %686 = vmatprep.subr.bf16.mxu1 %v538_v16  ;;  %v339_v53 = vld [vmem:[#allocation2 + $0x330] sm:$0xff]  ;;  %v280_v55 = vld [vmem:[#allocation2 + $0x158] sm:$0xff]  ;;  %v342_v56 = vld [vmem:[#allocation2 + $0x348] sm:$0xff]  ;;  %v511_v58 = vpack.c.bf16 %v275_v50, %v273_v49 }
  0x46   : > { %v344_v57 = vld [vmem:[#allocation2 + $0x358] sm:$0xff]  ;;  %v543_v59 = vpack.c.bf16 %v339_v53, %v337_v51  ;;  %v514_v60 = vpack.c.bf16 %v280_v55, %v278_v54  ;;  %v277_v61 = vld [vmem:[#allocation2 + $0x140] sm:$0xff]  ;;  %v279_v62 = vld [vmem:[#allocation2 + $0x150] sm:$0xff] }
  0x47   : > { %646 = vmatpush1.bf16.msra.mxu0 %v505_v22  ;;  %v341_v63 = vld [vmem:[#allocation2 + $0x340] sm:$0xff]  ;;  %v546_v0 = vpack.c.bf16 %v344_v57, %v342_v56  ;;  %v343_v1 = vld [vmem:[#allocation2 + $0x350] sm:$0xff]  ;;  %v282_v2 = vld [vmem:[#allocation2 + $0x168] sm:$0xff]  ;;  %v513_v6 = vpack.c.bf16 %v279_v62, %v277_v61 }
  0x48   : > { %687 = vmatpush1.bf16.msra.mxu1 %v537_v23  ;;  %647 = vmatprep.subr.bf16.mxu0 %v508_v24  ;;  %v284_v3 = vld [vmem:[#allocation2 + $0x178] sm:$0xff]  ;;  %v346_v4 = vld [vmem:[#allocation2 + $0x368] sm:$0xff]  ;;  %v281_v7 = vld [vmem:[#allocation2 + $0x160] sm:$0xff]  ;;  %v545_v8 = vpack.c.bf16 %v343_v1, %v341_v63 }
  0x49   : > { %688 = vmatprep.subr.bf16.mxu1 %v540_v28  ;;  %v348_v5 = vld [vmem:[#allocation2 + $0x378] sm:$0xff]  ;;  %v516_v9 = vpack.c.bf16 %v284_v3, %v282_v2  ;;  %v283_v10 = vld [vmem:[#allocation2 + $0x170] sm:$0xff]  ;;  %v345_v11 = vld [vmem:[#allocation2 + $0x360] sm:$0xff] }
  0x4a   : > { %v347_v12 = vld [vmem:[#allocation2 + $0x370] sm:$0xff]  ;;  %v548_v13 = vpack.c.bf16 %v348_v5, %v346_v4  ;;  %v286_v14 = vld [vmem:[#allocation2 + $0x188] sm:$0xff]  ;;  %v288_v15 = vld [vmem:[#allocation2 + $0x198] sm:$0xff]  ;;  %v515_v21 = vpack.c.bf16 %v283_v10, %v281_v7 }
  0x4b   : > { %648 = vmatpush1.bf16.msra.mxu0 %v507_v34  ;;  %v1042_v16 = vld [vmem:[%s1039_s10] sm:$0xff]  ;;  %v350_v17 = vld [vmem:[#allocation2 + $0x388] sm:$0xff]  ;;  %v352_v18 = vld [vmem:[#allocation2 + $0x398] sm:$0xff]  ;;  %v547_v23 = vpack.c.bf16 %v347_v12, %v345_v11  ;;  %v518_v24 = vpack.c.bf16 %v288_v15, %v286_v14 }
  0x4c   : > { %689 = vmatpush1.bf16.msra.mxu1 %v539_v35  ;;  %649 = vmatprep.subr.bf16.mxu0 %v510_v36  ;;  %v221_v19 = vcombine.high %v1042_v16, %v1042_v16  ;;  %v1047_v20 = vld [vmem:[%s1039_s10 + $0x8] sm:$0xff]  ;;  %v285_v25 = vld [vmem:[#allocation2 + $0x180] sm:$0xff]  ;;  %v287_v26 = vld [vmem:[#allocation2 + $0x190] sm:$0xff]  ;;  %v550_v29 = vpack.c.bf16 %v352_v18, %v350_v17 }
  0x4d   : > { %690 = vmatprep.subr.bf16.mxu1 %v542_v40  ;;  %v222_v22 = vcombine.high %v1047_v20, %v1047_v20  ;;  %v349_v27 = vld [vmem:[#allocation2 + $0x380] sm:$0xff]  ;;  %v351_v30 = vld [vmem:[#allocation2 + $0x390] sm:$0xff]  ;;  %v290_v31 = vld [vmem:[#allocation2 + $0x1a8] sm:$0xff]  ;;  %v517_v36 = vpack.c.bf16 %v287_v26, %v285_v25 }
  0x4e   : > { %v230_v28 = vpack.c.bf16 %v221_v19, %v221_v19  ;;  %v292_v32 = vld [vmem:[#allocation2 + $0x1b8] sm:$0xff]  ;;  %v354_v34 = vld [vmem:[#allocation2 + $0x3a8] sm:$0xff]  ;;  %v549_v37 = vpack.c.bf16 %v351_v30, %v349_v27  ;;  %v289_v39 = vld [vmem:[#allocation2 + $0x1a0] sm:$0xff]  ;;  %v229_v19 = vpack.c.bf16 %v1042_v16, %v1042_v16 }
  0x4f   : > { %650 = vmatpush1.bf16.msra.mxu0 %v509_v46  ;;  %v232_v33 = vpack.c.bf16 %v222_v22, %v222_v22  ;;  %v356_v35 = vld [vmem:[#allocation2 + $0x3b8] sm:$0xff]  ;;  %v520_v38 = vpack.c.bf16 %v292_v32, %v290_v31  ;;  %v291_v40 = vld [vmem:[#allocation2 + $0x1b0] sm:$0xff]  ;;  %v353_v41 = vld [vmem:[#allocation2 + $0x3a0] sm:$0xff] }
  0x50   : > { %691 = vmatpush1.bf16.msra.mxu1 %v541_v47  ;;  %651 = vmatprep.subr.bf16.mxu0 %v512_v48  ;;  %v552_v42 = vpack.c.bf16 %v356_v35, %v354_v34  ;;  %v355_v43 = vld [vmem:[#allocation2 + $0x3b0] sm:$0xff]  ;;  %v294_v44 = vld [vmem:[#allocation2 + $0x1c8] sm:$0xff]  ;;  %v296_v45 = vld [vmem:[#allocation2 + $0x1d8] sm:$0xff]  ;;  %v519_v48 = vpack.c.bf16 %v291_v40, %v289_v39 }
  0x51   : > { %692 = vmatprep.subr.bf16.mxu1 %v544_v52  ;;  %665 = vmatprep.mubr.bf16.mxu0 %v230_v28  ;;  %v358_v46 = vld [vmem:[#allocation2 + $0x3c8] sm:$0xff]  ;;  %v360_v47 = vld [vmem:[#allocation2 + $0x3d8] sm:$0xff]  ;;  %v551_v49 = vpack.c.bf16 %v355_v43, %v353_v41  ;;  %v522_v50 = vpack.c.bf16 %v296_v45, %v294_v44  ;;  %v293_v51 = vld [vmem:[#allocation2 + $0x1c0] sm:$0xff] }
  0x52   : > { %706 = vmatprep.mubr.bf16.mxu1 %v232_v33  ;;  %v295_v52 = vld [vmem:[#allocation2 + $0x1d0] sm:$0xff]  ;;  %v357_v53 = vld [vmem:[#allocation2 + $0x3c0] sm:$0xff]  ;;  %v554_v54 = vpack.c.bf16 %v360_v47, %v358_v46  ;;  %v298_v56 = vld [vmem:[#allocation2 + $0x1e8] sm:$0xff] }
  0x53   : > { %652 = vmatpush1.bf16.msra.mxu0 %v511_v58  ;;  %v359_v55 = vld [vmem:[#allocation2 + $0x3d0] sm:$0xff]  ;;  %v300_v57 = vld [vmem:[#allocation2 + $0x1f8] sm:$0xff]  ;;  %v362_v58 = vld [vmem:[#allocation2 + $0x3e8] sm:$0xff] }
  0x54   : > { %693 = vmatpush1.bf16.msra.mxu1 %v543_v59  ;;  %653 = vmatprep.subr.bf16.mxu0 %v514_v60  ;;  %v364_v59 = vld [vmem:[#allocation2 + $0x3f8] sm:$0xff]  ;;  %v521_v60 = vpack.c.bf16 %v295_v52, %v293_v51  ;;  %v553_v61 = vpack.c.bf16 %v359_v55, %v357_v53  ;;  %v524_v62 = vpack.c.bf16 %v300_v57, %v298_v56  ;;  %v297_v63 = vld [vmem:[#allocation2 + $0x1e0] sm:$0xff]  ;;  %v363_v3 = vld [vmem:[#allocation2 + $0x3f0] sm:$0xff] }
  0x55   : > { %694 = vmatprep.subr.bf16.mxu1 %v546_v0  ;;  %v299_v0 = vld [vmem:[#allocation2 + $0x1f0] sm:$0xff]  ;;  %v361_v1 = vld [vmem:[#allocation2 + $0x3e0] sm:$0xff]  ;;  %v556_v2 = vpack.c.bf16 %v364_v59, %v362_v58  ;;  %v366_v4 = vld [vmem:[#allocation2 + $0x408] sm:$0xff] }
  0x56   : > { %v368_v5 = vld [vmem:[#allocation2 + $0x418] sm:$0xff]  ;;  %v365_v11 = vld [vmem:[#allocation2 + $0x400] sm:$0xff]  ;;  %v367_v12 = vld [vmem:[#allocation2 + $0x410] sm:$0xff] }
  0x57   : > { %654 = vmatpush1.bf16.msra.mxu0 %v513_v6  ;;  %v430_v6 = vld [vmem:[#allocation2 + $0x608] sm:$0xff]  ;;  %v432_v7 = vld [vmem:[#allocation2 + $0x618] sm:$0xff]  ;;  %v558_v10 = vpack.c.bf16 %v368_v5, %v366_v4  ;;  %v431_v15 = vld [vmem:[#allocation2 + $0x610] sm:$0xff] }
  0x58   : > { %695 = vmatpush1.bf16.msra.mxu1 %v545_v8  ;;  %655 = vmatprep.subr.bf16.mxu0 %v516_v9  ;;  %v523_v8 = vpack.c.bf16 %v299_v0, %v297_v63  ;;  %v555_v9 = vpack.c.bf16 %v363_v3, %v361_v1  ;;  %v590_v14 = vpack.c.bf16 %v432_v7, %v430_v6  ;;  %v370_v17 = vld [vmem:[#allocation2 + $0x428] sm:$0xff]  ;;  %v372_v18 = vld [vmem:[#allocation2 + $0x438] sm:$0xff]  ;;  %v369_v27 = vld [vmem:[#allocation2 + $0x420] sm:$0xff] }
  0x59   : > { %696 = vmatprep.subr.bf16.mxu1 %v548_v13  ;;  %v429_v13 = vld [vmem:[#allocation2 + $0x600] sm:$0xff]  ;;  %v436_v22 = vld [vmem:[#allocation2 + $0x638] sm:$0xff]  ;;  %v560_v26 = vpack.c.bf16 %v372_v18, %v370_v17  ;;  %v371_v28 = vld [vmem:[#allocation2 + $0x430] sm:$0xff] }
  0x5a   : > { %v589_v25 = vpack.c.bf16 %v431_v15, %v429_v13  ;;  %v435_v31 = vld [vmem:[#allocation2 + $0x630] sm:$0xff]  ;;  %v374_v32 = vld [vmem:[#allocation2 + $0x448] sm:$0xff]  ;;  %v376_v33 = vld [vmem:[#allocation2 + $0x458] sm:$0xff]  ;;  %v559_v35 = vpack.c.bf16 %v371_v28, %v369_v27 }
  0x5b   : > { %656 = vmatpush1.bf16.msra.mxu0 %v515_v21  ;;  %v434_v21 = vld [vmem:[#allocation2 + $0x628] sm:$0xff]  ;;  %v440_v34 = vld [vmem:[#allocation2 + $0x658] sm:$0xff]  ;;  %v437_v39 = vld [vmem:[#allocation2 + $0x640] sm:$0xff] }
  0x5c   : > { %697 = vmatpush1.bf16.msra.mxu1 %v547_v23  ;;  %657 = vmatprep.subr.bf16.mxu0 %v518_v24  ;;  %v231_v23 = vpack.c.bf16 %v1047_v20, %v1047_v20  ;;  %v557_v24 = vpack.c.bf16 %v367_v12, %v365_v11  ;;  %v592_v30 = vpack.c.bf16 %v436_v22, %v434_v21  ;;  %v438_v16 = vld [vmem:[#allocation2 + $0x648] sm:$0xff]  ;;  %v439_v41 = vld [vmem:[#allocation2 + $0x650] sm:$0xff]  ;;  %v380_v43 = vld [vmem:[#allocation2 + $0x478] sm:$0xff] }
  0x5d   : > { %698 = vmatprep.subr.bf16.mxu1 %v550_v29  ;;  %v433_v29 = vld [vmem:[#allocation2 + $0x620] sm:$0xff]  ;;  %v594_v40 = vpack.c.bf16 %v440_v34, %v438_v16  ;;  %v442_v44 = vld [vmem:[#allocation2 + $0x668] sm:$0xff]  ;;  %v444_v45 = vld [vmem:[#allocation2 + $0x678] sm:$0xff]  ;;  %v593_v47 = vpack.c.bf16 %v439_v41, %v437_v39 }
  0x5e   : > { %v591_v20 = vpack.c.bf16 %v435_v31, %v433_v29  ;;  %v441_v51 = vld [vmem:[#allocation2 + $0x660] sm:$0xff]  ;;  %v596_v52 = vpack.c.bf16 %v444_v45, %v442_v44  ;;  %v443_v53 = vld [vmem:[#allocation2 + $0x670] sm:$0xff]  ;;  %v384_v55 = vld [vmem:[#allocation2 + $0x498] sm:$0xff] }
  0x5f   : > { %658 = vmatpush1.bf16.msra.mxu0 %v517_v36  ;;  %v562_v36 = vpack.c.bf16 %v376_v33, %v374_v32  ;;  %v446_v56 = vld [vmem:[#allocation2 + $0x688] sm:$0xff]  ;;  %v448_v57 = vld [vmem:[#allocation2 + $0x698] sm:$0xff]  ;;  %v595_v59 = vpack.c.bf16 %v443_v53, %v441_v51  ;;  %v445_v63 = vld [vmem:[#allocation2 + $0x680] sm:$0xff] }
  0x60   : > { %699 = vmatpush1.bf16.msra.mxu1 %v549_v37  ;;  %659 = vmatprep.subr.bf16.mxu0 %v520_v38  ;;  %v373_v37 = vld [vmem:[#allocation2 + $0x440] sm:$0xff]  ;;  %v375_v38 = vld [vmem:[#allocation2 + $0x450] sm:$0xff]  ;;  %v598_v0 = vpack.c.bf16 %v448_v57, %v446_v56  ;;  %v388_v3 = vld [vmem:[#allocation2 + $0x4b8] sm:$0xff] }
  0x61   : > { %700 = vmatprep.subr.bf16.mxu1 %v552_v42  ;;  %v378_v42 = vld [vmem:[#allocation2 + $0x468] sm:$0xff]  ;;  %v561_v46 = vpack.c.bf16 %v375_v38, %v373_v37  ;;  %v447_v1 = vld [vmem:[#allocation2 + $0x690] sm:$0xff]  ;;  %v452_v5 = vld [vmem:[#allocation2 + $0x6b8] sm:$0xff] }
  0x62   : > { %v450_v4 = vld [vmem:[#allocation2 + $0x6a8] sm:$0xff]  ;;  %v597_v7 = vpack.c.bf16 %v447_v1, %v445_v63  ;;  %v449_v11 = vld [vmem:[#allocation2 + $0x6a0] sm:$0xff]  ;;  %v451_v13 = vld [vmem:[#allocation2 + $0x6b0] sm:$0xff] }
  0x63   : > { %660 = vmatpush1.bf16.msra.mxu0 %v519_v48  ;;  %v564_v48 = vpack.c.bf16 %v380_v43, %v378_v42  ;;  %v600_v12 = vpack.c.bf16 %v452_v5, %v450_v4  ;;  %v392_v15 = vld [vmem:[#allocation2 + $0x4d8] sm:$0xff]  ;;  %v454_v17 = vld [vmem:[#allocation2 + $0x6c8] sm:$0xff]  ;;  %v389_v21 = vld [vmem:[#allocation2 + $0x4c0] sm:$0xff] }
  0x64   : > { %701 = vmatpush1.bf16.msra.mxu1 %v551_v49  ;;  %661 = vmatprep.subr.bf16.mxu0 %v522_v50  ;;  %v377_v49 = vld [vmem:[#allocation2 + $0x460] sm:$0xff]  ;;  %v379_v50 = vld [vmem:[#allocation2 + $0x470] sm:$0xff]  ;;  %v456_v18 = vld [vmem:[#allocation2 + $0x6d8] sm:$0xff] }
  0x65   : > { %702 = vmatprep.subr.bf16.mxu1 %v554_v54  ;;  %v382_v54 = vld [vmem:[#allocation2 + $0x488] sm:$0xff]  ;;  %v563_v58 = vpack.c.bf16 %v379_v50, %v377_v49  ;;  %v391_v22 = vld [vmem:[#allocation2 + $0x4d0] sm:$0xff]  ;;  %v602_v28 = vpack.c.bf16 %v456_v18, %v454_v17  ;;  %v396_v29 = vld [vmem:[#allocation2 + $0x4f8] sm:$0xff] }
  0x66   : > { %v394_v27 = vld [vmem:[#allocation2 + $0x4e8] sm:$0xff]  ;;  %v1059_v31 = vld [vmem:[%s1039_s10 + $0x18] sm:$0xff]  ;;  %v393_v37 = vld [vmem:[#allocation2 + $0x4e0] sm:$0xff] }
  0x67   : > { %662 = vmatpush1.bf16.msra.mxu0 %v521_v60  ;;  %v566_v60 = vpack.c.bf16 %v384_v55, %v382_v54  ;;  %v458_v32 = vld [vmem:[#allocation2 + $0x6e8] sm:$0xff]  ;;  %v460_v33 = vld [vmem:[#allocation2 + $0x6f8] sm:$0xff]  ;;  %v224_v34 = vcombine.high %v1059_v31, %v1059_v31  ;;  %v395_v38 = vld [vmem:[#allocation2 + $0x4f0] sm:$0xff] }
  0x68   : > { %703 = vmatpush1.bf16.msra.mxu1 %v553_v61  ;;  %663 = vmatprep.subr.bf16.mxu0 %v524_v62  ;;  %v381_v61 = vld [vmem:[#allocation2 + $0x480] sm:$0xff]  ;;  %v383_v62 = vld [vmem:[#allocation2 + $0x490] sm:$0xff]  ;;  %v604_v42 = vpack.c.bf16 %v460_v33, %v458_v32  ;;  %v398_v44 = vld [vmem:[#allocation2 + $0x508] sm:$0xff] }
  0x69   : > { %704 = vmatprep.subr.bf16.mxu1 %v556_v2  ;;  %v386_v2 = vld [vmem:[#allocation2 + $0x4a8] sm:$0xff]  ;;  %v565_v6 = vpack.c.bf16 %v383_v62, %v381_v61  ;;  %v457_v39 = vld [vmem:[#allocation2 + $0x6e0] sm:$0xff]  ;;  %v236_v41 = vpack.c.bf16 %v224_v34, %v224_v34  ;;  %v459_v43 = vld [vmem:[#allocation2 + $0x6f0] sm:$0xff] }
  0x6a   : > { %v400_v45 = vld [vmem:[#allocation2 + $0x518] sm:$0xff]  ;;  %v603_v49 = vpack.c.bf16 %v459_v43, %v457_v39  ;;  %v397_v51 = vld [vmem:[#allocation2 + $0x500] sm:$0xff]  ;;  %v463_v55 = vld [vmem:[#allocation2 + $0x710] sm:$0xff] }
  0x6b   : > { %664 = vmatpush1.bf16.msra.mxu0 %v523_v8  ;;  %v568_v8 = vpack.c.bf16 %v388_v3, %v386_v2  ;;  %v574_v50 = vpack.c.bf16 %v400_v45, %v398_v44  ;;  %v461_v53 = vld [vmem:[#allocation2 + $0x700] sm:$0xff]  ;;  %v402_v56 = vld [vmem:[#allocation2 + $0x528] sm:$0xff]  ;;  %v404_v57 = vld [vmem:[#allocation2 + $0x538] sm:$0xff] }
  0x6c   : > { %705 = vmatpush1.bf16.msra.mxu1 %v555_v9  ;;  %715 = vmatprep.subr.bf16.mxu0 %v558_v10  ;;  %v385_v9 = vld [vmem:[#allocation2 + $0x4a0] sm:$0xff]  ;;  %v387_v10 = vld [vmem:[#allocation2 + $0x4b0] sm:$0xff]  ;;  %v605_v61 = vpack.c.bf16 %v463_v55, %v461_v53  ;;  %v576_v62 = vpack.c.bf16 %v404_v57, %v402_v56  ;;  %v406_v4 = vld [vmem:[#allocation2 + $0x548] sm:$0xff] }
  0x6d   : > { %756 = vmatprep.subr.bf16.mxu1 %v590_v14  ;;  %v390_v14 = vld [vmem:[#allocation2 + $0x4c8] sm:$0xff]  ;;  %v401_v63 = vld [vmem:[#allocation2 + $0x520] sm:$0xff]  ;;  %v467_v3 = vld [vmem:[#allocation2 + $0x730] sm:$0xff] }
  0x6e   : > { %666 = vmatmul.mubr.bf16.vlgmr.msra.gmra.mrb[0].mxu0 %v229_v19  ;;  %v567_v19 = vpack.c.bf16 %v387_v10, %v385_v9  ;;  %v465_v1 = vld [vmem:[#allocation2 + $0x720] sm:$0xff]  ;;  %v408_v5 = vld [vmem:[#allocation2 + $0x558] sm:$0xff]  ;;  %v410_v17 = vld [vmem:[#allocation2 + $0x568] sm:$0xff] }
  0x6f   : > { %707 = vmatmul.mubr.bf16.vlgmr.msra.gmra.mrb[0].mxu1 %v231_v23  ;;  %716 = vmatpush1.bf16.msra.mxu0 %v557_v24  ;;  %v599_v23 = vpack.c.bf16 %v451_v13, %v449_v11  ;;  %v570_v24 = vpack.c.bf16 %v392_v15, %v390_v14  ;;  %v607_v9 = vpack.c.bf16 %v467_v3, %v465_v1  ;;  %v405_v11 = vld [vmem:[#allocation2 + $0x540] sm:$0xff]  ;;  %v471_v15 = vld [vmem:[#allocation2 + $0x750] sm:$0xff]  ;;  %v412_v18 = vld [vmem:[#allocation2 + $0x578] sm:$0xff] }
  0x70   : > { %757 = vmatpush1.bf16.msra.mxu1 %v589_v25  ;;  %717 = vmatprep.subr.bf16.mxu0 %v560_v26  ;;  %v453_v25 = vld [vmem:[#allocation2 + $0x6c0] sm:$0xff]  ;;  %v455_v26 = vld [vmem:[#allocation2 + $0x6d0] sm:$0xff]  ;;  %v578_v10 = vpack.c.bf16 %v408_v5, %v406_v4  ;;  %v414_v32 = vld [vmem:[#allocation2 + $0x588] sm:$0xff] }
  0x71   : > { %758 = vmatprep.subr.bf16.mxu1 %v592_v30  ;;  %v1056_v30 = vld [vmem:[%s1039_s10 + $0x10] sm:$0xff]  ;;  %788 = vmatprep.mubr.bf16.mxu1 %v236_v41  ;;  %v469_v13 = vld [vmem:[#allocation2 + $0x740] sm:$0xff]  ;;  %v416_v33 = vld [vmem:[#allocation2 + $0x598] sm:$0xff] }
  0x72   : > { %v223_v16 = vcombine.high %v1056_v30, %v1056_v30  ;;  %v480_v34 = vld [vmem:[#allocation2 + $0x798] sm:$0xff]  ;;  %v477_v39 = vld [vmem:[#allocation2 + $0x780] sm:$0xff]  ;;  %v479_v41 = vld [vmem:[#allocation2 + $0x790] sm:$0xff] }
  0x73   : > { %718 = vmatpush1.bf16.msra.mxu0 %v559_v35  ;;  %v569_v35 = vpack.c.bf16 %v391_v22, %v389_v21  ;;  %v476_v21 = vld [vmem:[#allocation2 + $0x778] sm:$0xff]  ;;  %v482_v44 = vld [vmem:[#allocation2 + $0x7a8] sm:$0xff]  ;;  %v483_v53 = vld [vmem:[#allocation2 + $0x7b0] sm:$0xff] }
  0x74   : > { %759 = vmatpush1.bf16.msra.mxu1 %v591_v20  ;;  %719 = vmatprep.subr.bf16.mxu0 %v562_v36  ;;  %v601_v20 = vpack.c.bf16 %v455_v26, %v453_v25  ;;  %v572_v36 = vpack.c.bf16 %v396_v29, %v394_v27  ;;  %v409_v25 = vld [vmem:[#allocation2 + $0x560] sm:$0xff]  ;;  %v411_v26 = vld [vmem:[#allocation2 + $0x570] sm:$0xff]  ;;  %v420_v43 = vld [vmem:[#allocation2 + $0x5b8] sm:$0xff] }
  0x75   : > { %760 = vmatprep.subr.bf16.mxu1 %v594_v40  ;;  %v234_v40 = vpack.c.bf16 %v223_v16, %v223_v16  ;;  %v473_v27 = vld [vmem:[#allocation2 + $0x760] sm:$0xff]  ;;  %v475_v29 = vld [vmem:[#allocation2 + $0x770] sm:$0xff]  ;;  %v478_v16 = vld [vmem:[#allocation2 + $0x788] sm:$0xff] }
  0x76   : > { %v484_v45 = vld [vmem:[#allocation2 + $0x7b8] sm:$0xff]  ;;  %v486_v56 = vld [vmem:[#allocation2 + $0x7c8] sm:$0xff]  ;;  %v487_v1 = vld [vmem:[#allocation2 + $0x7d0] sm:$0xff] }
  0x77   : > { %720 = vmatpush1.bf16.msra.mxu0 %v561_v46  ;;  %v462_v46 = vld [vmem:[#allocation2 + $0x708] sm:$0xff]  ;;  %747 = vmatprep.mubr.bf16.mxu0 %v234_v40  ;;  %v614_v40 = vpack.c.bf16 %v480_v34, %v478_v16  ;;  %v424_v55 = vld [vmem:[#allocation2 + $0x5d8] sm:$0xff] }
  0x78   : > { %761 = vmatpush1.bf16.msra.mxu1 %v593_v47  ;;  %721 = vmatprep.subr.bf16.mxu0 %v564_v48  ;;  %v464_v47 = vld [vmem:[#allocation2 + $0x718] sm:$0xff]  ;;  %v571_v48 = vpack.c.bf16 %v395_v38, %v393_v37  ;;  %v413_v37 = vld [vmem:[#allocation2 + $0x580] sm:$0xff]  ;;  %v415_v38 = vld [vmem:[#allocation2 + $0x590] sm:$0xff] }
  0x79   : > { %762 = vmatprep.subr.bf16.mxu1 %v596_v52  ;;  %v399_v52 = vld [vmem:[#allocation2 + $0x510] sm:$0xff]  ;;  %v606_v54 = vpack.c.bf16 %v464_v47, %v462_v46  ;;  %v581_v46 = vpack.c.bf16 %v415_v38, %v413_v37  ;;  %v613_v47 = vpack.c.bf16 %v479_v41, %v477_v39  ;;  %v488_v57 = vld [vmem:[#allocation2 + $0x7d8] sm:$0xff]  ;;  %v490_v4 = vld [vmem:[#allocation2 + $0x7e8] sm:$0xff] }
  0x7a   : > { %v428_v3 = vld [vmem:[#allocation2 + $0x5f8] sm:$0xff]  ;;  %v797_v37 = vld [vmem:[%s1085_s3] sm:$0xff] }
  0x7b   : > { %722 = vmatpush1.bf16.msra.mxu0 %v563_v58  ;;  %v466_v58 = vld [vmem:[#allocation2 + $0x728] sm:$0xff]  ;;  %v492_v5 = vld [vmem:[#allocation2 + $0x7f8] sm:$0xff] }
  0x7c   : > { %763 = vmatpush1.bf16.msra.mxu1 %v595_v59  ;;  %723 = vmatprep.subr.bf16.mxu0 %v566_v60  ;;  %v468_v59 = vld [vmem:[#allocation2 + $0x738] sm:$0xff]  ;;  %v573_v60 = vpack.c.bf16 %v399_v52, %v397_v51  ;;  %v481_v51 = vld [vmem:[#allocation2 + $0x7a0] sm:$0xff]  ;;  %v616_v52 = vpack.c.bf16 %v484_v45, %v482_v44  ;;  %v799_v44 = vcombine.high %v797_v37, %v797_v37 }
  0x7d   : > { %764 = vmatprep.subr.bf16.mxu1 %v598_v0  ;;  %v403_v0 = vld [vmem:[#allocation2 + $0x530] sm:$0xff]  ;;  %v608_v2 = vpack.c.bf16 %v468_v59, %v466_v58  ;;  %v615_v59 = vpack.c.bf16 %v483_v53, %v481_v51 }
  0x7f   : > { %724 = vmatpush1.bf16.msra.mxu0 %v565_v6  ;;  %v470_v6 = vld [vmem:[#allocation2 + $0x748] sm:$0xff] }
  0x80   : > { %765 = vmatpush1.bf16.msra.mxu1 %v597_v7  ;;  %725 = vmatprep.subr.bf16.mxu0 %v568_v8  ;;  %v472_v7 = vld [vmem:[#allocation2 + $0x758] sm:$0xff]  ;;  %v575_v8 = vpack.c.bf16 %v403_v0, %v401_v63  ;;  %v485_v63 = vld [vmem:[#allocation2 + $0x7c0] sm:$0xff]  ;;  %v618_v0 = vpack.c.bf16 %v488_v57, %v486_v56 }
  0x81   : > { %766 = vmatprep.subr.bf16.mxu1 %v600_v12  ;;  %v407_v12 = vld [vmem:[#allocation2 + $0x550] sm:$0xff]  ;;  %v610_v14 = vpack.c.bf16 %v472_v7, %v470_v6  ;;  %v617_v7 = vpack.c.bf16 %v487_v1, %v485_v63 }
  0x82   : > { %v577_v22 = vpack.c.bf16 %v407_v12, %v405_v11  ;;  %v620_v11 = vpack.c.bf16 %v492_v5, %v490_v4  ;;  %v489_v12 = vld [vmem:[#allocation2 + $0x7e0] sm:$0xff] }
  0x83   : > { %726 = vmatpush1.bf16.msra.mxu0 %v567_v19  ;;  %v474_v19 = vld [vmem:[#allocation2 + $0x768] sm:$0xff] }
  0x84   : > { %767 = vmatpush1.bf16.msra.mxu1 %v599_v23  ;;  %727 = vmatprep.subr.bf16.mxu0 %v570_v24  ;;  %v609_v23 = vpack.c.bf16 %v471_v15, %v469_v13  ;;  %v580_v24 = vpack.c.bf16 %v412_v18, %v410_v17  ;;  %v491_v13 = vld [vmem:[#allocation2 + $0x7f0] sm:$0xff]  ;;  %v233_v17 = vpack.c.bf16 %v1056_v30, %v1056_v30 }
  0x85   : > { %768 = vmatprep.subr.bf16.mxu1 %v602_v28  ;;  %v612_v28 = vpack.c.bf16 %v476_v21, %v474_v19  ;;  %v619_v15 = vpack.c.bf16 %v491_v13, %v489_v12  ;;  %v235_v18 = vpack.c.bf16 %v1059_v31, %v1059_v31  ;;  %v623_v19 = vlaneseq }
  0x87   : > { %728 = vmatpush1.bf16.msra.mxu0 %v569_v35  ;;  %v579_v35 = vpack.c.bf16 %v411_v26, %v409_v25  ;;  %v624_v21 = vshrl.u32 %v623_v19, 7 }
  0x88   : > { %769 = vmatpush1.bf16.msra.mxu1 %v601_v20  ;;  %729 = vmatprep.subr.bf16.mxu0 %v572_v36  ;;  %v611_v20 = vpack.c.bf16 %v475_v29, %v473_v27  ;;  %v582_v36 = vpack.c.bf16 %v416_v33, %v414_v32 }
  0x89   : > { %770 = vmatprep.subr.bf16.mxu1 %v604_v42  ;;  %v418_v42 = vld [vmem:[#allocation2 + $0x5a8] sm:$0xff] }
  0x8b   : > { %730 = vmatpush1.bf16.msra.mxu0 %v571_v48  ;;  %v584_v48 = vpack.c.bf16 %v420_v43, %v418_v42 }
  0x8c   : > { %771 = vmatpush1.bf16.msra.mxu1 %v603_v49  ;;  %731 = vmatprep.subr.bf16.mxu0 %v574_v50  ;;  %v417_v49 = vld [vmem:[#allocation2 + $0x5a0] sm:$0xff]  ;;  %v419_v50 = vld [vmem:[#allocation2 + $0x5b0] sm:$0xff] }
  0x8d   : > { %772 = vmatprep.subr.bf16.mxu1 %v606_v54  ;;  %v422_v54 = vld [vmem:[#allocation2 + $0x5c8] sm:$0xff]  ;;  %v583_v58 = vpack.c.bf16 %v419_v50, %v417_v49 }
  0x8f   : > { %732 = vmatpush1.bf16.msra.mxu0 %v573_v60  ;;  %v586_v60 = vpack.c.bf16 %v424_v55, %v422_v54 }
  0x90   : > { %773 = vmatpush1.bf16.msra.mxu1 %v605_v61  ;;  %733 = vmatprep.subr.bf16.mxu0 %v576_v62  ;;  %v421_v61 = vld [vmem:[#allocation2 + $0x5c0] sm:$0xff]  ;;  %v423_v62 = vld [vmem:[#allocation2 + $0x5d0] sm:$0xff] }
  0x91   : > { %774 = vmatprep.subr.bf16.mxu1 %v608_v2  ;;  %v426_v2 = vld [vmem:[#allocation2 + $0x5e8] sm:$0xff]  ;;  %v585_v6 = vpack.c.bf16 %v423_v62, %v421_v61 }
  0x93   : > { %734 = vmatpush1.bf16.msra.mxu0 %v575_v8  ;;  %v588_v8 = vpack.c.bf16 %v428_v3, %v426_v2 }
  0x94   : > { %775 = vmatpush1.bf16.msra.mxu1 %v607_v9  ;;  %735 = vmatprep.subr.bf16.mxu0 %v578_v10  ;;  %v425_v9 = vld [vmem:[#allocation2 + $0x5e0] sm:$0xff]  ;;  %v427_v10 = vld [vmem:[#allocation2 + $0x5f0] sm:$0xff] }
  0x95   : > { %776 = vmatprep.subr.bf16.mxu1 %v610_v14  ;;  %v587_v14 = vpack.c.bf16 %v427_v10, %v425_v9 }
  0x97   : > { %736 = vmatpush1.bf16.msra.mxu0 %v577_v22  ;;  %v625_v22 = vsub.s32 0, %v624_v21 }
  0x98   : > { %777 = vmatpush1.bf16.msra.mxu1 %v609_v23  ;;  %737 = vmatprep.subr.bf16.mxu0 %v580_v24  ;;  %v621_v23 = vld [vmem:[%s1084_s2] sm:$0x3]  ;;  %v629_v24 = vsub.s32 1, %v624_v21 }
  0x99   : > { %778 = vmatprep.subr.bf16.mxu1 %v612_v28  ;;  %v626_v25 = vrot.slane %v621_v23, %v625_v22 }
  0x9a   : > { %v630_v26 = vrot.slane %v621_v23, %v629_v24 }
  0x9b   : > { %738 = vmatpush1.bf16.msra.mxu0 %v579_v35 }
  0x9c   : > { %779 = vmatpush1.bf16.msra.mxu1 %v611_v20  ;;  %739 = vmatprep.subr.bf16.mxu0 %v582_v36 }
  0x9d   : > { %780 = vmatprep.subr.bf16.mxu1 %v614_v40 }
  0x9f   : > { %740 = vmatpush1.bf16.msra.mxu0 %v581_v46 }
  0xa0   : > { %781 = vmatpush1.bf16.msra.mxu1 %v613_v47  ;;  %741 = vmatprep.subr.bf16.mxu0 %v584_v48 }
  0xa1   : > { %782 = vmatprep.subr.bf16.mxu1 %v616_v52 }
  0xa3   : > { %742 = vmatpush1.bf16.msra.mxu0 %v583_v58 }
  0xa4   : > { %783 = vmatpush1.bf16.msra.mxu1 %v615_v59  ;;  %743 = vmatprep.subr.bf16.mxu0 %v586_v60 }
  0xa5   : > { %784 = vmatprep.subr.bf16.mxu1 %v618_v0 }
  0xa7   : > { %744 = vmatpush1.bf16.msra.mxu0 %v585_v6 }
  0xa8   : > { %785 = vmatpush1.bf16.msra.mxu1 %v617_v7  ;;  %745 = vmatprep.subr.bf16.mxu0 %v588_v8 }
  0xa9   : > { %786 = vmatprep.subr.bf16.mxu1 %v620_v11 }
  0xab   : > { %746 = vmatpush1.bf16.msra.mxu0 %v587_v14 }
  0xac   : > { %787 = vmatpush1.bf16.msra.mxu1 %v619_v15 }
  0xae   : > { %748 = vmatmul.mubr.bf16.vlgmr.msra.gmra.mrb[4].mxu0 %v233_v17 }
  0xaf   : > { %789 = vmatmul.mubr.bf16.vlgmr.msra.gmra.mrb[4].mxu1 %v235_v18 }
 0x141   : > { %v667_v27 = vpop.f32.mrb[0].mxu0 }
 0x142   : > { %v668_v28 = vadd.f32 %v667_v27, %v626_v25  ;;  %v708_v30 = vpop.f32.mrb[0].mxu1  ;;  %v669_v29 = vpop.f32.mrb[1].mxu0 }
 0x143   : > { %v670_v32 = vadd.f32 %v669_v29, %v630_v26  ;;  %v710_v33 = vpop.f32.mrb[1].mxu1  ;;  %v671_v31 = vpop.f32.mrb[2].mxu0 }
 0x144   : > { %v709_v16 = vadd.f32 %v708_v30, %v668_v28  ;;  %v712_v34 = vpop.f32.mrb[2].mxu1  ;;  %v672_v35 = vpop.f32.mrb[3].mxu0 }
 0x145   : > { %v711_v20 = vadd.f32 %v710_v33, %v670_v32  ;;  %v713_v36 = vpop.f32.mrb[3].mxu1 }
 0x181   : > { %v749_v38 = vpop.f32.mrb[4].mxu0 }
 0x182   : > { %v750_v39 = vadd.f32 %v749_v38, %v709_v16  ;;  %v790_v40 = vpop.f32.mrb[4].mxu1  ;;  %v751_v41 = vpop.f32.mrb[5].mxu0 }
 0x183   : > { %v752_v42 = vadd.f32 %v751_v41, %v711_v20  ;;  %v792_v43 = vpop.f32.mrb[5].mxu1  ;;  %v753_v45 = vpop.f32.mrb[6].mxu0 }
 0x184   : > { %v791_v46 = vadd.f32 %v790_v40, %v750_v39  ;;  %v794_v47 = vpop.f32.mrb[6].mxu1  ;;  %v754_v48 = vpop.f32.mrb[7].mxu0 }
 0x185   : > { %v793_v49 = vadd.f32 %v792_v43, %v752_v42  ;;  %v795_v50 = vpop.f32.mrb[7].mxu1 }
 0x186   : > { %v801_v51 = vadd.f32 %v797_v37, %v791_v46 }
 0x187   : > { %v802_v52 = vadd.f32 %v799_v44, %v793_v49 }
 0x189   : > { %v805_v53 = vcombine.low %v801_v51, %v802_v52 }
 0x18b   : > { %807 = vst [vmem:[%s212_s20] sm:$0xff] %v805_v53 }
 0x18c PF: > { %s15_s15 = sadd.s32 1, %s954_s15  }
 0x18d   : > { %p12_p3 = scmp.ge.s32.totalorder %s15_s15, 4  }
 0x18f   :  { %14 = sbr.rel (!%p12_p3) target bundleno = 1 (0x1), region = 71 }
 0x196   :  { %829 = vsyncpa [#allocation3], 1 }
 0x197   :  { %831 = vsyncpa [#allocation3 + $0x1], 1 }

// kernel: forward.18
= control target key start
LH: loop header
LB: loop body
LE: loop exit
PB: predicated region body
PF: predicated region fallthrough
CT: control target
= control target key end

     0   :  { %s475_s15 = smov 0   ;;  %s707_s0 = inlined_call_operand.vmem [shape: f32[2,4,256], index: 0, kind: input, shape index: {}]   ;;  %s708_s1 = inlined_call_operand.vmem [shape: f32[256,256], index: 1, kind: input, shape index: {}]   ;;  %s709_s2 = inlined_call_operand.vmem [shape: f32[1,256], index: 2, kind: input, shape index: {}]   ;;  %s710_s3 = inlined_call_operand.vmem [shape: f32[1,4,256], index: 3, kind: input, shape index: {}]   ;;  %s711_s4 = inlined_call_operand.vmem [shape: f32[2,4,256], index: 4, kind: output, shape index: {}]  }
   0x1 LB: > { %s419_s16 = sadd.s32 4294967295, %s448_s15   ;;  %p423_p0 = scmp.ge.s32.totalorder %s448_s15, 1  ;;  %s448_s15 = sphi %s475_s15, %s14_s15  }
   0x2   : > { %p162_p1 = scmp.lt.s32.totalorder %s448_s15, 3 }
   0x4   : > { %p163_p2 = pnand %p423_p0, %p162_p1 }
   0x5   : > { %v205_v0 = vld [vmem:[%s708_s1 + $0x8] sm:$0xff] (!%p163_p2)  ;;  %v207_v1 = vld [vmem:[%s708_s1 + $0x18] sm:$0xff] (!%p163_p2)  ;;  %v204_v2 = vld [vmem:[%s708_s1] sm:$0xff] (!%p163_p2)  ;;  %p188_p3 = scmp.lt.s32.totalorder (!%p163_p2), %s419_s16, 1 }
   0x6   : > { %166 = sbr.rel (%p163_p2) target bundleno = 292 (0x124), region = 36  ;;  %v269_v3 = vpack.c.bf16 (!%p163_p2), %v207_v1, %v205_v0  ;;  %v206_v4 = vld [vmem:[%s708_s1 + $0x10] sm:$0xff] (!%p163_p2)  ;;  %v209_v5 = vld [vmem:[%s708_s1 + $0x28] sm:$0xff] (!%p163_p2)  ;;  %v211_v6 = vld [vmem:[%s708_s1 + $0x38] sm:$0xff] (!%p163_p2) }
   0x7   : > { %v268_v7 = vpack.c.bf16 (!%p163_p2), %v206_v4, %v204_v2  ;;  %v271_v8 = vpack.c.bf16 (!%p163_p2), %v211_v6, %v209_v5  ;;  %v208_v9 = vld [vmem:[%s708_s1 + $0x20] sm:$0xff] (!%p163_p2)  ;;  %v210_v10 = vld [vmem:[%s708_s1 + $0x30] sm:$0xff] (!%p163_p2)  ;;  %v213_v11 = vld [vmem:[%s708_s1 + $0x48] sm:$0xff] (!%p163_p2) }
   0x8   : > { %312 = vmatprep.subr.bf16.mxu0 (!%p163_p2), %v269_v3  ;;  %v215_v12 = vld [vmem:[%s708_s1 + $0x58] sm:$0xff] (!%p163_p2)  ;;  %v270_v13 = vpack.c.bf16 (!%p163_p2), %v210_v10, %v208_v9  ;;  %v212_v15 = vld [vmem:[%s708_s1 + $0x40] sm:$0xff] (!%p163_p2)  ;;  %v214_v16 = vld [vmem:[%s708_s1 + $0x50] sm:$0xff] (!%p163_p2) }
   0x9   : > { %313 = vmatpush1.bf16.msra.mxu0 (!%p163_p2), %v268_v7  ;;  %v273_v14 = vpack.c.bf16 (!%p163_p2), %v215_v12, %v213_v11  ;;  %v217_v17 = vld [vmem:[%s708_s1 + $0x68] sm:$0xff] (!%p163_p2)  ;;  %v219_v18 = vld [vmem:[%s708_s1 + $0x78] sm:$0xff] (!%p163_p2)  ;;  %v272_v19 = vpack.c.bf16 (!%p163_p2), %v214_v16, %v212_v15  ;;  %v216_v21 = vld [vmem:[%s708_s1 + $0x60] sm:$0xff] (!%p163_p2) }
   0xa   : > { %314 = vmatprep.subr.bf16.mxu0 (!%p163_p2), %v271_v8  ;;  %v275_v20 = vpack.c.bf16 (!%p163_p2), %v219_v18, %v217_v17  ;;  %v218_v22 = vld [vmem:[%s708_s1 + $0x70] sm:$0xff] (!%p163_p2)  ;;  %v221_v23 = vld [vmem:[%s708_s1 + $0x88] sm:$0xff] (!%p163_p2)  ;;  %v223_v24 = vld [vmem:[%s708_s1 + $0x98] sm:$0xff] (!%p163_p2) }
   0xb   : > { %v274_v25 = vpack.c.bf16 (!%p163_p2), %v218_v22, %v216_v21  ;;  %v277_v26 = vpack.c.bf16 (!%p163_p2), %v223_v24, %v221_v23  ;;  %v220_v27 = vld [vmem:[%s708_s1 + $0x80] sm:$0xff] (!%p163_p2)  ;;  %v222_v28 = vld [vmem:[%s708_s1 + $0x90] sm:$0xff] (!%p163_p2)  ;;  %v225_v29 = vld [vmem:[%s708_s1 + $0xa8] sm:$0xff] (!%p163_p2) }
   0xc   : > { %v227_v30 = vld [vmem:[%s708_s1 + $0xb8] sm:$0xff] (!%p163_p2)  ;;  %v276_v31 = vpack.c.bf16 (!%p163_p2), %v222_v28, %v220_v27  ;;  %v224_v33 = vld [vmem:[%s708_s1 + $0xa0] sm:$0xff] (!%p163_p2)  ;;  %v226_v34 = vld [vmem:[%s708_s1 + $0xb0] sm:$0xff] (!%p163_p2) }
   0xd   : > { %315 = vmatpush1.bf16.msra.mxu0 %v270_v13  ;;  %s713_s16 = smov (!%p188_p3, %s419_s16), 1  ;;  %v279_v32 = vpack.c.bf16 %v227_v30, %v225_v29  ;;  %v229_v35 = vld [vmem:[%s708_s1 + $0xc8] sm:$0xff]  ;;  %v231_v36 = vld [vmem:[%s708_s1 + $0xd8] sm:$0xff]  ;;  %v278_v37 = vpack.c.bf16 %v226_v34, %v224_v33  ;;  %v228_v39 = vld [vmem:[%s708_s1 + $0xc0] sm:$0xff] }
   0xe   : > { %316 = vmatprep.subr.bf16.mxu0 %v273_v14  ;;  %s430_s11 = sshll.u32 %s713_s16, 3  ;;  %v281_v38 = vpack.c.bf16 %v231_v36, %v229_v35  ;;  %v230_v40 = vld [vmem:[%s708_s1 + $0xd0] sm:$0xff]  ;;  %v233_v42 = vld [vmem:[%s708_s1 + $0xe8] sm:$0xff]  ;;  %v235_v43 = vld [vmem:[%s708_s1 + $0xf8] sm:$0xff]  ;;  %v302_v36 = vlaneseq }
   0xf   : > { %s192_s24 = scalar_lea.vmem %s707_s0, %s430_s11  ;;  %v280_v45 = vpack.c.bf16 %v230_v40, %v228_v39  ;;  %v283_v47 = vpack.c.bf16 %v235_v43, %v233_v42  ;;  %v232_v48 = vld [vmem:[%s708_s1 + $0xe0] sm:$0xff]  ;;  %v234_v49 = vld [vmem:[%s708_s1 + $0xf0] sm:$0xff]  ;;  %v237_v50 = vld [vmem:[%s708_s1 + $0x108] sm:$0xff]  ;;  %s197_s13 = scalar_lea.vmem %s711_s4, %s430_s11 }
  0x10   : > { %v579_v41 = vld [vmem:[%s192_s24] sm:$0xff]  ;;  %v239_v51 = vld [vmem:[%s708_s1 + $0x118] sm:$0xff]  ;;  %v282_v52 = vpack.c.bf16 %v234_v49, %v232_v48  ;;  %v238_v55 = vld [vmem:[%s708_s1 + $0x110] sm:$0xff] }
  0x11   : > { %317 = vmatpush1.bf16.msra.mxu0 %v272_v19  ;;  %v200_v44 = vcombine.high %v579_v41, %v579_v41  ;;  %v285_v53 = vpack.c.bf16 %v239_v51, %v237_v50  ;;  %v236_v54 = vld [vmem:[%s708_s1 + $0x100] sm:$0xff]  ;;  %v241_v56 = vld [vmem:[%s708_s1 + $0x128] sm:$0xff]  ;;  %v243_v57 = vld [vmem:[%s708_s1 + $0x138] sm:$0xff]  ;;  %v202_v35 = vpack.c.bf16 %v579_v41, %v579_v41 }
  0x12   : > { %318 = vmatprep.subr.bf16.mxu0 %v275_v20  ;;  %v284_v58 = vpack.c.bf16 %v238_v55, %v236_v54  ;;  %v287_v59 = vpack.c.bf16 %v243_v57, %v241_v56  ;;  %v240_v60 = vld [vmem:[%s708_s1 + $0x120] sm:$0xff]  ;;  %v242_v61 = vld [vmem:[%s708_s1 + $0x130] sm:$0xff]  ;;  %v245_v62 = vld [vmem:[%s708_s1 + $0x148] sm:$0xff] }
  0x13   : > { %v203_v46 = vpack.c.bf16 %v200_v44, %v200_v44  ;;  %v247_v63 = vld [vmem:[%s708_s1 + $0x158] sm:$0xff]  ;;  %v286_v0 = vpack.c.bf16 %v242_v61, %v240_v60  ;;  %v244_v2 = vld [vmem:[%s708_s1 + $0x140] sm:$0xff]  ;;  %v246_v3 = vld [vmem:[%s708_s1 + $0x150] sm:$0xff] }
  0x14   : > { %v289_v1 = vpack.c.bf16 %v247_v63, %v245_v62  ;;  %v249_v4 = vld [vmem:[%s708_s1 + $0x168] sm:$0xff]  ;;  %v251_v5 = vld [vmem:[%s708_s1 + $0x178] sm:$0xff]  ;;  %v288_v6 = vpack.c.bf16 %v246_v3, %v244_v2  ;;  %v248_v8 = vld [vmem:[%s708_s1 + $0x160] sm:$0xff] }
  0x15   : > { %319 = vmatpush1.bf16.msra.mxu0 %v274_v25  ;;  %344 = vmatprep.mubr.bf16.mxu0 %v203_v46  ;;  %v291_v7 = vpack.c.bf16 %v251_v5, %v249_v4  ;;  %v250_v9 = vld [vmem:[%s708_s1 + $0x170] sm:$0xff]  ;;  %v253_v10 = vld [vmem:[%s708_s1 + $0x188] sm:$0xff]  ;;  %v255_v11 = vld [vmem:[%s708_s1 + $0x198] sm:$0xff] }
  0x16   : > { %320 = vmatprep.subr.bf16.mxu0 %v277_v26  ;;  %v290_v12 = vpack.c.bf16 %v250_v9, %v248_v8  ;;  %v293_v13 = vpack.c.bf16 %v255_v11, %v253_v10  ;;  %v252_v14 = vld [vmem:[%s708_s1 + $0x180] sm:$0xff]  ;;  %v254_v15 = vld [vmem:[%s708_s1 + $0x190] sm:$0xff]  ;;  %v257_v16 = vld [vmem:[%s708_s1 + $0x1a8] sm:$0xff] }
  0x17   : > { %v259_v17 = vld [vmem:[%s708_s1 + $0x1b8] sm:$0xff]  ;;  %v292_v18 = vpack.c.bf16 %v254_v15, %v252_v14  ;;  %v256_v20 = vld [vmem:[%s708_s1 + $0x1a0] sm:$0xff]  ;;  %v258_v21 = vld [vmem:[%s708_s1 + $0x1b0] sm:$0xff] }
  0x18   : > { %v295_v19 = vpack.c.bf16 %v259_v17, %v257_v16  ;;  %v261_v22 = vld [vmem:[%s708_s1 + $0x1c8] sm:$0xff]  ;;  %v263_v23 = vld [vmem:[%s708_s1 + $0x1d8] sm:$0xff]  ;;  %v294_v24 = vpack.c.bf16 %v258_v21, %v256_v20  ;;  %v260_v26 = vld [vmem:[%s708_s1 + $0x1c0] sm:$0xff] }
  0x19   : > { %321 = vmatpush1.bf16.msra.mxu0 %v276_v31  ;;  %v297_v25 = vpack.c.bf16 %v263_v23, %v261_v22  ;;  %v262_v27 = vld [vmem:[%s708_s1 + $0x1d0] sm:$0xff]  ;;  %v265_v28 = vld [vmem:[%s708_s1 + $0x1e8] sm:$0xff]  ;;  %v267_v29 = vld [vmem:[%s708_s1 + $0x1f8] sm:$0xff] }
  0x1a   : > { %322 = vmatprep.subr.bf16.mxu0 %v279_v32  ;;  %v296_v30 = vpack.c.bf16 %v262_v27, %v260_v26  ;;  %v299_v31 = vpack.c.bf16 %v267_v29, %v265_v28  ;;  %v264_v32 = vld [vmem:[%s708_s1 + $0x1e0] sm:$0xff]  ;;  %v266_v33 = vld [vmem:[%s708_s1 + $0x1f0] sm:$0xff] }
  0x1b   : > { %v298_v34 = vpack.c.bf16 %v266_v33, %v264_v32  ;;  %v300_v39 = vld [vmem:[%s709_s2] sm:$0x3] }
  0x1c   : > { %v353_v43 = vld [vmem:[%s710_s3] sm:$0xff] }
  0x1d   : > { %323 = vmatpush1.bf16.msra.mxu0 %v278_v37  ;;  %v303_v37 = vshrl.u32 %v302_v36, 7  ;;  %v355_v46 = vcombine.high %v353_v43, %v353_v43 }
  0x1e   : > { %324 = vmatprep.subr.bf16.mxu0 %v281_v38 }
  0x1f   : > { %v304_v38 = vsub.s32 0, %v303_v37  ;;  %v308_v40 = vsub.s32 1, %v303_v37 }
  0x21   : > { %325 = vmatpush1.bf16.msra.mxu0 %v280_v45  ;;  %v305_v42 = vrot.slane %v300_v39, %v304_v38  ;;  %v309_v44 = vrot.slane %v300_v39, %v308_v40 }
  0x22   : > { %326 = vmatprep.subr.bf16.mxu0 %v283_v47 }
  0x25   : > { %327 = vmatpush1.bf16.msra.mxu0 %v282_v52 }
  0x26   : > { %328 = vmatprep.subr.bf16.mxu0 %v285_v53 }
  0x29   : > { %329 = vmatpush1.bf16.msra.mxu0 %v284_v58 }
  0x2a   : > { %330 = vmatprep.subr.bf16.mxu0 %v287_v59 }
  0x2d   : > { %331 = vmatpush1.bf16.msra.mxu0 %v286_v0 }
  0x2e   : > { %332 = vmatprep.subr.bf16.mxu0 %v289_v1 }
  0x31   : > { %333 = vmatpush1.bf16.msra.mxu0 %v288_v6 }
  0x32   : > { %334 = vmatprep.subr.bf16.mxu0 %v291_v7 }
  0x35   : > { %335 = vmatpush1.bf16.msra.mxu0 %v290_v12 }
  0x36   : > { %336 = vmatprep.subr.bf16.mxu0 %v293_v13 }
  0x39   : > { %337 = vmatpush1.bf16.msra.mxu0 %v292_v18 }
  0x3a   : > { %338 = vmatprep.subr.bf16.mxu0 %v295_v19 }
  0x3d   : > { %339 = vmatpush1.bf16.msra.mxu0 %v294_v24 }
  0x3e   : > { %340 = vmatprep.subr.bf16.mxu0 %v297_v25 }
  0x41   : > { %341 = vmatpush1.bf16.msra.mxu0 %v296_v30 }
  0x42   : > { %342 = vmatprep.subr.bf16.mxu0 %v299_v31 }
  0x45   : > { %343 = vmatpush1.bf16.msra.mxu0 %v298_v34 }
  0x48   : > { %345 = vmatmul.mubr.bf16.vlgmr.msra.gmra.mrb[0].mxu0 %v202_v35 }
 0x11b   : > { %v346_v45 = vpop.f32.mrb[0].mxu0 }
 0x11c   : > { %v347_v41 = vadd.f32 %v346_v45, %v305_v42  ;;  %v348_v47 = vpop.f32.mrb[1].mxu0 }
 0x11d   : > { %v349_v48 = vadd.f32 %v348_v47, %v309_v44  ;;  %v350_v49 = vpop.f32.mrb[2].mxu0 }
 0x11e   : > { %v357_v50 = vadd.f32 %v353_v43, %v347_v41  ;;  %v351_v51 = vpop.f32.mrb[3].mxu0 }
 0x11f   : > { %v358_v52 = vadd.f32 %v355_v46, %v349_v48 }
 0x121   : > { %v361_v53 = vcombine.low %v357_v50, %v358_v52 }
 0x123   : > { %363 = vst [vmem:[%s197_s13] sm:$0xff] %v361_v53 }
 0x124 PF: > { %s14_s15 = sadd.s32 1, %s448_s15  }
 0x125   : > { %p11_p4 = scmp.ge.s32.totalorder %s14_s15, 4  }
 0x127   :  { %13 = sbr.rel (!%p11_p4) target bundleno = 1 (0x1), region = 66 }

// kernel: forward.17
= control target key start
LH: loop header
LB: loop body
LE: loop exit
PB: predicated region body
PF: predicated region fallthrough
CT: control target
= control target key end

     0   :  { %s1779_s0 = inlined_call_operand.vmem [shape: f32[2,4,256], index: 0, kind: input, shape index: {}]   ;;  %s1780_s1 = inlined_call_operand.vmem [shape: f32[1,256], index: 1, kind: input, shape index: {}]   ;;  %s1781_s2 = inlined_call_operand.vmem [shape: f32[1,256], index: 2, kind: input, shape index: {}]   ;;  %s1782_s3 = inlined_call_operand.vmem [shape: f32[256,256], index: 3, kind: input, shape index: {}]   ;;  %s1783_s4 = inlined_call_operand.vmem [shape: f32[1,256], index: 4, kind: input, shape index: {}]   ;;  %s1784_s5 = inlined_call_operand.vmem [shape: f32[256,256], index: 5, kind: input, shape index: {}]   ;;  %s1785_s6 = inlined_call_operand.vmem [shape: f32[1,256], index: 6, kind: input, shape index: {}]   ;;  %s1786_s7 = inlined_call_operand.vmem [shape: f32[2,4,256], index: 7, kind: input, shape index: {}]   ;;  %s1787_s8 = inlined_call_operand.hbm [shape: f32[2,4,256], index: 8, kind: output, shape index: {0}]   ;;  %s1788_s9 = inlined_call_operand.hbm [shape: f32[2,4,256], index: 9, kind: output, shape index: {1}]   ;;  %s1789_s10 = inlined_call_operand.vmem [shape: f32[2,4,256], index: 10, kind: output, shape index: {2}]  }
   0x1   :  { %1790 = sst [smem:[#allocation9_spill]] %s1779_s0 }
   0x2   :  { %1791 = sst [smem:[#allocation10_spill]] %s1780_s1 }
   0x3   :  { %1792 = sst [smem:[#allocation11_spill]] %s1781_s2 }
   0x4   :  { %16 = vsyncpa [#allocation3], 0 }
   0x5   :  { %18 = vsyncpa [#allocation3 + $0x1], 0 }
   0x6   :  { %19 = vsyncpa [#allocation5], 0 }
   0x7   :  { %21 = vsyncpa [#allocation5 + $0x1], 0  ;;  %s1207_s13 = smov 0   ;;  %s1209_s14 = smov 0  }
   0x8   :  { %s1211_s15 = smov 0   ;;  %s1213_s16 = smov 0  }
   0x9 LB: > { %s1228_s17 = sadd.s32 4294967295, %s1147_s16   ;;  %s976_s18 = sadd.s32 4294967294, %s1147_s16   ;;  %s1147_s16 = sphi %s1213_s16, %s1803_s16   ;;  %s1143_s15 = sphi %s1211_s15, %s1802_s15   ;;  %s1139_s14 = sphi %s1209_s14, %s1801_s14   ;;  %s1135_s13 = sphi %s1207_s13, %s1800_s13  }
   0xa   : > { %s1232_s19 = sadd.s32 1, %s1147_s16   ;;  %s212_s20 = sadd.s32 1, %s1143_s15 }
   0xb   : > { %s209_s21 = ssub.s32 %s1147_s16, %s1232_s19  ;;  %p222_p0 = scmp.ne.s32.totalorder %s1143_s15, %s1139_s14 }
   0xc   : > { %p210_p1 = scmp.eq.s32.totalorder %s209_s21, 0  ;;  %p223_p2 = scmp.eq.s32.totalorder %s1228_s17, 1 }
   0xd   : > { %p228_p3 = scmp.ne.s32.totalorder %s1139_s14, %s1135_s13  ;;  %p229_p4 = scmp.eq.s32.totalorder %s976_s18, 1 }
   0xe   : > { %s1243_s22 = scalar_select %p210_p1, %s1143_s15, %s212_s20  }
   0xf   : > { %p1245_p5 = por %p223_p2, %p222_p0  ;;  %p1249_p6 = por %p229_p4, %p228_p3 }
  0x10   : > { %1793 = sst [smem:[#allocation8_spill]] %s1243_s22  ;;  %p979_p7 = scmp.ge.s32.totalorder %s1147_s16, 1 }
  0x11   : > { %p333_p8 = scmp.lt.s32.totalorder %s1147_s16, 3 }
  0x13   : > { %p334_p9 = pnand %p979_p7, %p333_p8 }
  0x14   : > { %p386_p10 = scmp.lt.s32.totalorder (!%p334_p9), %s1228_s17, 1  ;;  %vm407_vm0 = vcmask (!%p334_p9), 1043456   ;;  %s1796_s0 = sld [smem:[#allocation9_spill]] (!%p334_p9)  ;;  %v477_v5 = vld [vmem:[%s1782_s3 + $0x8] sm:$0xff] (!%p334_p9)  ;;  %v479_v6 = vld [vmem:[%s1782_s3 + $0x18] sm:$0xff] (!%p334_p9)  ;;  %v476_v10 = vld [vmem:[%s1782_s3] sm:$0xff] (!%p334_p9) }
  0x15   : > { %337 = sbr.rel (%p334_p9) target bundleno = 630 (0x276), region = 52  ;;  %v626_v7 = vld [vmem:[%s1784_s5 + $0x8] sm:$0xff] (!%p334_p9)  ;;  %v541_v8 = vpack.c.bf16 (!%p334_p9), %v479_v6, %v477_v5  ;;  %v628_v9 = vld [vmem:[%s1784_s5 + $0x18] sm:$0xff] (!%p334_p9)  ;;  %v478_v11 = vld [vmem:[%s1782_s3 + $0x10] sm:$0xff] (!%p334_p9)  ;;  %s1797_s1 = sld [smem:[#allocation10_spill]] (!%p334_p9) }
  0x16   : > { %v690_v12 = vpack.c.bf16 (!%p334_p9), %v628_v9, %v626_v7  ;;  %v540_v13 = vpack.c.bf16 (!%p334_p9), %v478_v11, %v476_v10  ;;  %v625_v14 = vld [vmem:[%s1784_s5] sm:$0xff] (!%p334_p9)  ;;  %v627_v15 = vld [vmem:[%s1784_s5 + $0x10] sm:$0xff] (!%p334_p9)  ;;  %v481_v16 = vld [vmem:[%s1782_s3 + $0x28] sm:$0xff] (!%p334_p9)  ;;  %s1798_s2 = sld [smem:[#allocation11_spill]] (!%p334_p9)  ;;  %s1684_s21 = sand.u32 (!%p334_p9), 1, %s1139_s14  }
  0x17   : > { %584 = vmatprep.subr.bf16.mxu0 (!%p334_p9), %v541_v8  ;;  %v689_v17 = vpack.c.bf16 (!%p334_p9), %v627_v15, %v625_v14  ;;  %v483_v18 = vld [vmem:[%s1782_s3 + $0x38] sm:$0xff] (!%p334_p9)  ;;  %v630_v19 = vld [vmem:[%s1784_s5 + $0x28] sm:$0xff] (!%p334_p9)  ;;  %v480_v23 = vld [vmem:[%s1782_s3 + $0x20] sm:$0xff] (!%p334_p9)  ;;  %s999_s27 = sshll.u32 (!%p334_p9), %s1228_s17, 7 }
  0x18   : > { %v632_v20 = vld [vmem:[%s1784_s5 + $0x38] sm:$0xff] (!%p334_p9)  ;;  %733 = vmatprep.subr.bf16.mxu1 (!%p334_p9), %v690_v12  ;;  %585 = vmatpush1.bf16.msra.mxu0 (!%p334_p9), %v540_v13  ;;  %v543_v21 = vpack.c.bf16 (!%p334_p9), %v483_v18, %v481_v16  ;;  %v482_v24 = vld [vmem:[%s1782_s3 + $0x30] sm:$0xff] (!%p334_p9)  ;;  %v629_v25 = vld [vmem:[%s1784_s5 + $0x20] sm:$0xff] (!%p334_p9)  ;;  %s1695_s11 = scalar_lea.hbm (!%p334_p9), %s1787_s8, %s999_s27  ;;  %s1704_s20 = scalar_lea.hbm (!%p334_p9), %s1788_s9, %s999_s27 }
  0x19   : > { %v692_v22 = vpack.c.bf16 (!%p334_p9), %v632_v20, %v630_v19  ;;  %734 = vmatpush1.bf16.msra.mxu1 (!%p334_p9), %v689_v17  ;;  %v542_v26 = vpack.c.bf16 (!%p334_p9), %v482_v24, %v480_v23  ;;  %v631_v27 = vld [vmem:[%s1784_s5 + $0x30] sm:$0xff] (!%p334_p9)  ;;  %v485_v28 = vld [vmem:[%s1782_s3 + $0x48] sm:$0xff] (!%p334_p9)  ;;  %v487_v29 = vld [vmem:[%s1782_s3 + $0x58] sm:$0xff] (!%p334_p9) }
  0x1a   : > { %586 = vmatprep.subr.bf16.mxu0 (!%p334_p9), %v543_v21  ;;  %v691_v30 = vpack.c.bf16 (!%p334_p9), %v631_v27, %v629_v25  ;;  %v545_v31 = vpack.c.bf16 (!%p334_p9), %v487_v29, %v485_v28  ;;  %v634_v32 = vld [vmem:[%s1784_s5 + $0x48] sm:$0xff] (!%p334_p9)  ;;  %v636_v33 = vld [vmem:[%s1784_s5 + $0x58] sm:$0xff] (!%p334_p9)  ;;  %v484_v34 = vld [vmem:[%s1782_s3 + $0x40] sm:$0xff] (!%p334_p9) }
  0x1b   : > { %735 = vmatprep.subr.bf16.mxu1 (!%p334_p9), %v692_v22  ;;  %v694_v35 = vpack.c.bf16 (!%p334_p9), %v636_v33, %v634_v32  ;;  %v486_v36 = vld [vmem:[%s1782_s3 + $0x50] sm:$0xff] (!%p334_p9)  ;;  %v633_v37 = vld [vmem:[%s1784_s5 + $0x40] sm:$0xff] (!%p334_p9)  ;;  %v489_v40 = vld [vmem:[%s1782_s3 + $0x68] sm:$0xff] (!%p334_p9) }
  0x1c   : > { %s387_s25 = scalar_select %p386_p10, %s1228_s17, 1  ;;  %v635_v38 = vld [vmem:[%s1784_s5 + $0x50] sm:$0xff]  ;;  %587 = vmatpush1.bf16.msra.mxu0 %v542_v26  ;;  %v544_v39 = vpack.c.bf16 %v486_v36, %v484_v34  ;;  %v491_v41 = vld [vmem:[%s1782_s3 + $0x78] sm:$0xff]  ;;  %v638_v42 = vld [vmem:[%s1784_s5 + $0x68] sm:$0xff] }
  0x1d   : > { %736 = vmatpush1.bf16.msra.mxu1 %v691_v30  ;;  %588 = vmatprep.subr.bf16.mxu0 %v545_v31  ;;  %v693_v43 = vpack.c.bf16 %v635_v38, %v633_v37  ;;  %v547_v44 = vpack.c.bf16 %v491_v41, %v489_v40  ;;  %v640_v45 = vld [vmem:[%s1784_s5 + $0x78] sm:$0xff]  ;;  %v488_v46 = vld [vmem:[%s1782_s3 + $0x60] sm:$0xff]  ;;  %v490_v47 = vld [vmem:[%s1782_s3 + $0x70] sm:$0xff]  ;;  %s1150_s17 = smov [#allocation2]  }
  0x1e   : > { %s1257_s26 = sshll.u32 %s387_s25, 3  ;;  %737 = vmatprep.subr.bf16.mxu1 %v694_v35  ;;  %v696_v48 = vpack.c.bf16 %v640_v45, %v638_v42  ;;  %v637_v49 = vld [vmem:[%s1784_s5 + $0x60] sm:$0xff]  ;;  %v639_v50 = vld [vmem:[%s1784_s5 + $0x70] sm:$0xff]  ;;  %v493_v51 = vld [vmem:[%s1782_s3 + $0x88] sm:$0xff]  ;;  %v546_v55 = vpack.c.bf16 %v490_v47, %v488_v46  ;;  %s980_s25 = sshll.u32 %s1684_s21, 3 }
  0x1f   : > { %s390_s29 = scalar_lea.vmem %s1796_s0, %s1257_s26  ;;  %v495_v52 = vld [vmem:[%s1782_s3 + $0x98] sm:$0xff]  ;;  %v642_v53 = vld [vmem:[%s1784_s5 + $0x88] sm:$0xff]  ;;  %v695_v56 = vpack.c.bf16 %v639_v50, %v637_v49  ;;  %v492_v58 = vld [vmem:[%s1782_s3 + $0x80] sm:$0xff]  ;;  %v1149_v50 = vmov 839922192   ;;  %s371_s28 = scalar_lea.vmem [#allocation2], %s980_s25 }
  0x20   : > { %v1263_v0 = vld [vmem:[%s390_s29] sm:$0xff]  ;;  %v644_v54 = vld [vmem:[%s1784_s5 + $0x98] sm:$0xff]  ;;  %589 = vmatpush1.bf16.msra.mxu0 %v544_v39  ;;  %v549_v57 = vpack.c.bf16 %v495_v52, %v493_v51  ;;  %v494_v59 = vld [vmem:[%s1782_s3 + $0x90] sm:$0xff]  ;;  %v417_v51 = vunpack.c.l.s4 %v1149_v50  ;;  %v419_v52 = vlaneseq  ;;  %s831_s0 = sshll.u32 %s371_s28, 4  ;;  %s378_s29 = scalar_lea.vmem [#allocation4], %s980_s25  ;;  %s1699_s0 = int_to_ptr.vmem [resolvable:$true] %s831_s0 }
  0x21   : > { %v405_v1 = vcombine.high %v1263_v0, %v1263_v0  ;;  %v408_v2 = vsel %vm407_vm0, %v1263_v0, 0.0  ;;  %738 = vmatpush1.bf16.msra.mxu1 %v693_v43  ;;  %590 = vmatprep.subr.bf16.mxu0 %v547_v44  ;;  %v641_v60 = vld [vmem:[%s1784_s5 + $0x80] sm:$0xff]  ;;  %v698_v61 = vpack.c.bf16 %v644_v54, %v642_v53  ;;  %v643_v62 = vld [vmem:[%s1784_s5 + $0x90] sm:$0xff]  ;;  %v497_v63 = vld [vmem:[%s1782_s3 + $0xa8] sm:$0xff]  ;;  %s845_s22 = sshll.u32 %s378_s29, 4  ;;  %s807_s25 = scalar_lea.sflag [#allocation3], %s1684_s21  ;;  %s1706_s22 = int_to_ptr.vmem [resolvable:$true] %s845_s22 }
  0x22   : > { %739 = vmatprep.subr.bf16.mxu1 %v696_v48  ;;  %v697_v5 = vpack.c.bf16 %v643_v62, %v641_v60  ;;  %v496_v7 = vld [vmem:[%s1782_s3 + $0xa0] sm:$0xff]  ;;  %v498_v8 = vld [vmem:[%s1782_s3 + $0xb0] sm:$0xff]  ;;  %v501_v12 = vld [vmem:[%s1782_s3 + $0xc8] sm:$0xff]  ;;  %v418_v53 = vunpack.c.0.s8 %v417_v51  ;;  %v1486_v54 = vshrl.u32 %v419_v52, 7  ;;  %s1053_s30 = scalar_lea.vmem %s1699_s0, 128 }
  0x23   : > { %v409_v3 = vsel %vm407_vm0, %v405_v1, 0.0  ;;  %v499_v1 = vld [vmem:[%s1782_s3 + $0xb8] sm:$0xff]  ;;  %v645_v9 = vld [vmem:[%s1784_s5 + $0xa0] sm:$0xff]  ;;  %v647_v11 = vld [vmem:[%s1784_s5 + $0xb0] sm:$0xff]  ;;  %v550_v16 = vpack.c.bf16 %v498_v8, %v496_v7  ;;  %p1054_p11 = scmp.ne.s32.totalorder %s1699_s0, %s1053_s30 }
  0x24   : > { %v410_v4 = vadd.f32 %v409_v3, %v408_v2  ;;  %v646_v2 = vld [vmem:[%s1784_s5 + $0xa8] sm:$0xff]  ;;  %v648_v3 = vld [vmem:[%s1784_s5 + $0xb8] sm:$0xff]  ;;  %591 = vmatpush1.bf16.msra.mxu0 %v546_v55  ;;  %v551_v6 = vpack.c.bf16 %v499_v1, %v497_v63  ;;  %v699_v17 = vpack.c.bf16 %v647_v11, %v645_v9  ;;  %v500_v19 = vld [vmem:[%s1782_s3 + $0xc0] sm:$0xff]  ;;  %v1489_v55 = vsub.s32 %v418_v53, %v1486_v54 }
  0x25   : > { %740 = vmatpush1.bf16.msra.mxu1 %v695_v56  ;;  %592 = vmatprep.subr.bf16.mxu0 %v549_v57  ;;  %v700_v10 = vpack.c.bf16 %v648_v3, %v646_v2  ;;  %v503_v13 = vld [vmem:[%s1782_s3 + $0xd8] sm:$0xff]  ;;  %v650_v14 = vld [vmem:[%s1784_s5 + $0xc8] sm:$0xff]  ;;  %v502_v20 = vld [vmem:[%s1782_s3 + $0xd0] sm:$0xff]  ;;  %p1055_p12 = pnand %p1054_p11, %p1245_p5 }
  0x26   : > { %411 = vadd.xlane.f32.xlu0 %v410_v4  ;;  %v548_v4 = vpack.c.bf16 %v494_v59, %v492_v58  ;;  %741 = vmatprep.subr.bf16.mxu1 %v698_v61  ;;  %v652_v15 = vld [vmem:[%s1784_s5 + $0xd8] sm:$0xff]  ;;  %v553_v18 = vpack.c.bf16 %v503_v13, %v501_v12  ;;  %v649_v21 = vld [vmem:[%s1784_s5 + $0xc0] sm:$0xff]  ;;  %v651_v23 = vld [vmem:[%s1784_s5 + $0xd0] sm:$0xff]  ;;  %v552_v28 = vpack.c.bf16 %v502_v20, %v500_v19 }
  0x27   : > { %v702_v22 = vpack.c.bf16 %v652_v15, %v650_v14  ;;  %v505_v24 = vld [vmem:[%s1782_s3 + $0xe8] sm:$0xff]  ;;  %v507_v25 = vld [vmem:[%s1782_s3 + $0xf8] sm:$0xff]  ;;  %v701_v29 = vpack.c.bf16 %v651_v23, %v649_v21  ;;  %v504_v31 = vld [vmem:[%s1782_s3 + $0xe0] sm:$0xff]  ;;  %p1056_p13 = pneg %p1055_p12 }
  0x28   : > { %593 = vmatpush1.bf16.msra.mxu0 %v548_v4  ;;  %v654_v26 = vld [vmem:[%s1784_s5 + $0xe8] sm:$0xff]  ;;  %v656_v27 = vld [vmem:[%s1784_s5 + $0xf8] sm:$0xff]  ;;  %v555_v30 = vpack.c.bf16 %v507_v25, %v505_v24  ;;  %v506_v32 = vld [vmem:[%s1782_s3 + $0xf0] sm:$0xff] }
  0x29   : > { %742 = vmatpush1.bf16.msra.mxu1 %v697_v5  ;;  %594 = vmatprep.subr.bf16.mxu0 %v551_v6  ;;  %v653_v33 = vld [vmem:[%s1784_s5 + $0xe0] sm:$0xff]  ;;  %v704_v34 = vpack.c.bf16 %v656_v27, %v654_v26  ;;  %v655_v35 = vld [vmem:[%s1784_s5 + $0xf0] sm:$0xff]  ;;  %v509_v36 = vld [vmem:[%s1782_s3 + $0x108] sm:$0xff]  ;;  %v554_v40 = vpack.c.bf16 %v506_v32, %v504_v31 }
  0x2a   : > { %743 = vmatprep.subr.bf16.mxu1 %v700_v10  ;;  %v511_v37 = vld [vmem:[%s1782_s3 + $0x118] sm:$0xff]  ;;  %v658_v38 = vld [vmem:[%s1784_s5 + $0x108] sm:$0xff]  ;;  %v703_v41 = vpack.c.bf16 %v655_v35, %v653_v33  ;;  %v508_v43 = vld [vmem:[%s1782_s3 + $0x100] sm:$0xff] }
  0x2b   : > { %v660_v39 = vld [vmem:[%s1784_s5 + $0x118] sm:$0xff]  ;;  %v557_v42 = vpack.c.bf16 %v511_v37, %v509_v36  ;;  %v510_v44 = vld [vmem:[%s1782_s3 + $0x110] sm:$0xff]  ;;  %v657_v46 = vld [vmem:[%s1784_s5 + $0x100] sm:$0xff] }
  0x2c   : > { %595 = vmatpush1.bf16.msra.mxu0 %v550_v16  ;;  %v706_v45 = vpack.c.bf16 %v660_v39, %v658_v38  ;;  %v659_v47 = vld [vmem:[%s1784_s5 + $0x110] sm:$0xff]  ;;  %v556_v48 = vpack.c.bf16 %v510_v44, %v508_v43  ;;  %v513_v2 = vld [vmem:[%s1782_s3 + $0x128] sm:$0xff]  ;;  %v515_v3 = vld [vmem:[%s1782_s3 + $0x138] sm:$0xff] }
  0x2d   : > { %744 = vmatpush1.bf16.msra.mxu1 %v699_v17  ;;  %596 = vmatprep.subr.bf16.mxu0 %v553_v18  ;;  %v705_v49 = vpack.c.bf16 %v659_v47, %v657_v46  ;;  %v559_v4 = vpack.c.bf16 %v515_v3, %v513_v2  ;;  %v664_v5 = vld [vmem:[%s1784_s5 + $0x138] sm:$0xff]  ;;  %v512_v6 = vld [vmem:[%s1782_s3 + $0x120] sm:$0xff]  ;;  %v514_v7 = vld [vmem:[%s1782_s3 + $0x130] sm:$0xff] }
  0x2e   : > { %745 = vmatprep.subr.bf16.mxu1 %v702_v22  ;;  %v558_v9 = vpack.c.bf16 %v514_v7, %v512_v6  ;;  %v661_v10 = vld [vmem:[%s1784_s5 + $0x120] sm:$0xff]  ;;  %v663_v11 = vld [vmem:[%s1784_s5 + $0x130] sm:$0xff]  ;;  %v517_v13 = vld [vmem:[%s1782_s3 + $0x148] sm:$0xff] }
  0x2f   : > { %v707_v12 = vpack.c.bf16 %v663_v11, %v661_v10  ;;  %v519_v14 = vld [vmem:[%s1782_s3 + $0x158] sm:$0xff]  ;;  %v666_v15 = vld [vmem:[%s1784_s5 + $0x148] sm:$0xff]  ;;  %v516_v18 = vld [vmem:[%s1782_s3 + $0x140] sm:$0xff] }
  0x30   : > { %597 = vmatpush1.bf16.msra.mxu0 %v552_v28  ;;  %v561_v16 = vpack.c.bf16 %v519_v14, %v517_v13  ;;  %v668_v17 = vld [vmem:[%s1784_s5 + $0x158] sm:$0xff]  ;;  %v518_v19 = vld [vmem:[%s1782_s3 + $0x150] sm:$0xff]  ;;  %v665_v22 = vld [vmem:[%s1784_s5 + $0x140] sm:$0xff] }
  0x31   : > { %746 = vmatpush1.bf16.msra.mxu1 %v701_v29  ;;  %598 = vmatprep.subr.bf16.mxu0 %v555_v30  ;;  %v710_v20 = vpack.c.bf16 %v668_v17, %v666_v15  ;;  %v560_v21 = vpack.c.bf16 %v518_v19, %v516_v18  ;;  %v667_v23 = vld [vmem:[%s1784_s5 + $0x150] sm:$0xff]  ;;  %v521_v25 = vld [vmem:[%s1782_s3 + $0x168] sm:$0xff]  ;;  %v523_v26 = vld [vmem:[%s1782_s3 + $0x178] sm:$0xff] }
  0x32   : > { %747 = vmatprep.subr.bf16.mxu1 %v704_v34  ;;  %v709_v24 = vpack.c.bf16 %v667_v23, %v665_v22  ;;  %v670_v27 = vld [vmem:[%s1784_s5 + $0x168] sm:$0xff]  ;;  %v563_v28 = vpack.c.bf16 %v523_v26, %v521_v25  ;;  %v672_v29 = vld [vmem:[%s1784_s5 + $0x178] sm:$0xff]  ;;  %v520_v30 = vld [vmem:[%s1782_s3 + $0x160] sm:$0xff] }
  0x33   : > { %v522_v31 = vld [vmem:[%s1782_s3 + $0x170] sm:$0xff]  ;;  %v712_v32 = vpack.c.bf16 %v672_v29, %v670_v27  ;;  %v669_v34 = vld [vmem:[%s1784_s5 + $0x160] sm:$0xff]  ;;  %v525_v36 = vld [vmem:[%s1782_s3 + $0x188] sm:$0xff]  ;;  %v450_v27 = vsub.s32 0, %v1486_v54 }
  0x34   : > { %599 = vmatpush1.bf16.msra.mxu0 %v554_v40  ;;  %v562_v33 = vpack.c.bf16 %v522_v31, %v520_v30  ;;  %v671_v35 = vld [vmem:[%s1784_s5 + $0x170] sm:$0xff]  ;;  %v527_v38 = vld [vmem:[%s1782_s3 + $0x198] sm:$0xff]  ;;  %v674_v39 = vld [vmem:[%s1784_s5 + $0x188] sm:$0xff] }
  0x35   : > { %748 = vmatpush1.bf16.msra.mxu1 %v703_v41  ;;  %600 = vmatprep.subr.bf16.mxu0 %v557_v42  ;;  %v711_v37 = vpack.c.bf16 %v671_v35, %v669_v34  ;;  %v676_v40 = vld [vmem:[%s1784_s5 + $0x198] sm:$0xff]  ;;  %v565_v41 = vpack.c.bf16 %v527_v38, %v525_v36  ;;  %v524_v43 = vld [vmem:[%s1782_s3 + $0x180] sm:$0xff]  ;;  %v526_v44 = vld [vmem:[%s1782_s3 + $0x190] sm:$0xff] }
  0x36   : > { %749 = vmatprep.subr.bf16.mxu1 %v706_v45  ;;  %v714_v42 = vpack.c.bf16 %v676_v40, %v674_v39  ;;  %v673_v45 = vld [vmem:[%s1784_s5 + $0x180] sm:$0xff]  ;;  %v564_v46 = vpack.c.bf16 %v526_v44, %v524_v43  ;;  %v675_v47 = vld [vmem:[%s1784_s5 + $0x190] sm:$0xff]  ;;  %v678_v52 = vld [vmem:[%s1784_s5 + $0x1a8] sm:$0xff] }
  0x37   : > { %v713_v50 = vpack.c.bf16 %v675_v47, %v673_v45  ;;  %v680_v53 = vld [vmem:[%s1784_s5 + $0x1b8] sm:$0xff]  ;;  %v534_v6 = vld [vmem:[%s1782_s3 + $0x1d0] sm:$0xff]  ;;  %v681_v7 = vld [vmem:[%s1784_s5 + $0x1c0] sm:$0xff] }
  0x38   : > { %601 = vmatpush1.bf16.msra.mxu0 %v556_v48  ;;  %v529_v48 = vld [vmem:[%s1782_s3 + $0x1a8] sm:$0xff]  ;;  %v684_v3 = vld [vmem:[%s1784_s5 + $0x1d8] sm:$0xff]  ;;  %v536_v17 = vld [vmem:[%s1782_s3 + $0x1e0] sm:$0xff] }
  0x39   : > { %750 = vmatpush1.bf16.msra.mxu1 %v705_v49  ;;  %602 = vmatprep.subr.bf16.mxu0 %v559_v4  ;;  %v531_v49 = vld [vmem:[%s1782_s3 + $0x1b8] sm:$0xff]  ;;  %v537_v10 = vld [vmem:[%s1782_s3 + $0x1e8] sm:$0xff]  ;;  %v538_v18 = vld [vmem:[%s1782_s3 + $0x1f0] sm:$0xff] }
  0x3a   : > { %v567_v51 = vpack.c.bf16 %v531_v49, %v529_v48  ;;  %v539_v11 = vld [vmem:[%s1782_s3 + $0x1f8] sm:$0xff]  ;;  %v570_v22 = vpack.c.bf16 %v538_v18, %v536_v17  ;;  %v402_v29 = vld [vmem:[%s1797_s1] sm:$0x3]  ;;  %s1057_s1 = sshll.u32 %s1150_s17, 4  ;;  %s1058_s1 = int_to_ptr.vmem [resolvable:$false] %s1057_s1 }
  0x3b   : > { %v688_v13 = vld [vmem:[%s1784_s5 + $0x1f8] sm:$0xff]  ;;  %v403_v30 = vld [vmem:[%s1798_s2] sm:$0x3]  ;;  %v451_v31 = vrot.slane %v402_v29, %v450_v27  ;;  %s1059_s2 = scalar_lea.vmem %s1058_s1, 256  ;;  %p1060_p0 = scmp.lt.s32.totalorder %s1699_s0, %s1058_s1 }
  0x3c   : > { %603 = vmatpush1.bf16.msra.mxu0 %v558_v9  ;;  %v683_v9 = vld [vmem:[%s1784_s5 + $0x1d0] sm:$0xff]  ;;  %v572_v44 = vld [vmem:[%s1783_s4] sm:$0x3]  ;;  %p1061_p1 = scmp.lt.s32.totalorder %s1059_s2, %s1053_s30 }
  0x3d   : > { %604 = vmatprep.subr.bf16.mxu0 %v561_v16  ;;  %v717_v15 = vpack.c.bf16 %v683_v9, %v681_v7  ;;  %v571_v16 = vpack.c.bf16 %v539_v11, %v537_v10 }
  0x3e   : > { %p1062_p2 = por %p1061_p1, %p1060_p0 }
  0x40   : > { %605 = vmatpush1.bf16.msra.mxu0 %v560_v21  ;;  %v687_v21 = vld [vmem:[%s1784_s5 + $0x1f0] sm:$0xff]  ;;  %p1063_p3 = pnand %p1062_p2, %p1056_p13 }
  0x41   : > { %606 = vmatprep.subr.bf16.mxu0 %v563_v28  ;;  %v454_v28 = vsub.s32 1, %v1486_v54 }
  0x43   : > { %v467_v34 = vrot.slane %v403_v30, %v454_v28 }
  0x44   : > { %607 = vmatpush1.bf16.msra.mxu0 %v562_v33  ;;  %v463_v33 = vrot.slane %v403_v30, %v450_v27 }
  0x45   : > { %608 = vmatprep.subr.bf16.mxu0 %v565_v41 }
  0x46   : > { %v468_v54 = vcombine.low %v463_v33, %v467_v34 }
  0x48   : > { %609 = vmatpush1.bf16.msra.mxu0 %v564_v46  ;;  %v581_v46 = vrot.slane %v572_v44, %v454_v28 }
  0x49   : > { %610 = vmatprep.subr.bf16.mxu0 %v567_v51 }
  0xb3   : > { %v412_v56 = vpop.xlane.xlu0 %411 }
  0xb4   : > { %v414_v57 = vmul.f32 0.00390625, %v412_v56  ;;  %v528_v56 = vld [vmem:[%s1782_s3 + $0x1a0] sm:$0xff] }
  0xb6   : > { %v422_v58 = vrot.slane %v414_v57, %v1489_v55  ;;  %v716_v57 = vpack.c.bf16 %v680_v53, %v678_v52 }
  0xb8   : > { %v1493_v59 = vsub.f32 %v1263_v0, %v422_v58  ;;  %v662_v0 = vld [vmem:[%s1784_s5 + $0x128] sm:$0xff]  ;;  %v530_v58 = vld [vmem:[%s1782_s3 + $0x1b0] sm:$0xff] }
  0xb9   : > { %v708_v8 = vpack.c.bf16 %v664_v5, %v662_v0  ;;  %v566_v2 = vpack.c.bf16 %v530_v58, %v528_v56  ;;  %v532_v5 = vld [vmem:[%s1782_s3 + $0x1c0] sm:$0xff] }
  0xba   : > { %v425_v60 = vmul.f32 %v1493_v59, %v1493_v59  ;;  %v568_v14 = vpack.c.bf16 %v534_v6, %v532_v5 }
  0xbb   : > { %751 = vmatprep.subr.bf16.mxu1 %v708_v8  ;;  %611 = vmatpush1.bf16.msra.mxu0 %v566_v2 }
  0xbc   : > { %v427_v61 = vcombine.high %v425_v60, %v425_v60  ;;  %v429_v62 = vsel %vm407_vm0, %v425_v60, 0.0  ;;  %752 = vmatpush1.bf16.msra.mxu1 %v707_v12  ;;  %v677_v60 = vld [vmem:[%s1784_s5 + $0x1a0] sm:$0xff]  ;;  %v686_v12 = vld [vmem:[%s1784_s5 + $0x1e8] sm:$0xff] }
  0xbd   : > { %753 = vmatprep.subr.bf16.mxu1 %v710_v20  ;;  %v720_v19 = vpack.c.bf16 %v688_v13, %v686_v12  ;;  %v685_v20 = vld [vmem:[%s1784_s5 + $0x1e0] sm:$0xff] }
  0xbe   : > { %v430_v63 = vsel %vm407_vm0, %v427_v61, 0.0  ;;  %v679_v61 = vld [vmem:[%s1784_s5 + $0x1b0] sm:$0xff]  ;;  %v719_v23 = vpack.c.bf16 %v687_v21, %v685_v20 }
  0xbf   : > { %v431_v1 = vadd.f32 %v430_v63, %v429_v62  ;;  %v533_v62 = vld [vmem:[%s1782_s3 + $0x1c8] sm:$0xff]  ;;  %v535_v63 = vld [vmem:[%s1782_s3 + $0x1d8] sm:$0xff]  ;;  %v715_v0 = vpack.c.bf16 %v679_v61, %v677_v60 }
  0xc0   : > { %754 = vmatpush1.bf16.msra.mxu1 %v709_v24  ;;  %v569_v4 = vpack.c.bf16 %v535_v63, %v533_v62 }
  0xc1   : > { %432 = vadd.xlane.f32.xlu0 %v431_v1  ;;  %755 = vmatprep.subr.bf16.mxu1 %v712_v32  ;;  %v682_v1 = vld [vmem:[%s1784_s5 + $0x1c8] sm:$0xff]  ;;  %v455_v32 = vrot.slane %v402_v29, %v454_v28 }
  0xc2   : > { %v718_v8 = vpack.c.bf16 %v684_v3, %v682_v1  ;;  %612 = vmatprep.subr.bf16.mxu0 %v569_v4 }
  0xc3   : > { %613 = vmatpush1.bf16.msra.mxu0 %v568_v14 }
  0xc4   : > { %756 = vmatpush1.bf16.msra.mxu1 %v711_v37  ;;  %614 = vmatprep.subr.bf16.mxu0 %v571_v16  ;;  %v456_v37 = vcombine.low %v451_v31, %v455_v32 }
  0xc5   : > { %757 = vmatprep.subr.bf16.mxu1 %v714_v42 }
  0xc7   : > { %615 = vmatpush1.bf16.msra.mxu0 %v570_v22 }
  0xc8   : > { %758 = vmatpush1.bf16.msra.mxu1 %v713_v50 }
  0xc9   : > { %759 = vmatprep.subr.bf16.mxu1 %v716_v57 }
  0xcc   : > { %760 = vmatpush1.bf16.msra.mxu1 %v715_v0 }
  0xcd   : > { %761 = vmatprep.subr.bf16.mxu1 %v718_v8 }
  0xd0   : > { %762 = vmatpush1.bf16.msra.mxu1 %v717_v15 }
  0xd1   : > { %763 = vmatprep.subr.bf16.mxu1 %v720_v19 }
  0xd4   : > { %764 = vmatpush1.bf16.msra.mxu1 %v719_v23 }
 0x14e   : > { %v433_v24 = vpop.xlane.xlu0 %432 }
 0x14f   : > { %v434_v25 = vmul.f32 0.00390625, %v433_v24 }
 0x151   : > { %v435_v26 = vadd.f32 1e-05, %v434_v25 }
 0x153   : > { %1047 = vrsqrt.f32 %v435_v26 }
 0x15d   : > { %v1048_v35 = vpop.eup %1047 }
 0x15e   : > { %v444_v36 = vrot.slane %v1048_v35, %v1489_v55  ;;  %v721_v55 = vld [vmem:[%s1785_s6] sm:$0x3] }
 0x15f   : > { %v726_v45 = vrot.slane %v721_v55, %v450_v27  ;;  %v730_v47 = vrot.slane %v721_v55, %v454_v28 }
 0x160   : > { %v446_v38 = vmul.f32 %v444_v36, %v1493_v59  ;;  %v577_v59 = vrot.slane %v572_v44, %v450_v27 }
 0x162   : > { %v458_v39 = vmul.f32 %v456_v37, %v446_v38 }
 0x164   : > { %v470_v40 = vadd.f32 %v468_v54, %v458_v39 }
 0x166   : > { %v472_v41 = vcombine.high %v470_v40, %v470_v40  ;;  %v474_v43 = vpack.c.bf16 %v470_v40, %v470_v40 }
 0x168   : > { %v475_v42 = vpack.c.bf16 %v472_v41, %v472_v41 }
 0x16a   : > { %616 = vmatprep.mubr.bf16.mxu0 %v475_v42  ;;  %765 = vmatprep.mubr.bf16.mxu1 %v475_v42 }
 0x16b   : > { %617 = vmatmul.mubr.bf16.vlgmr.msra.gmra.mrb[0].mxu0 %v474_v43  ;;  %766 = vmatmul.mubr.bf16.vlgmr.msra.gmra.mrb[0].mxu1 %v474_v43 }
 0x23e   : > { %v618_v48 = vpop.f32.mrb[0].mxu0  ;;  %v767_v49 = vpop.f32.mrb[0].mxu1 }
 0x23f   : > { %v1688_v50 = vadd.f32 %v618_v48, %v577_v59  ;;  %v768_v51 = vadd.f32 %v767_v49, %v726_v45  ;;  %v620_v52 = vpop.f32.mrb[1].mxu0  ;;  %v769_v53 = vpop.f32.mrb[1].mxu1 }
 0x240   : > { %v1690_v56 = vadd.f32 %v620_v52, %v581_v46  ;;  %v770_v57 = vadd.f32 %v769_v53, %v730_v47  ;;  %v622_v58 = vpop.f32.mrb[2].mxu0  ;;  %v771_v60 = vpop.f32.mrb[2].mxu1 }
 0x241   : > { %v775_v61 = vmul.f32 0.5, %v768_v51  ;;  %v623_v62 = vpop.f32.mrb[3].mxu0  ;;  %v772_v63 = vpop.f32.mrb[3].mxu1 }
 0x242   : > { %v793_v1 = vcombine.low %v1688_v50, %v1690_v56  ;;  %v776_v2 = vmul.f32 0.5, %v770_v57  ;;  %v798_v3 = vcombine.low %v768_v51, %v770_v57 }
 0x243   : > { %v777_v0 = vmul.f32 1.442695, %v775_v61 }
 0x244   : > { %v779_v4 = vmul.f32 1.442695, %v776_v2  ;;  %795 = vst [vmem:[%s371_s28] sm:$0xff] %v793_v1  ;;  %800 = vst [vmem:[%s378_s29] sm:$0xff] %v798_v3 }
 0x245   : > { %1049 = vpow2.f32 %v777_v0 }
 0x246   : > { %1066 = shalt.err (!%p1063_p3)
}
 0x247   : > { %s1067_s27 = scalar_lea.hbm %s1695_s11, 128  ;;  %s1071_s12 = scalar_lea.hbm %s1787_s8, 256 }
 0x248   : > { %p1068_p4 = scmp.ne.s32.totalorder %s1695_s11, %s1067_s27  ;;  %p1072_p9 = scmp.lt.u32.totalorder %s1695_s11, %s1787_s8 }
 0x249   : > { %p1073_p10 = scmp.lt.u32.totalorder %s1071_s12, %s1067_s27  ;;  %p1075_p12 = scmp.lt.u32.totalorder %s1067_s27, %s1695_s11 }
 0x24a   : > { %p1069_p7 = pnand %p1068_p4, %p1245_p5 }
 0x24b   : > { %p1074_p11 = por %p1073_p10, %p1072_p9 }
 0x24c   : > { %p1070_p8 = pneg %p1069_p7 }
 0x24d   : > { %p1076_p13 = por %p1075_p12, %p1074_p11 }
 0x24f   : > { %p1077_p0 = pnand %p1076_p13, %p1070_p8 }
 0x251   : > { %1080 = shalt.err (!%p1077_p0)
}
 0x252   : > { %1001 = dma.vmem_to_hbm [thread:$0]  (%p1245_p5), %s1699_s0, 128, %s1695_s11, %s807_s25   ;;  %1051 = vpow2.f32 %v779_v4 }
 0x253   : > { %s812_s2 = scalar_lea.sflag [#allocation5], %s1684_s21  ;;  %s1081_s30 = scalar_lea.vmem %s1706_s22, 128 }
 0x254   : > { %p1082_p1 = scmp.ne.s32.totalorder %s1706_s22, %s1081_s30  ;;  %s1151_s17 = smov [#allocation4]  }
 0x255   : > { %s1085_s27 = sshll.u32 %s1151_s17, 4  ;;  %s1086_s27 = int_to_ptr.vmem [resolvable:$false] %s1085_s27 }
 0x256   : > { %p1083_p2 = pnand %p1082_p1, %p1245_p5  ;;  %s1087_s28 = scalar_lea.vmem %s1086_s27, 256 }
 0x257   : > { %p1088_p4 = scmp.lt.s32.totalorder %s1706_s22, %s1086_s27  ;;  %p1089_p7 = scmp.lt.s32.totalorder %s1087_s28, %s1081_s30 }
 0x258   : > { %p1084_p3 = pneg %p1083_p2 }
 0x259   : > { %p1090_p8 = por %p1089_p7, %p1088_p4 }
 0x25b   : > { %p1091_p9 = pnand %p1090_p8, %p1084_p3 }
 0x25d   : > { %1094 = shalt.err (!%p1091_p9)
}
 0x25e   : > { %s1095_s21 = scalar_lea.hbm %s1704_s20, 128  ;;  %s1099_s25 = scalar_lea.hbm %s1788_s9, 256 }
 0x25f   : > { %p1096_p10 = scmp.ne.s32.totalorder %s1704_s20, %s1095_s21  ;;  %p1100_p13 = scmp.lt.u32.totalorder %s1704_s20, %s1788_s9 }
 0x260   : > { %p1101_p0 = scmp.lt.u32.totalorder %s1099_s25, %s1095_s21  ;;  %p1103_p2 = scmp.lt.u32.totalorder %s1095_s21, %s1704_s20 }
 0x261   : > { %p1097_p11 = pnand %p1096_p10, %p1245_p5 }
 0x262   : > { %p1102_p1 = por %p1101_p0, %p1100_p13 }
 0x263   : > { %p1098_p12 = pneg %p1097_p11 }
 0x264   : > { %p1104_p3 = por %p1103_p2, %p1102_p1 }
 0x266   : > { %p1105_p4 = pnand %p1104_p3, %p1098_p12 }
 0x268   : > { %1108 = shalt.err (!%p1105_p4)
}
 0x269   : > { %1002 = dma.vmem_to_hbm [thread:$0]  (%p1245_p5), %s1706_s22, 128, %s1704_s20, %s812_s2   ;;  %v1050_v5 = vpop.eup %1049 }
 0x26a   : > { %s395_s30 = scalar_lea.vmem %s1786_s7, %s1257_s26  ;;  %v1052_v6 = vpop.eup %1051  ;;  %s400_s27 = scalar_lea.vmem %s1789_s10, %s1257_s26 }
 0x26b   : > { %v774_v7 = vld [vmem:[%s395_s30] sm:$0xff]  ;;  %v783_v8 = vcombine.low %v1050_v5, %v1052_v6 }
 0x26d   : > { %v785_v9 = vmul.f32 %v783_v8, %v774_v7 }
 0x26f   : > { %v787_v10 = vcombine.high %v785_v9, %v785_v9  ;;  %v789_v11 = vadd.f32 %v785_v9, %v1688_v50 }
 0x271   : > { %v790_v12 = vadd.f32 %v787_v10, %v1690_v56 }
 0x273   : > { %v803_v13 = vcombine.low %v789_v11, %v790_v12 }
 0x275   : > { %805 = vst [vmem:[%s400_s27] sm:$0xff] %v803_v13 }
 0x276 PF: > { %p1012_p5 = scmp.ge.s32.totalorder %s1147_s16, 2  ;;  %s860_s22 = sand.u32 1, %s1135_s13  }
 0x277   : > { %s861_s20 = scalar_lea.sflag [#allocation3], %s860_s22 }
 0x278   : > { %p1006_p7 = pnand %p1012_p5, %p1249_p6 }
 0x27a   : > { %1126 = dma.done.wait (!%p1006_p7), %s861_s20, 128  }
 0x27b   : > { %1128 = vsyncadd (!%p1006_p7), %s861_s20, 4294967168  ;;  %s870_s2 = scalar_lea.sflag [#allocation5], %s860_s22 }
 0x27c   : > { %1130 = dma.done.wait (!%p1006_p7), %s870_s2, 128  }
 0x27d   : > { %1132 = vsyncadd (!%p1006_p7), %s870_s2, 4294967168  ;;  %s1799_s26 = sld [smem:[#allocation8_spill]]  ;;  %p24_p8 = scmp.ge.s32.totalorder %s1232_s19, 4  }
 0x27e   : > { %s1800_s13 = smov %s1139_s14  ;;  %s1801_s14 = smov %s1143_s15 }
 0x27f   : > { %s1803_s16 = smov %s1232_s19  ;;  %26 = sbr.rel (!%p24_p8) target bundleno = 9 (0x9), region = 119 }
 0x283   : > { %s1802_s15 = smov %s1799_s26 }
 0x286   :  { %883 = vsyncpa [#allocation3], 1 }
 0x287   :  { %885 = vsyncpa [#allocation3 + $0x1], 1 }
 0x288   :  { %886 = vsyncpa [#allocation5], 1 }
 0x289   :  { %888 = vsyncpa [#allocation5 + $0x1], 1 }

// kernel: forward.23
= control target key start
LH: loop header
LB: loop body
LE: loop exit
PB: predicated region body
PF: predicated region fallthrough
CT: control target
= control target key end

     0   :  { %s1029_s18 = smov 0   ;;  %s1873_s0 = inlined_call_operand.vmem [shape: f32[2,4,256], index: 0, kind: input, shape index: {}]   ;;  %s1874_s1 = inlined_call_operand.vmem [shape: f32[1,256], index: 1, kind: input, shape index: {}]   ;;  %s1875_s2 = inlined_call_operand.vmem [shape: f32[1,256], index: 2, kind: input, shape index: {}]   ;;  %s1876_s3 = inlined_call_operand.vmem [shape: f32[256,1024], index: 3, kind: input, shape index: {}]   ;;  %s1877_s4 = inlined_call_operand.vmem [shape: f32[1,1024], index: 4, kind: input, shape index: {}]   ;;  %s1878_s5 = inlined_call_operand.vmem [shape: f32[2,4,1024], index: 5, kind: output, shape index: {}]  }
   0x1 LB: > { %s965_s19 = sadd.s32 4294967295, %s996_s18   ;;  %p969_p0 = scmp.ge.s32.totalorder %s996_s18, 1  ;;  %s996_s18 = sphi %s1029_s18, %s15_s18  }
   0x2   : > { %p187_p1 = scmp.lt.s32.totalorder %s996_s18, 3 }
   0x4   : > { %p188_p2 = pnand %p969_p0, %p187_p1 }
   0x5   : > { %p215_p3 = scmp.lt.s32.totalorder (!%p188_p2), %s965_s19, 1  ;;  %vm231_vm0 = vcmask (!%p188_p2), 1043456   ;;  %v301_v5 = vld [vmem:[%s1876_s3 + $0x8] sm:$0xff] (!%p188_p2)  ;;  %v303_v7 = vld [vmem:[%s1876_s3 + $0x18] sm:$0xff] (!%p188_p2)  ;;  %v300_v10 = vld [vmem:[%s1876_s3] sm:$0xff] (!%p188_p2) }
   0x6   : > { %191 = sbr.rel (%p188_p2) target bundleno = 629 (0x275), region = 40  ;;  %v309_v6 = vld [vmem:[%s1876_s3 + $0x48] sm:$0xff] (!%p188_p2)  ;;  %v311_v9 = vld [vmem:[%s1876_s3 + $0x58] sm:$0xff] (!%p188_p2)  ;;  %v308_v11 = vld [vmem:[%s1876_s3 + $0x40] sm:$0xff] (!%p188_p2) }
   0x7   : > { %v557_v8 = vpack.c.bf16 (!%p188_p2), %v309_v6, %v301_v5  ;;  %v559_v12 = vpack.c.bf16 (!%p188_p2), %v311_v9, %v303_v7  ;;  %v556_v13 = vpack.c.bf16 (!%p188_p2), %v308_v11, %v300_v10  ;;  %v302_v14 = vld [vmem:[%s1876_s3 + $0x10] sm:$0xff] (!%p188_p2)  ;;  %v317_v16 = vld [vmem:[%s1876_s3 + $0x88] sm:$0xff] (!%p188_p2)  ;;  %v319_v19 = vld [vmem:[%s1876_s3 + $0x98] sm:$0xff] (!%p188_p2) }
   0x8   : > { %v310_v15 = vld [vmem:[%s1876_s3 + $0x50] sm:$0xff] (!%p188_p2)  ;;  %v325_v18 = vld [vmem:[%s1876_s3 + $0xc8] sm:$0xff] (!%p188_p2)  ;;  %v327_v20 = vld [vmem:[%s1876_s3 + $0xd8] sm:$0xff] (!%p188_p2) }
   0x9   : > { %726 = vmatprep.subr.bf16.mxu0 (!%p188_p2), %v557_v8  ;;  %v558_v17 = vpack.c.bf16 (!%p188_p2), %v310_v15, %v302_v14  ;;  %767 = vmatprep.subr.bf16.mxu1 (!%p188_p2), %v559_v12  ;;  %v565_v21 = vpack.c.bf16 (!%p188_p2), %v325_v18, %v317_v16  ;;  %v567_v22 = vpack.c.bf16 (!%p188_p2), %v327_v20, %v319_v19  ;;  %v316_v23 = vld [vmem:[%s1876_s3 + $0x80] sm:$0xff] (!%p188_p2)  ;;  %v318_v25 = vld [vmem:[%s1876_s3 + $0x90] sm:$0xff] (!%p188_p2)  ;;  %v333_v28 = vld [vmem:[%s1876_s3 + $0x108] sm:$0xff] (!%p188_p2) }
   0xa   : > { %727 = vmatpush1.bf16.msra.mxu0 (!%p188_p2), %v556_v13  ;;  %v324_v24 = vld [vmem:[%s1876_s3 + $0xc0] sm:$0xff] (!%p188_p2)  ;;  %v326_v27 = vld [vmem:[%s1876_s3 + $0xd0] sm:$0xff] (!%p188_p2)  ;;  %v341_v29 = vld [vmem:[%s1876_s3 + $0x148] sm:$0xff] (!%p188_p2) }
   0xb   : > { %768 = vmatpush1.bf16.msra.mxu1 (!%p188_p2), %v558_v17  ;;  %v564_v26 = vpack.c.bf16 (!%p188_p2), %v324_v24, %v316_v23  ;;  %728 = vmatprep.subr.bf16.mxu0 (!%p188_p2), %v565_v21  ;;  %v566_v30 = vpack.c.bf16 (!%p188_p2), %v326_v27, %v318_v25  ;;  %v573_v31 = vpack.c.bf16 (!%p188_p2), %v341_v29, %v333_v28  ;;  %v335_v32 = vld [vmem:[%s1876_s3 + $0x118] sm:$0xff] (!%p188_p2)  ;;  %v332_v34 = vld [vmem:[%s1876_s3 + $0x100] sm:$0xff] (!%p188_p2)  ;;  %v334_v37 = vld [vmem:[%s1876_s3 + $0x110] sm:$0xff] (!%p188_p2) }
   0xc   : > { %769 = vmatprep.subr.bf16.mxu1 (!%p188_p2), %v567_v22  ;;  %v343_v33 = vld [vmem:[%s1876_s3 + $0x158] sm:$0xff] (!%p188_p2)  ;;  %v340_v36 = vld [vmem:[%s1876_s3 + $0x140] sm:$0xff] (!%p188_p2)  ;;  %v342_v38 = vld [vmem:[%s1876_s3 + $0x150] sm:$0xff] (!%p188_p2) }
   0xd   : > { %s1880_s19 = smov (!%p215_p3, %s965_s19), 1  ;;  %v575_v35 = vpack.c.bf16 %v343_v33, %v335_v32  ;;  %v572_v39 = vpack.c.bf16 %v340_v36, %v332_v34  ;;  %v349_v40 = vld [vmem:[%s1876_s3 + $0x188] sm:$0xff]  ;;  %v351_v42 = vld [vmem:[%s1876_s3 + $0x198] sm:$0xff]  ;;  %v574_v43 = vpack.c.bf16 %v342_v38, %v334_v37  ;;  %v348_v46 = vld [vmem:[%s1876_s3 + $0x180] sm:$0xff] }
   0xe   : > { %s976_s20 = sshll.u32 %s1880_s19, 3  ;;  %729 = vmatpush1.bf16.msra.mxu0 %v564_v26  ;;  %v357_v41 = vld [vmem:[%s1876_s3 + $0x1c8] sm:$0xff]  ;;  %v359_v45 = vld [vmem:[%s1876_s3 + $0x1d8] sm:$0xff]  ;;  %v356_v47 = vld [vmem:[%s1876_s3 + $0x1c0] sm:$0xff]  ;;  %s977_s11 = sshll.u32 %s1880_s19, 5 }
   0xf   : > { %s219_s23 = scalar_lea.vmem %s1873_s0, %s976_s20  ;;  %770 = vmatpush1.bf16.msra.mxu1 %v566_v30  ;;  %730 = vmatprep.subr.bf16.mxu0 %v573_v31  ;;  %v581_v44 = vpack.c.bf16 %v357_v41, %v349_v40  ;;  %v583_v48 = vpack.c.bf16 %v359_v45, %v351_v42  ;;  %v350_v49 = vld [vmem:[%s1876_s3 + $0x190] sm:$0xff]  ;;  %v365_v51 = vld [vmem:[%s1876_s3 + $0x208] sm:$0xff]  ;;  %v367_v53 = vld [vmem:[%s1876_s3 + $0x218] sm:$0xff]  ;;  %v580_v55 = vpack.c.bf16 %v356_v47, %v348_v46  ;;  %s224_s14 = scalar_lea.vmem %s1878_s5, %s977_s11 }
  0x10   : > { %v1043_v0 = vld [vmem:[%s219_s23] sm:$0xff]  ;;  %771 = vmatprep.subr.bf16.mxu1 %v575_v35  ;;  %v358_v50 = vld [vmem:[%s1876_s3 + $0x1d0] sm:$0xff]  ;;  %v373_v52 = vld [vmem:[%s1876_s3 + $0x248] sm:$0xff] }
  0x11   : > { %v229_v1 = vcombine.high %v1043_v0, %v1043_v0  ;;  %v232_v2 = vsel %vm231_vm0, %v1043_v0, 0.0  ;;  %v375_v54 = vld [vmem:[%s1876_s3 + $0x258] sm:$0xff]  ;;  %v582_v56 = vpack.c.bf16 %v358_v50, %v350_v49  ;;  %v589_v57 = vpack.c.bf16 %v373_v52, %v365_v51  ;;  %v364_v58 = vld [vmem:[%s1876_s3 + $0x200] sm:$0xff]  ;;  %v366_v60 = vld [vmem:[%s1876_s3 + $0x210] sm:$0xff] }
  0x12   : > { %731 = vmatpush1.bf16.msra.mxu0 %v572_v39  ;;  %v372_v59 = vld [vmem:[%s1876_s3 + $0x240] sm:$0xff]  ;;  %v591_v61 = vpack.c.bf16 %v375_v54, %v367_v53  ;;  %v374_v62 = vld [vmem:[%s1876_s3 + $0x250] sm:$0xff]  ;;  %v381_v63 = vld [vmem:[%s1876_s3 + $0x288] sm:$0xff] }
  0x13   : > { %v233_v3 = vsel %vm231_vm0, %v229_v1, 0.0  ;;  %772 = vmatpush1.bf16.msra.mxu1 %v574_v43  ;;  %732 = vmatprep.subr.bf16.mxu0 %v581_v44  ;;  %v389_v1 = vld [vmem:[%s1876_s3 + $0x2c8] sm:$0xff]  ;;  %v590_v5 = vpack.c.bf16 %v374_v62, %v366_v60  ;;  %v380_v7 = vld [vmem:[%s1876_s3 + $0x280] sm:$0xff]  ;;  %v382_v9 = vld [vmem:[%s1876_s3 + $0x290] sm:$0xff] }
  0x14   : > { %v234_v4 = vadd.f32 %v233_v3, %v232_v2  ;;  %773 = vmatprep.subr.bf16.mxu1 %v583_v48  ;;  %v383_v2 = vld [vmem:[%s1876_s3 + $0x298] sm:$0xff]  ;;  %v597_v6 = vpack.c.bf16 %v389_v1, %v381_v63  ;;  %v388_v8 = vld [vmem:[%s1876_s3 + $0x2c0] sm:$0xff]  ;;  %v390_v11 = vld [vmem:[%s1876_s3 + $0x2d0] sm:$0xff] }
  0x15   : > { %v391_v3 = vld [vmem:[%s1876_s3 + $0x2d8] sm:$0xff]  ;;  %v397_v12 = vld [vmem:[%s1876_s3 + $0x308] sm:$0xff]  ;;  %v596_v16 = vpack.c.bf16 %v388_v8, %v380_v7  ;;  %v598_v17 = vpack.c.bf16 %v390_v11, %v382_v9  ;;  %v396_v19 = vld [vmem:[%s1876_s3 + $0x300] sm:$0xff] }
  0x16   : > { %235 = vadd.xlane.f32.xlu0 %v234_v4  ;;  %733 = vmatpush1.bf16.msra.mxu0 %v580_v55  ;;  %v588_v4 = vpack.c.bf16 %v372_v59, %v364_v58  ;;  %v599_v10 = vpack.c.bf16 %v391_v3, %v383_v2  ;;  %v405_v13 = vld [vmem:[%s1876_s3 + $0x348] sm:$0xff]  ;;  %v399_v14 = vld [vmem:[%s1876_s3 + $0x318] sm:$0xff]  ;;  %v404_v20 = vld [vmem:[%s1876_s3 + $0x340] sm:$0xff]  ;;  %v243_v58 = vlaneseq }
  0x17   : > { %774 = vmatpush1.bf16.msra.mxu1 %v582_v56  ;;  %734 = vmatprep.subr.bf16.mxu0 %v589_v57  ;;  %v407_v15 = vld [vmem:[%s1876_s3 + $0x358] sm:$0xff]  ;;  %v605_v18 = vpack.c.bf16 %v405_v13, %v397_v12  ;;  %v398_v21 = vld [vmem:[%s1876_s3 + $0x310] sm:$0xff]  ;;  %v413_v24 = vld [vmem:[%s1876_s3 + $0x388] sm:$0xff]  ;;  %v604_v28 = vpack.c.bf16 %v404_v20, %v396_v19  ;;  %v998_v56 = vmov 839922192  }
  0x18   : > { %775 = vmatprep.subr.bf16.mxu1 %v591_v61  ;;  %v607_v22 = vpack.c.bf16 %v407_v15, %v399_v14  ;;  %v406_v23 = vld [vmem:[%s1876_s3 + $0x350] sm:$0xff]  ;;  %v421_v25 = vld [vmem:[%s1876_s3 + $0x3c8] sm:$0xff]  ;;  %v415_v26 = vld [vmem:[%s1876_s3 + $0x398] sm:$0xff]  ;;  %v241_v57 = vunpack.c.l.s4 %v998_v56  ;;  %v1278_v60 = vshrl.u32 %v243_v58, 7 }
  0x19   : > { %v423_v27 = vld [vmem:[%s1876_s3 + $0x3d8] sm:$0xff]  ;;  %v606_v29 = vpack.c.bf16 %v406_v23, %v398_v21  ;;  %v613_v30 = vpack.c.bf16 %v421_v25, %v413_v24  ;;  %v412_v31 = vld [vmem:[%s1876_s3 + $0x380] sm:$0xff]  ;;  %v414_v33 = vld [vmem:[%s1876_s3 + $0x390] sm:$0xff] }
  0x1a   : > { %735 = vmatpush1.bf16.msra.mxu0 %v588_v4  ;;  %v420_v32 = vld [vmem:[%s1876_s3 + $0x3c0] sm:$0xff]  ;;  %v615_v34 = vpack.c.bf16 %v423_v27, %v415_v26  ;;  %v422_v35 = vld [vmem:[%s1876_s3 + $0x3d0] sm:$0xff]  ;;  %v429_v36 = vld [vmem:[%s1876_s3 + $0x408] sm:$0xff]  ;;  %v242_v59 = vunpack.c.0.s8 %v241_v57 }
  0x1b   : > { %776 = vmatpush1.bf16.msra.mxu1 %v590_v5  ;;  %736 = vmatprep.subr.bf16.mxu0 %v597_v6  ;;  %v437_v37 = vld [vmem:[%s1876_s3 + $0x448] sm:$0xff]  ;;  %v431_v38 = vld [vmem:[%s1876_s3 + $0x418] sm:$0xff]  ;;  %v612_v40 = vpack.c.bf16 %v420_v32, %v412_v31  ;;  %v614_v41 = vpack.c.bf16 %v422_v35, %v414_v33  ;;  %v428_v43 = vld [vmem:[%s1876_s3 + $0x400] sm:$0xff] }
  0x1c   : > { %777 = vmatprep.subr.bf16.mxu1 %v599_v10  ;;  %v439_v39 = vld [vmem:[%s1876_s3 + $0x458] sm:$0xff]  ;;  %v621_v42 = vpack.c.bf16 %v437_v37, %v429_v36  ;;  %v436_v44 = vld [vmem:[%s1876_s3 + $0x440] sm:$0xff]  ;;  %v430_v45 = vld [vmem:[%s1876_s3 + $0x410] sm:$0xff]  ;;  %v1281_v61 = vsub.s32 %v242_v59, %v1278_v60 }
  0x1d   : > { %v623_v46 = vpack.c.bf16 %v439_v39, %v431_v38  ;;  %v438_v47 = vld [vmem:[%s1876_s3 + $0x450] sm:$0xff]  ;;  %v445_v48 = vld [vmem:[%s1876_s3 + $0x488] sm:$0xff]  ;;  %v447_v50 = vld [vmem:[%s1876_s3 + $0x498] sm:$0xff]  ;;  %v620_v52 = vpack.c.bf16 %v436_v44, %v428_v43 }
  0x1e   : > { %737 = vmatpush1.bf16.msra.mxu0 %v596_v16  ;;  %v453_v49 = vld [vmem:[%s1876_s3 + $0x4c8] sm:$0xff]  ;;  %v455_v51 = vld [vmem:[%s1876_s3 + $0x4d8] sm:$0xff]  ;;  %v622_v53 = vpack.c.bf16 %v438_v47, %v430_v45  ;;  %v444_v8 = vld [vmem:[%s1876_s3 + $0x480] sm:$0xff] }
  0x1f   : > { %778 = vmatpush1.bf16.msra.mxu1 %v598_v17  ;;  %738 = vmatprep.subr.bf16.mxu0 %v605_v18  ;;  %v629_v54 = vpack.c.bf16 %v453_v49, %v445_v48  ;;  %v631_v55 = vpack.c.bf16 %v455_v51, %v447_v50  ;;  %v452_v9 = vld [vmem:[%s1876_s3 + $0x4c0] sm:$0xff]  ;;  %v454_v11 = vld [vmem:[%s1876_s3 + $0x4d0] sm:$0xff]  ;;  %v461_v13 = vld [vmem:[%s1876_s3 + $0x508] sm:$0xff] }
  0x20   : > { %779 = vmatprep.subr.bf16.mxu1 %v607_v22  ;;  %v628_v10 = vpack.c.bf16 %v452_v9, %v444_v8  ;;  %v469_v14 = vld [vmem:[%s1876_s3 + $0x548] sm:$0xff]  ;;  %v463_v15 = vld [vmem:[%s1876_s3 + $0x518] sm:$0xff]  ;;  %v460_v18 = vld [vmem:[%s1876_s3 + $0x500] sm:$0xff] }
  0x21   : > { %v637_v16 = vpack.c.bf16 %v469_v14, %v461_v13  ;;  %v471_v17 = vld [vmem:[%s1876_s3 + $0x558] sm:$0xff]  ;;  %v468_v19 = vld [vmem:[%s1876_s3 + $0x540] sm:$0xff]  ;;  %v462_v22 = vld [vmem:[%s1876_s3 + $0x510] sm:$0xff] }
  0x22   : > { %739 = vmatpush1.bf16.msra.mxu0 %v604_v28  ;;  %v639_v20 = vpack.c.bf16 %v471_v17, %v463_v15  ;;  %v636_v21 = vpack.c.bf16 %v468_v19, %v460_v18  ;;  %v470_v23 = vld [vmem:[%s1876_s3 + $0x550] sm:$0xff]  ;;  %v477_v25 = vld [vmem:[%s1876_s3 + $0x588] sm:$0xff]  ;;  %v479_v27 = vld [vmem:[%s1876_s3 + $0x598] sm:$0xff] }
  0x23   : > { %780 = vmatpush1.bf16.msra.mxu1 %v606_v29  ;;  %740 = vmatprep.subr.bf16.mxu0 %v613_v30  ;;  %v638_v24 = vpack.c.bf16 %v470_v23, %v462_v22  ;;  %v485_v26 = vld [vmem:[%s1876_s3 + $0x5c8] sm:$0xff]  ;;  %v487_v29 = vld [vmem:[%s1876_s3 + $0x5d8] sm:$0xff]  ;;  %v476_v30 = vld [vmem:[%s1876_s3 + $0x580] sm:$0xff] }
  0x24   : > { %781 = vmatprep.subr.bf16.mxu1 %v615_v34  ;;  %v645_v28 = vpack.c.bf16 %v485_v26, %v477_v25  ;;  %v484_v31 = vld [vmem:[%s1876_s3 + $0x5c0] sm:$0xff]  ;;  %v647_v32 = vpack.c.bf16 %v487_v29, %v479_v27  ;;  %v478_v34 = vld [vmem:[%s1876_s3 + $0x590] sm:$0xff]  ;;  %v493_v37 = vld [vmem:[%s1876_s3 + $0x608] sm:$0xff] }
  0x25   : > { %v644_v33 = vpack.c.bf16 %v484_v31, %v476_v30  ;;  %v486_v35 = vld [vmem:[%s1876_s3 + $0x5d0] sm:$0xff]  ;;  %v501_v38 = vld [vmem:[%s1876_s3 + $0x648] sm:$0xff]  ;;  %v495_v39 = vld [vmem:[%s1876_s3 + $0x618] sm:$0xff] }
  0x26   : > { %741 = vmatpush1.bf16.msra.mxu0 %v612_v40  ;;  %v646_v36 = vpack.c.bf16 %v486_v35, %v478_v34  ;;  %v653_v40 = vpack.c.bf16 %v501_v38, %v493_v37  ;;  %v500_v43 = vld [vmem:[%s1876_s3 + $0x640] sm:$0xff]  ;;  %v502_v47 = vld [vmem:[%s1876_s3 + $0x650] sm:$0xff]  ;;  %v509_v49 = vld [vmem:[%s1876_s3 + $0x688] sm:$0xff]  ;;  %v1463_v34 = vsub.s32 1, %v1278_v60 }
  0x27   : > { %782 = vmatpush1.bf16.msra.mxu1 %v614_v41  ;;  %742 = vmatprep.subr.bf16.mxu0 %v621_v42  ;;  %v503_v41 = vld [vmem:[%s1876_s3 + $0x658] sm:$0xff]  ;;  %v492_v42 = vld [vmem:[%s1876_s3 + $0x600] sm:$0xff]  ;;  %v517_v50 = vld [vmem:[%s1876_s3 + $0x6c8] sm:$0xff] }
  0x28   : > { %783 = vmatprep.subr.bf16.mxu1 %v623_v46  ;;  %v655_v44 = vpack.c.bf16 %v503_v41, %v495_v39  ;;  %v652_v45 = vpack.c.bf16 %v500_v43, %v492_v42  ;;  %v494_v46 = vld [vmem:[%s1876_s3 + $0x610] sm:$0xff]  ;;  %v511_v51 = vld [vmem:[%s1876_s3 + $0x698] sm:$0xff]  ;;  %v549_v13 = vld [vmem:[%s1876_s3 + $0x7c8] sm:$0xff] }
  0x29   : > { %v654_v48 = vpack.c.bf16 %v502_v47, %v494_v46  ;;  %v510_v58 = vld [vmem:[%s1876_s3 + $0x690] sm:$0xff]  ;;  %v543_v14 = vld [vmem:[%s1876_s3 + $0x798] sm:$0xff]  ;;  %v540_v18 = vld [vmem:[%s1876_s3 + $0x780] sm:$0xff] }
  0x2a   : > { %743 = vmatpush1.bf16.msra.mxu0 %v620_v52  ;;  %v661_v52 = vpack.c.bf16 %v517_v50, %v509_v49  ;;  %v518_v59 = vld [vmem:[%s1876_s3 + $0x6d0] sm:$0xff]  ;;  %v551_v15 = vld [vmem:[%s1876_s3 + $0x7d8] sm:$0xff]  ;;  %v548_v19 = vld [vmem:[%s1876_s3 + $0x7c0] sm:$0xff] }
  0x2b   : > { %784 = vmatpush1.bf16.msra.mxu1 %v622_v53  ;;  %744 = vmatprep.subr.bf16.mxu0 %v629_v54  ;;  %v519_v53 = vld [vmem:[%s1876_s3 + $0x6d8] sm:$0xff]  ;;  %v508_v54 = vld [vmem:[%s1876_s3 + $0x680] sm:$0xff]  ;;  %v679_v17 = vpack.c.bf16 %v551_v15, %v543_v14  ;;  %v550_v22 = vld [vmem:[%s1876_s3 + $0x7d0] sm:$0xff] }
  0x2c   : > { %785 = vmatprep.subr.bf16.mxu1 %v631_v55  ;;  %v516_v55 = vld [vmem:[%s1876_s3 + $0x6c0] sm:$0xff]  ;;  %v663_v56 = vpack.c.bf16 %v519_v53, %v511_v51  ;;  %v313_v25 = vld [vmem:[%s1876_s3 + $0x68] sm:$0xff]  ;;  %v307_v26 = vld [vmem:[%s1876_s3 + $0x38] sm:$0xff] }
  0x2d   : > { %v660_v57 = vpack.c.bf16 %v516_v55, %v508_v54  ;;  %v226_v35 = vld [vmem:[%s1874_s1] sm:$0x3]  ;;  %v306_v50 = vld [vmem:[%s1876_s3 + $0x30] sm:$0xff]  ;;  %v321_v51 = vld [vmem:[%s1876_s3 + $0xa8] sm:$0xff] }
  0x2e   : > { %745 = vmatpush1.bf16.msra.mxu0 %v628_v10  ;;  %v534_v10 = vld [vmem:[%s1876_s3 + $0x750] sm:$0xff]  ;;  %v279_v38 = vrot.slane %v226_v35, %v1463_v34  ;;  %v312_v49 = vld [vmem:[%s1876_s3 + $0x60] sm:$0xff]  ;;  %v323_v53 = vld [vmem:[%s1876_s3 + $0xb8] sm:$0xff] }
  0x2f   : > { %746 = vmatprep.subr.bf16.mxu0 %v637_v16  ;;  %v331_v54 = vld [vmem:[%s1876_s3 + $0xf8] sm:$0xff]  ;;  %v338_v14 = vld [vmem:[%s1876_s3 + $0x130] sm:$0xff] }
  0x30   : > { %v346_v15 = vld [vmem:[%s1876_s3 + $0x170] sm:$0xff] }
  0x32   : > { %747 = vmatpush1.bf16.msra.mxu0 %v636_v21  ;;  %v676_v21 = vpack.c.bf16 %v548_v19, %v540_v18  ;;  %v355_v18 = vld [vmem:[%s1876_s3 + $0x1b8] sm:$0xff] }
  0x33   : > { %748 = vmatprep.subr.bf16.mxu0 %v645_v28  ;;  %v315_v28 = vld [vmem:[%s1876_s3 + $0x78] sm:$0xff] }
  0x34   : > { %v563_v29 = vpack.c.bf16 %v315_v28, %v307_v26  ;;  %v363_v19 = vld [vmem:[%s1876_s3 + $0x1f8] sm:$0xff]  ;;  %v354_v26 = vld [vmem:[%s1876_s3 + $0x1b0] sm:$0xff]  ;;  %v369_v28 = vld [vmem:[%s1876_s3 + $0x228] sm:$0xff] }
  0x36   : > { %749 = vmatpush1.bf16.msra.mxu0 %v644_v33  ;;  %v1460_v33 = vsub.s32 0, %v1278_v60 }
  0x37   : > { %750 = vmatprep.subr.bf16.mxu0 %v653_v40 }
  0x38   : > { %v275_v37 = vrot.slane %v226_v35, %v1460_v33 }
  0x3a   : > { %751 = vmatpush1.bf16.msra.mxu0 %v652_v45  ;;  %v280_v43 = vcombine.low %v275_v37, %v279_v38  ;;  %v376_v37 = vld [vmem:[%s1876_s3 + $0x260] sm:$0xff] }
  0x3b   : > { %752 = vmatprep.subr.bf16.mxu0 %v661_v52  ;;  %v329_v52 = vld [vmem:[%s1876_s3 + $0xe8] sm:$0xff] }
  0x3e   : > { %753 = vmatpush1.bf16.msra.mxu0 %v660_v57 }
  0xa3   : > { %v236_v62 = vpop.xlane.xlu0 %235 }
  0xa4   : > { %v238_v63 = vmul.f32 0.00390625, %v236_v62  ;;  %v662_v62 = vpack.c.bf16 %v518_v59, %v510_v58  ;;  %v320_v58 = vld [vmem:[%s1876_s3 + $0xa0] sm:$0xff] }
  0xa5   : > { %v328_v59 = vld [vmem:[%s1876_s3 + $0xe0] sm:$0xff] }
  0xa6   : > { %v246_v1 = vrot.slane %v238_v63, %v1281_v61  ;;  %v525_v63 = vld [vmem:[%s1876_s3 + $0x708] sm:$0xff] }
  0xa8   : > { %v1285_v2 = vsub.f32 %v1043_v0, %v246_v1  ;;  %v446_v0 = vld [vmem:[%s1876_s3 + $0x490] sm:$0xff]  ;;  %v533_v1 = vld [vmem:[%s1876_s3 + $0x748] sm:$0xff] }
  0xa9   : > { %v630_v12 = vpack.c.bf16 %v454_v11, %v446_v0  ;;  %v526_v0 = vld [vmem:[%s1876_s3 + $0x710] sm:$0xff]  ;;  %v541_v11 = vld [vmem:[%s1876_s3 + $0x788] sm:$0xff] }
  0xaa   : > { %v249_v3 = vmul.f32 %v1285_v2, %v1285_v2  ;;  %v677_v16 = vpack.c.bf16 %v549_v13, %v541_v11  ;;  %v344_v11 = vld [vmem:[%s1876_s3 + $0x160] sm:$0xff] }
  0xab   : > { %786 = vmatpush1.bf16.msra.mxu1 %v630_v12  ;;  %v670_v12 = vpack.c.bf16 %v534_v10, %v526_v0  ;;  %v336_v10 = vld [vmem:[%s1876_s3 + $0x120] sm:$0xff] }
  0xac   : > { %v251_v4 = vcombine.high %v249_v3, %v249_v3  ;;  %v253_v5 = vsel %vm231_vm0, %v249_v3, 0.0  ;;  %787 = vmatprep.subr.bf16.mxu1 %v639_v20  ;;  %v527_v3 = vld [vmem:[%s1876_s3 + $0x718] sm:$0xff]  ;;  %v542_v20 = vld [vmem:[%s1876_s3 + $0x790] sm:$0xff] }
  0xad   : > { %v678_v23 = vpack.c.bf16 %v550_v22, %v542_v20  ;;  %v576_v20 = vpack.c.bf16 %v344_v11, %v336_v10  ;;  %v352_v22 = vld [vmem:[%s1876_s3 + $0x1a0] sm:$0xff] }
  0xae   : > { %v254_v6 = vsel %vm231_vm0, %v251_v4, 0.0  ;;  %v669_v4 = vpack.c.bf16 %v533_v1, %v525_v63  ;;  %v322_v63 = vld [vmem:[%s1876_s3 + $0xb0] sm:$0xff]  ;;  %v416_v10 = vld [vmem:[%s1876_s3 + $0x3a0] sm:$0xff] }
  0xaf   : > { %v255_v7 = vadd.f32 %v254_v6, %v253_v5  ;;  %788 = vmatpush1.bf16.msra.mxu1 %v638_v24  ;;  %v535_v5 = vld [vmem:[%s1876_s3 + $0x758] sm:$0xff]  ;;  %v524_v6 = vld [vmem:[%s1876_s3 + $0x700] sm:$0xff]  ;;  %v305_v24 = vld [vmem:[%s1876_s3 + $0x28] sm:$0xff] }
  0xb0   : > { %789 = vmatprep.subr.bf16.mxu1 %v647_v32  ;;  %v671_v8 = vpack.c.bf16 %v535_v5, %v527_v3  ;;  %754 = vmatprep.subr.bf16.mxu0 %v669_v4  ;;  %v561_v27 = vpack.c.bf16 %v313_v25, %v305_v24  ;;  %v330_v1 = vld [vmem:[%s1876_s3 + $0xf0] sm:$0xff]  ;;  %v337_v3 = vld [vmem:[%s1876_s3 + $0x128] sm:$0xff]  ;;  %v569_v4 = vpack.c.bf16 %v329_v52, %v321_v51  ;;  %v424_v11 = vld [vmem:[%s1876_s3 + $0x3e0] sm:$0xff] }
  0xb1   : > { %256 = vadd.xlane.f32.xlu0 %v255_v7  ;;  %v532_v7 = vld [vmem:[%s1876_s3 + $0x740] sm:$0xff]  ;;  %v571_v5 = vpack.c.bf16 %v331_v54, %v323_v53  ;;  %v570_v0 = vpack.c.bf16 %v330_v1, %v322_v63  ;;  %v587_v25 = vpack.c.bf16 %v363_v19, %v355_v18  ;;  %v394_v51 = vld [vmem:[%s1876_s3 + $0x2f0] sm:$0xff]  ;;  %v401_v52 = vld [vmem:[%s1876_s3 + $0x328] sm:$0xff] }
  0xb2   : > { %v668_v9 = vpack.c.bf16 %v532_v7, %v524_v6  ;;  %v345_v6 = vld [vmem:[%s1876_s3 + $0x168] sm:$0xff]  ;;  %v339_v7 = vld [vmem:[%s1876_s3 + $0x138] sm:$0xff] }
  0xb3   : > { %790 = vmatpush1.bf16.msra.mxu1 %v646_v36  ;;  %v227_v36 = vld [vmem:[%s1875_s2] sm:$0x3]  ;;  %v409_v53 = vld [vmem:[%s1876_s3 + $0x368] sm:$0xff]  ;;  %v403_v54 = vld [vmem:[%s1876_s3 + $0x338] sm:$0xff] }
  0xb4   : > { %791 = vmatprep.subr.bf16.mxu1 %v655_v44  ;;  %755 = vmatpush1.bf16.msra.mxu0 %v668_v9  ;;  %v287_v39 = vrot.slane %v227_v36, %v1460_v33  ;;  %v291_v40 = vrot.slane %v227_v36, %v1463_v34  ;;  %v568_v9 = vpack.c.bf16 %v328_v59, %v320_v58  ;;  %v368_v36 = vld [vmem:[%s1876_s3 + $0x220] sm:$0xff]  ;;  %v435_v18 = vld [vmem:[%s1876_s3 + $0x438] sm:$0xff] }
  0xb5   : > { %756 = vmatprep.subr.bf16.mxu0 %v677_v16  ;;  %v353_v16 = vld [vmem:[%s1876_s3 + $0x1a8] sm:$0xff]  ;;  %v400_v58 = vld [vmem:[%s1876_s3 + $0x320] sm:$0xff]  ;;  %v609_v63 = vpack.c.bf16 %v409_v53, %v401_v52  ;;  %v443_v19 = vld [vmem:[%s1876_s3 + $0x478] sm:$0xff] }
  0xb6   : > { %v292_v45 = vcombine.low %v287_v39, %v291_v40  ;;  %v370_v40 = vld [vmem:[%s1876_s3 + $0x230] sm:$0xff]  ;;  %v408_v59 = vld [vmem:[%s1876_s3 + $0x360] sm:$0xff]  ;;  %v481_v52 = vld [vmem:[%s1876_s3 + $0x5a8] sm:$0xff] }
  0xb7   : > { %792 = vmatpush1.bf16.msra.mxu1 %v654_v48  ;;  %v304_v48 = vld [vmem:[%s1876_s3 + $0x20] sm:$0xff]  ;;  %v489_v53 = vld [vmem:[%s1876_s3 + $0x5e8] sm:$0xff] }
  0xb8   : > { %793 = vmatprep.subr.bf16.mxu1 %v663_v56  ;;  %757 = vmatpush1.bf16.msra.mxu0 %v676_v21  ;;  %v560_v56 = vpack.c.bf16 %v312_v49, %v304_v48  ;;  %v578_v21 = vpack.c.bf16 %v346_v15, %v338_v14  ;;  %v384_v48 = vld [vmem:[%s1876_s3 + $0x2a0] sm:$0xff]  ;;  %v418_v14 = vld [vmem:[%s1876_s3 + $0x3b0] sm:$0xff] }
  0xb9   : > { %808 = vmatprep.subr.bf16.mxu0 %v561_v27  ;;  %v362_v27 = vld [vmem:[%s1876_s3 + $0x1f0] sm:$0xff]  ;;  %v392_v49 = vld [vmem:[%s1876_s3 + $0x2e0] sm:$0xff] }
  0xba   : > { %v586_v35 = vpack.c.bf16 %v362_v27, %v354_v26  ;;  %v426_v15 = vld [vmem:[%s1876_s3 + $0x3f0] sm:$0xff] }
  0xbb   : > { %794 = vmatpush1.bf16.msra.mxu1 %v662_v62  ;;  %v434_v26 = vld [vmem:[%s1876_s3 + $0x430] sm:$0xff] }
  0xbc   : > { %795 = vmatprep.subr.bf16.mxu1 %v671_v8  ;;  %v347_v8 = vld [vmem:[%s1876_s3 + $0x178] sm:$0xff]  ;;  %v442_v27 = vld [vmem:[%s1876_s3 + $0x470] sm:$0xff] }
  0xbd   : > { %v579_v13 = vpack.c.bf16 %v347_v8, %v339_v7  ;;  %v419_v7 = vld [vmem:[%s1876_s3 + $0x3b8] sm:$0xff] }
  0xbe   : > { %v427_v8 = vld [vmem:[%s1876_s3 + $0x3f8] sm:$0xff] }
  0xbf   : > { %796 = vmatpush1.bf16.msra.mxu1 %v670_v12  ;;  %v577_v12 = vpack.c.bf16 %v345_v6, %v337_v3  ;;  %v402_v3 = vld [vmem:[%s1876_s3 + $0x330] sm:$0xff]  ;;  %v425_v6 = vld [vmem:[%s1876_s3 + $0x3e8] sm:$0xff] }
  0xc0   : > { %797 = vmatprep.subr.bf16.mxu1 %v679_v17  ;;  %v361_v17 = vld [vmem:[%s1876_s3 + $0x1e8] sm:$0xff] }
  0xc1   : > { %v585_v24 = vpack.c.bf16 %v361_v17, %v353_v16  ;;  %v433_v16 = vld [vmem:[%s1876_s3 + $0x428] sm:$0xff] }
  0xc2   : > { %v441_v17 = vld [vmem:[%s1876_s3 + $0x468] sm:$0xff] }
  0xc3   : > { %798 = vmatpush1.bf16.msra.mxu1 %v678_v23  ;;  %v360_v23 = vld [vmem:[%s1876_s3 + $0x1e0] sm:$0xff] }
  0xc4   : > { %849 = vmatprep.subr.bf16.mxu1 %v563_v29  ;;  %v377_v29 = vld [vmem:[%s1876_s3 + $0x268] sm:$0xff] }
  0xc5   : > { %v593_v38 = vpack.c.bf16 %v377_v29, %v369_v28  ;;  %v449_v28 = vld [vmem:[%s1876_s3 + $0x4a8] sm:$0xff] }
  0xc6   : > { %v457_v29 = vld [vmem:[%s1876_s3 + $0x4e8] sm:$0xff] }
 0x13e   : > { %v257_v30 = vpop.xlane.xlu0 %256 }
 0x13f   : > { %v258_v31 = vmul.f32 0.00390625, %v257_v30  ;;  %v371_v30 = vld [vmem:[%s1876_s3 + $0x238] sm:$0xff] }
 0x141   : > { %v259_v32 = vadd.f32 1e-05, %v258_v31  ;;  %v379_v31 = vld [vmem:[%s1876_s3 + $0x278] sm:$0xff] }
 0x142   : > { %v595_v39 = vpack.c.bf16 %v379_v31, %v371_v30  ;;  %v451_v30 = vld [vmem:[%s1876_s3 + $0x4b8] sm:$0xff] }
 0x143   : > { %988 = vrsqrt.f32 %v259_v32  ;;  %v584_v32 = vpack.c.bf16 %v360_v23, %v352_v22  ;;  %v432_v22 = vld [vmem:[%s1876_s3 + $0x420] sm:$0xff]  ;;  %v459_v31 = vld [vmem:[%s1876_s3 + $0x4f8] sm:$0xff] }
 0x144   : > { %v440_v23 = vld [vmem:[%s1876_s3 + $0x460] sm:$0xff] }
 0x14d   : > { %v989_v41 = vpop.eup %988 }
 0x14e   : > { %v268_v42 = vrot.slane %v989_v41, %v1281_v61  ;;  %v314_v61 = vld [vmem:[%s1876_s3 + $0x70] sm:$0xff] }
 0x14f   : > { %v562_v57 = vpack.c.bf16 %v314_v61, %v306_v50  ;;  %v378_v41 = vld [vmem:[%s1876_s3 + $0x270] sm:$0xff] }
 0x150   : > { %v270_v44 = vmul.f32 %v268_v42, %v1285_v2  ;;  %v385_v42 = vld [vmem:[%s1876_s3 + $0x2a8] sm:$0xff] }
 0x152   : > { %v282_v46 = vmul.f32 %v280_v43, %v270_v44  ;;  %v393_v43 = vld [vmem:[%s1876_s3 + $0x2e8] sm:$0xff]  ;;  %v387_v44 = vld [vmem:[%s1876_s3 + $0x2b8] sm:$0xff] }
 0x153   : > { %v601_v50 = vpack.c.bf16 %v393_v43, %v385_v42  ;;  %v465_v42 = vld [vmem:[%s1876_s3 + $0x528] sm:$0xff] }
 0x154   : > { %v294_v47 = vadd.f32 %v292_v45, %v282_v46  ;;  %v395_v45 = vld [vmem:[%s1876_s3 + $0x2f8] sm:$0xff]  ;;  %v592_v46 = vpack.c.bf16 %v376_v37, %v368_v36  ;;  %v448_v36 = vld [vmem:[%s1876_s3 + $0x4a0] sm:$0xff]  ;;  %v473_v43 = vld [vmem:[%s1876_s3 + $0x568] sm:$0xff] }
 0x155   : > { %v603_v61 = vpack.c.bf16 %v395_v45, %v387_v44  ;;  %v456_v37 = vld [vmem:[%s1876_s3 + $0x4e0] sm:$0xff]  ;;  %v467_v44 = vld [vmem:[%s1876_s3 + $0x538] sm:$0xff] }
 0x156   : > { %v296_v2 = vcombine.high %v294_v47, %v294_v47  ;;  %v1507_v62 = vpack.c.bf16 %v294_v47, %v294_v47  ;;  %v594_v47 = vpack.c.bf16 %v378_v41, %v370_v40  ;;  %v450_v40 = vld [vmem:[%s1876_s3 + $0x4b0] sm:$0xff]  ;;  %v475_v45 = vld [vmem:[%s1876_s3 + $0x578] sm:$0xff] }
 0x157   : > { %v458_v41 = vld [vmem:[%s1876_s3 + $0x4f0] sm:$0xff] }
 0x158   : > { %v299_v55 = vpack.c.bf16 %v296_v2, %v296_v2  ;;  %v386_v2 = vld [vmem:[%s1876_s3 + $0x2b0] sm:$0xff] }
 0x15a   : > { %758 = vmatprep.mubr.bf16.mxu0 %v299_v55  ;;  %799 = vmatprep.mubr.bf16.mxu1 %v299_v55 }
 0x15b   : > { %759 = vmatmul.mubr.bf16.vlgmr.msra.gmra.mrb[0].mxu0 %v1507_v62  ;;  %800 = vmatmul.mubr.bf16.vlgmr.msra.gmra.mrb[0].mxu1 %v1507_v62 }
 0x15c   : > { %809 = vmatpush1.bf16.msra.mxu0 %v560_v56  ;;  %850 = vmatpush1.bf16.msra.mxu1 %v562_v57  ;;  %v600_v56 = vpack.c.bf16 %v392_v49, %v384_v48  ;;  %v602_v57 = vpack.c.bf16 %v394_v51, %v386_v2  ;;  %v464_v48 = vld [vmem:[%s1876_s3 + $0x520] sm:$0xff]  ;;  %v466_v2 = vld [vmem:[%s1876_s3 + $0x530] sm:$0xff] }
 0x15d   : > { %840 = vmatprep.mubr.bf16.mxu0 %v299_v55  ;;  %881 = vmatprep.mubr.bf16.mxu1 %v299_v55  ;;  %v411_v55 = vld [vmem:[%s1876_s3 + $0x378] sm:$0xff]  ;;  %v472_v49 = vld [vmem:[%s1876_s3 + $0x560] sm:$0xff]  ;;  %v474_v51 = vld [vmem:[%s1876_s3 + $0x570] sm:$0xff] }
 0x15e   : > { %810 = vmatprep.subr.bf16.mxu0 %v569_v4  ;;  %851 = vmatprep.subr.bf16.mxu1 %v571_v5  ;;  %v611_v1 = vpack.c.bf16 %v411_v55, %v403_v54  ;;  %v410_v4 = vld [vmem:[%s1876_s3 + $0x370] sm:$0xff]  ;;  %v417_v5 = vld [vmem:[%s1876_s3 + $0x3a8] sm:$0xff]  ;;  %v483_v54 = vld [vmem:[%s1876_s3 + $0x5b8] sm:$0xff] }
 0x15f   : > { %v491_v55 = vld [vmem:[%s1876_s3 + $0x5f8] sm:$0xff] }
 0x160   : > { %811 = vmatpush1.bf16.msra.mxu0 %v568_v9  ;;  %852 = vmatpush1.bf16.msra.mxu1 %v570_v0  ;;  %v608_v9 = vpack.c.bf16 %v408_v59, %v400_v58  ;;  %v610_v0 = vpack.c.bf16 %v410_v4, %v402_v3  ;;  %v480_v58 = vld [vmem:[%s1876_s3 + $0x5a0] sm:$0xff]  ;;  %v482_v3 = vld [vmem:[%s1876_s3 + $0x5b0] sm:$0xff] }
 0x161   : > { %812 = vmatprep.subr.bf16.mxu0 %v577_v12  ;;  %853 = vmatprep.subr.bf16.mxu1 %v579_v13  ;;  %v617_v12 = vpack.c.bf16 %v425_v6, %v417_v5  ;;  %v619_v13 = vpack.c.bf16 %v427_v8, %v419_v7  ;;  %v488_v59 = vld [vmem:[%s1876_s3 + $0x5e0] sm:$0xff]  ;;  %v490_v4 = vld [vmem:[%s1876_s3 + $0x5f0] sm:$0xff]  ;;  %v497_v5 = vld [vmem:[%s1876_s3 + $0x628] sm:$0xff] }
 0x162   : > { %v505_v6 = vld [vmem:[%s1876_s3 + $0x668] sm:$0xff]  ;;  %v499_v7 = vld [vmem:[%s1876_s3 + $0x638] sm:$0xff] }
 0x163   : > { %v507_v8 = vld [vmem:[%s1876_s3 + $0x678] sm:$0xff] }
 0x164   : > { %813 = vmatpush1.bf16.msra.mxu0 %v576_v20  ;;  %854 = vmatpush1.bf16.msra.mxu1 %v578_v21  ;;  %v616_v20 = vpack.c.bf16 %v424_v11, %v416_v10  ;;  %v618_v21 = vpack.c.bf16 %v426_v15, %v418_v14  ;;  %v496_v10 = vld [vmem:[%s1876_s3 + $0x620] sm:$0xff]  ;;  %v498_v14 = vld [vmem:[%s1876_s3 + $0x630] sm:$0xff] }
 0x165   : > { %814 = vmatprep.subr.bf16.mxu0 %v585_v24  ;;  %855 = vmatprep.subr.bf16.mxu1 %v587_v25  ;;  %v625_v24 = vpack.c.bf16 %v441_v17, %v433_v16  ;;  %v627_v25 = vpack.c.bf16 %v443_v19, %v435_v18  ;;  %v504_v11 = vld [vmem:[%s1876_s3 + $0x660] sm:$0xff]  ;;  %v506_v15 = vld [vmem:[%s1876_s3 + $0x670] sm:$0xff]  ;;  %v513_v16 = vld [vmem:[%s1876_s3 + $0x6a8] sm:$0xff] }
 0x166   : > { %v521_v17 = vld [vmem:[%s1876_s3 + $0x6e8] sm:$0xff]  ;;  %v515_v18 = vld [vmem:[%s1876_s3 + $0x6b8] sm:$0xff] }
 0x167   : > { %v523_v19 = vld [vmem:[%s1876_s3 + $0x6f8] sm:$0xff] }
 0x168   : > { %815 = vmatpush1.bf16.msra.mxu0 %v584_v32  ;;  %856 = vmatpush1.bf16.msra.mxu1 %v586_v35  ;;  %v624_v32 = vpack.c.bf16 %v440_v23, %v432_v22  ;;  %v626_v35 = vpack.c.bf16 %v442_v27, %v434_v26  ;;  %v512_v22 = vld [vmem:[%s1876_s3 + $0x6a0] sm:$0xff]  ;;  %v514_v26 = vld [vmem:[%s1876_s3 + $0x6b0] sm:$0xff] }
 0x169   : > { %816 = vmatprep.subr.bf16.mxu0 %v593_v38  ;;  %857 = vmatprep.subr.bf16.mxu1 %v595_v39  ;;  %v633_v38 = vpack.c.bf16 %v457_v29, %v449_v28  ;;  %v635_v39 = vpack.c.bf16 %v459_v31, %v451_v30  ;;  %v520_v23 = vld [vmem:[%s1876_s3 + $0x6e0] sm:$0xff]  ;;  %v522_v27 = vld [vmem:[%s1876_s3 + $0x6f0] sm:$0xff]  ;;  %v529_v28 = vld [vmem:[%s1876_s3 + $0x728] sm:$0xff] }
 0x16a   : > { %v537_v29 = vld [vmem:[%s1876_s3 + $0x768] sm:$0xff]  ;;  %v531_v30 = vld [vmem:[%s1876_s3 + $0x738] sm:$0xff] }
 0x16b   : > { %v539_v31 = vld [vmem:[%s1876_s3 + $0x778] sm:$0xff] }
 0x16c   : > { %817 = vmatpush1.bf16.msra.mxu0 %v592_v46  ;;  %858 = vmatpush1.bf16.msra.mxu1 %v594_v47  ;;  %v632_v46 = vpack.c.bf16 %v456_v37, %v448_v36  ;;  %v634_v47 = vpack.c.bf16 %v458_v41, %v450_v40  ;;  %v528_v36 = vld [vmem:[%s1876_s3 + $0x720] sm:$0xff]  ;;  %v530_v40 = vld [vmem:[%s1876_s3 + $0x730] sm:$0xff] }
 0x16d   : > { %818 = vmatprep.subr.bf16.mxu0 %v601_v50  ;;  %859 = vmatprep.subr.bf16.mxu1 %v603_v61  ;;  %v641_v50 = vpack.c.bf16 %v473_v43, %v465_v42  ;;  %v643_v61 = vpack.c.bf16 %v475_v45, %v467_v44  ;;  %v536_v37 = vld [vmem:[%s1876_s3 + $0x760] sm:$0xff]  ;;  %v538_v41 = vld [vmem:[%s1876_s3 + $0x770] sm:$0xff]  ;;  %v545_v42 = vld [vmem:[%s1876_s3 + $0x7a8] sm:$0xff] }
 0x16e   : > { %v553_v43 = vld [vmem:[%s1876_s3 + $0x7e8] sm:$0xff]  ;;  %v547_v44 = vld [vmem:[%s1876_s3 + $0x7b8] sm:$0xff] }
 0x16f   : > { %v555_v45 = vld [vmem:[%s1876_s3 + $0x7f8] sm:$0xff] }
 0x170   : > { %819 = vmatpush1.bf16.msra.mxu0 %v600_v56  ;;  %860 = vmatpush1.bf16.msra.mxu1 %v602_v57  ;;  %v640_v56 = vpack.c.bf16 %v472_v49, %v464_v48  ;;  %v642_v57 = vpack.c.bf16 %v474_v51, %v466_v2  ;;  %v544_v48 = vld [vmem:[%s1876_s3 + $0x7a0] sm:$0xff]  ;;  %v681_v49 = vpack.c.bf16 %v553_v43, %v545_v42  ;;  %v546_v2 = vld [vmem:[%s1876_s3 + $0x7b0] sm:$0xff] }
 0x171   : > { %820 = vmatprep.subr.bf16.mxu0 %v609_v63  ;;  %861 = vmatprep.subr.bf16.mxu1 %v611_v1  ;;  %v649_v63 = vpack.c.bf16 %v489_v53, %v481_v52  ;;  %v651_v1 = vpack.c.bf16 %v491_v55, %v483_v54  ;;  %v554_v51 = vld [vmem:[%s1876_s3 + $0x7f0] sm:$0xff]  ;;  %v696_v54 = vsub.s32 2, %v1278_v60  ;;  %v684_v55 = vld [vmem:[%s1877_s4] sm:$0xff] }
 0x172   : > { %v682_v53 = vpack.c.bf16 %v554_v51, %v546_v2 }
 0x174   : > { %821 = vmatpush1.bf16.msra.mxu0 %v608_v9  ;;  %862 = vmatpush1.bf16.msra.mxu1 %v610_v0  ;;  %v648_v9 = vpack.c.bf16 %v488_v59, %v480_v58  ;;  %v650_v0 = vpack.c.bf16 %v490_v4, %v482_v3  ;;  %v697_v58 = vrot.slane %v684_v55, %v696_v54 }
 0x175   : > { %822 = vmatprep.subr.bf16.mxu0 %v617_v12  ;;  %863 = vmatprep.subr.bf16.mxu1 %v619_v13  ;;  %v657_v12 = vpack.c.bf16 %v505_v6, %v497_v5  ;;  %v659_v13 = vpack.c.bf16 %v507_v8, %v499_v7  ;;  %v693_v59 = vrot.slane %v684_v55, %v1463_v34 }
 0x178   : > { %823 = vmatpush1.bf16.msra.mxu0 %v616_v20  ;;  %864 = vmatpush1.bf16.msra.mxu1 %v618_v21  ;;  %v656_v20 = vpack.c.bf16 %v504_v11, %v496_v10  ;;  %v658_v21 = vpack.c.bf16 %v506_v15, %v498_v14  ;;  %v708_v14 = vsub.s32 5, %v1278_v60  ;;  %v716_v15 = vsub.s32 7, %v1278_v60 }
 0x179   : > { %824 = vmatprep.subr.bf16.mxu0 %v625_v24  ;;  %865 = vmatprep.subr.bf16.mxu1 %v627_v25  ;;  %v665_v24 = vpack.c.bf16 %v521_v17, %v513_v16  ;;  %v667_v25 = vpack.c.bf16 %v523_v19, %v515_v18 }
 0x17a   : > { %v709_v18 = vrot.slane %v684_v55, %v708_v14  ;;  %v717_v19 = vrot.slane %v684_v55, %v716_v15 }
 0x17c   : > { %825 = vmatpush1.bf16.msra.mxu0 %v624_v32  ;;  %866 = vmatpush1.bf16.msra.mxu1 %v626_v35  ;;  %v664_v32 = vpack.c.bf16 %v520_v23, %v512_v22  ;;  %v666_v35 = vpack.c.bf16 %v522_v27, %v514_v26 }
 0x17d   : > { %826 = vmatprep.subr.bf16.mxu0 %v633_v38  ;;  %867 = vmatprep.subr.bf16.mxu1 %v635_v39  ;;  %v673_v38 = vpack.c.bf16 %v537_v29, %v529_v28  ;;  %v675_v39 = vpack.c.bf16 %v539_v31, %v531_v30 }
 0x180   : > { %827 = vmatpush1.bf16.msra.mxu0 %v632_v46  ;;  %868 = vmatpush1.bf16.msra.mxu1 %v634_v47  ;;  %v672_v46 = vpack.c.bf16 %v536_v37, %v528_v36  ;;  %v674_v47 = vpack.c.bf16 %v538_v41, %v530_v40 }
 0x181   : > { %828 = vmatprep.subr.bf16.mxu0 %v641_v50  ;;  %869 = vmatprep.subr.bf16.mxu1 %v643_v61  ;;  %v683_v50 = vpack.c.bf16 %v555_v45, %v547_v44  ;;  %v552_v61 = vld [vmem:[%s1876_s3 + $0x7e0] sm:$0xff] }
 0x182   : > { %v680_v52 = vpack.c.bf16 %v552_v61, %v544_v48 }
 0x184   : > { %829 = vmatpush1.bf16.msra.mxu0 %v640_v56  ;;  %870 = vmatpush1.bf16.msra.mxu1 %v642_v57  ;;  %v700_v56 = vsub.s32 3, %v1278_v60  ;;  %v689_v57 = vrot.slane %v684_v55, %v1460_v33 }
 0x185   : > { %830 = vmatprep.subr.bf16.mxu0 %v649_v63  ;;  %871 = vmatprep.subr.bf16.mxu1 %v651_v1 }
 0x186   : > { %v701_v63 = vrot.slane %v684_v55, %v700_v56 }
 0x188   : > { %831 = vmatpush1.bf16.msra.mxu0 %v648_v9  ;;  %872 = vmatpush1.bf16.msra.mxu1 %v650_v0 }
 0x189   : > { %832 = vmatprep.subr.bf16.mxu0 %v657_v12  ;;  %873 = vmatprep.subr.bf16.mxu1 %v659_v13  ;;  %v704_v12 = vsub.s32 4, %v1278_v60  ;;  %v712_v13 = vsub.s32 6, %v1278_v60 }
 0x18b   : > { %v705_v16 = vrot.slane %v684_v55, %v704_v12  ;;  %v713_v17 = vrot.slane %v684_v55, %v712_v13 }
 0x18c   : > { %833 = vmatpush1.bf16.msra.mxu0 %v656_v20  ;;  %874 = vmatpush1.bf16.msra.mxu1 %v658_v21 }
 0x18d   : > { %834 = vmatprep.subr.bf16.mxu0 %v665_v24  ;;  %875 = vmatprep.subr.bf16.mxu1 %v667_v25 }
 0x190   : > { %835 = vmatpush1.bf16.msra.mxu0 %v664_v32  ;;  %876 = vmatpush1.bf16.msra.mxu1 %v666_v35 }
 0x191   : > { %836 = vmatprep.subr.bf16.mxu0 %v673_v38  ;;  %877 = vmatprep.subr.bf16.mxu1 %v675_v39 }
 0x194   : > { %837 = vmatpush1.bf16.msra.mxu0 %v672_v46  ;;  %878 = vmatpush1.bf16.msra.mxu1 %v674_v47 }
 0x195   : > { %838 = vmatprep.subr.bf16.mxu0 %v681_v49  ;;  %879 = vmatprep.subr.bf16.mxu1 %v683_v50 }
 0x198   : > { %839 = vmatpush1.bf16.msra.mxu0 %v680_v52  ;;  %880 = vmatpush1.bf16.msra.mxu1 %v682_v53 }
 0x19b   : > { %841 = vmatmul.mubr.bf16.vlgmr.msra.gmra.mrb[4].mxu0 %v1507_v62  ;;  %882 = vmatmul.mubr.bf16.vlgmr.msra.gmra.mrb[4].mxu1 %v1507_v62 }
 0x22e   : > { %v760_v1 = vpop.f32.mrb[0].mxu0  ;;  %v801_v3 = vpop.f32.mrb[0].mxu1 }
 0x22f   : > { %v761_v4 = vadd.f32 %v760_v1, %v689_v57  ;;  %v802_v5 = vadd.f32 %v801_v3, %v697_v58  ;;  %v762_v62 = vpop.f32.mrb[1].mxu0  ;;  %v803_v6 = vpop.f32.mrb[1].mxu1 }
 0x230   : > { %v763_v7 = vadd.f32 %v762_v62, %v693_v59  ;;  %v804_v8 = vadd.f32 %v803_v6, %v701_v63  ;;  %v764_v9 = vpop.f32.mrb[2].mxu0  ;;  %v805_v0 = vpop.f32.mrb[2].mxu1 }
 0x231   : > { %v765_v33 = vpop.f32.mrb[3].mxu0  ;;  %v806_v10 = vpop.f32.mrb[3].mxu1 }
 0x232   : > { %v898_v11 = vcombine.low %v761_v4, %v763_v7  ;;  %v899_v34 = vcombine.low %v802_v5, %v804_v8 }
 0x234   : > { %906 = vst [vmem:[%s224_s14] sm:$0xff] %v898_v11  ;;  %907 = vst [vmem:[%s224_s14 + $0x8] sm:$0xff] %v899_v34 }
 0x26e   : > { %v842_v20 = vpop.f32.mrb[4].mxu0  ;;  %v883_v21 = vpop.f32.mrb[4].mxu1 }
 0x26f   : > { %v843_v22 = vadd.f32 %v842_v20, %v705_v16  ;;  %v884_v23 = vadd.f32 %v883_v21, %v713_v17  ;;  %v844_v24 = vpop.f32.mrb[5].mxu0  ;;  %v885_v25 = vpop.f32.mrb[5].mxu1 }
 0x270   : > { %v845_v26 = vadd.f32 %v844_v24, %v709_v18  ;;  %v886_v27 = vadd.f32 %v885_v25, %v717_v19  ;;  %v846_v28 = vpop.f32.mrb[6].mxu0  ;;  %v887_v29 = vpop.f32.mrb[6].mxu1 }
 0x271   : > { %v847_v30 = vpop.f32.mrb[7].mxu0  ;;  %v888_v31 = vpop.f32.mrb[7].mxu1 }
 0x272   : > { %v900_v32 = vcombine.low %v843_v22, %v845_v26  ;;  %v901_v35 = vcombine.low %v884_v23, %v886_v27 }
 0x274   : > { %908 = vst [vmem:[%s224_s14 + $0x10] sm:$0xff] %v900_v32  ;;  %909 = vst [vmem:[%s224_s14 + $0x18] sm:$0xff] %v901_v35 }
 0x275 PF: > { %s15_s18 = sadd.s32 1, %s996_s18  }
 0x276   : > { %p12_p4 = scmp.ge.s32.totalorder %s15_s18, 4  }
 0x278   :  { %14 = sbr.rel (!%p12_p4) target bundleno = 1 (0x1), region = 70 }

// kernel: forward.13
= control target key start
LH: loop header
LB: loop body
LE: loop exit
PB: predicated region body
PF: predicated region fallthrough
CT: control target
= control target key end

     0   :  { %s2235_s25 = smov 0   ;;  %s3593_s0 = inlined_call_operand.vmem [shape: f32[2,4,256], index: 0, kind: input, shape index: {}]   ;;  %s3594_s1 = inlined_call_operand.vmem [shape: f32[1,256], index: 1, kind: input, shape index: {}]   ;;  %s3595_s2 = inlined_call_operand.vmem [shape: f32[1,256], index: 2, kind: input, shape index: {}]   ;;  %s3596_s3 = inlined_call_operand.vmem [shape: f32[256,768], index: 3, kind: input, shape index: {}]   ;;  %s3597_s4 = inlined_call_operand.vmem [shape: f32[1,768], index: 4, kind: input, shape index: {}]   ;;  %s3598_s5 = inlined_call_operand.vmem [shape: f32[256,256], index: 5, kind: input, shape index: {}]   ;;  %s3599_s6 = inlined_call_operand.vmem [shape: f32[1,256], index: 6, kind: input, shape index: {}]   ;;  %s3600_s7 = inlined_call_operand.vmem [shape: f32[1,256], index: 7, kind: input, shape index: {}]   ;;  %s3601_s8 = inlined_call_operand.vmem [shape: f32[1,256], index: 8, kind: input, shape index: {}]   ;;  %s3602_s9 = inlined_call_operand.vmem [shape: f32[256,256], index: 9, kind: input, shape index: {}]   ;;  %s3603_s10 = inlined_call_operand.vmem [shape: f32[1,256], index: 10, kind: input, shape index: {}]   ;;  %s3604_s11 = inlined_call_operand.vmem [shape: f32[256,256], index: 11, kind: input, shape index: {}]   ;;  %s3605_s12 = inlined_call_operand.vmem [shape: f32[1,256], index: 12, kind: input, shape index: {}]   ;;  %s3606_s13 = inlined_call_operand.vmem [shape: f32[2,4,256], index: 13, kind: output, shape index: {}]  }
   0x1 LB: > { %s2025_s26 = sadd.s32 4294967295, %s2159_s25   ;;  %p2029_p0 = scmp.ge.s32.totalorder %s2159_s25, 1  ;;  %s2159_s25 = sphi %s2235_s25, %s23_s25  }
   0x2   : > { %p387_p1 = scmp.lt.s32.totalorder %s2159_s25, 3 }
   0x4   : > { %p388_p2 = pnand %p2029_p0, %p387_p1 }
   0x5   : > { %p431_p3 = scmp.lt.s32.totalorder (!%p388_p2), %s2025_s26, 1  ;;  %vm448_vm0 = vcmask (!%p388_p2), 1043456   ;;  %v518_v5 = vld [vmem:[%s3596_s3 + $0x8] sm:$0xff] (!%p388_p2)  ;;  %v524_v6 = vld [vmem:[%s3596_s3 + $0x38] sm:$0xff] (!%p388_p2)  ;;  %v517_v7 = vld [vmem:[%s3596_s3] sm:$0xff] (!%p388_p2)  ;;  %vm2163_vm1 = vmmov (!%p388_p2), 0  }
   0x6   : > { %391 = sbr.rel (%p388_p2) target bundleno = 4062 (0xfde), region = 72  ;;  %v710_v8 = vpack.c.bf16 (!%p388_p2), %v524_v6, %v518_v5  ;;  %v523_v9 = vld [vmem:[%s3596_s3 + $0x30] sm:$0xff] (!%p388_p2)  ;;  %v520_v10 = vld [vmem:[%s3596_s3 + $0x18] sm:$0xff] (!%p388_p2)  ;;  %v526_v11 = vld [vmem:[%s3596_s3 + $0x48] sm:$0xff] (!%p388_p2)  ;;  %vm962_vm2 = vcmask (!%p388_p2), 523264   ;;  %s2164_s14 = smov (!%p388_p2), 64  }
   0x7   : > { %v709_v12 = vpack.c.bf16 (!%p388_p2), %v523_v9, %v517_v7  ;;  %v712_v13 = vpack.c.bf16 (!%p388_p2), %v526_v11, %v520_v10  ;;  %v519_v14 = vld [vmem:[%s3596_s3 + $0x10] sm:$0xff] (!%p388_p2)  ;;  %v525_v15 = vld [vmem:[%s3596_s3 + $0x40] sm:$0xff] (!%p388_p2)  ;;  %v530_v16 = vld [vmem:[%s3596_s3 + $0x68] sm:$0xff] (!%p388_p2)  ;;  %vm1028_vm3 = vcmask (!%p388_p2), 1041408   ;;  %vm1010_vm4 = vcmask (!%p388_p2), 27648  }
   0x8   : > { %837 = vmatprep.subr.bf16.mxu0 (!%p388_p2), %v710_v8  ;;  %v711_v17 = vpack.c.bf16 (!%p388_p2), %v525_v15, %v519_v14  ;;  %v536_v18 = vld [vmem:[%s3596_s3 + $0x98] sm:$0xff] (!%p388_p2)  ;;  %v529_v19 = vld [vmem:[%s3596_s3 + $0x60] sm:$0xff] (!%p388_p2)  ;;  %v535_v20 = vld [vmem:[%s3596_s3 + $0x90] sm:$0xff] (!%p388_p2)  ;;  %vm1024_vm5 = vcmask (!%p388_p2), 31744  }
   0x9   : > { %838 = vmatpush1.bf16.msra.mxu0 (!%p388_p2), %v709_v12  ;;  %878 = vmatprep.subr.bf16.mxu1 (!%p388_p2), %v712_v13  ;;  %v716_v21 = vpack.c.bf16 (!%p388_p2), %v536_v18, %v530_v16  ;;  %v715_v22 = vpack.c.bf16 (!%p388_p2), %v535_v20, %v529_v19  ;;  %v532_v23 = vld [vmem:[%s3596_s3 + $0x78] sm:$0xff] (!%p388_p2)  ;;  %v538_v24 = vld [vmem:[%s3596_s3 + $0xa8] sm:$0xff] (!%p388_p2)  ;;  %v531_v25 = vld [vmem:[%s3596_s3 + $0x70] sm:$0xff] (!%p388_p2) }
   0xa   : > { %879 = vmatpush1.bf16.msra.mxu1 (!%p388_p2), %v711_v17  ;;  %v718_v26 = vpack.c.bf16 (!%p388_p2), %v538_v24, %v532_v23  ;;  %v537_v27 = vld [vmem:[%s3596_s3 + $0xa0] sm:$0xff] (!%p388_p2)  ;;  %v542_v28 = vld [vmem:[%s3596_s3 + $0xc8] sm:$0xff] (!%p388_p2)  ;;  %v548_v29 = vld [vmem:[%s3596_s3 + $0xf8] sm:$0xff] (!%p388_p2) }
   0xb   : > { %839 = vmatprep.subr.bf16.mxu0 (!%p388_p2), %v716_v21  ;;  %v717_v30 = vpack.c.bf16 (!%p388_p2), %v537_v27, %v531_v25  ;;  %v722_v31 = vpack.c.bf16 (!%p388_p2), %v548_v29, %v542_v28  ;;  %v541_v32 = vld [vmem:[%s3596_s3 + $0xc0] sm:$0xff] (!%p388_p2)  ;;  %v547_v33 = vld [vmem:[%s3596_s3 + $0xf0] sm:$0xff] (!%p388_p2)  ;;  %v544_v34 = vld [vmem:[%s3596_s3 + $0xd8] sm:$0xff] (!%p388_p2) }
   0xc   : > { %880 = vmatprep.subr.bf16.mxu1 (!%p388_p2), %v718_v26  ;;  %v550_v35 = vld [vmem:[%s3596_s3 + $0x108] sm:$0xff] (!%p388_p2)  ;;  %v543_v36 = vld [vmem:[%s3596_s3 + $0xd0] sm:$0xff] (!%p388_p2)  ;;  %v549_v37 = vld [vmem:[%s3596_s3 + $0x100] sm:$0xff] (!%p388_p2)  ;;  %v721_v38 = vpack.c.bf16 (!%p388_p2), %v547_v33, %v541_v32 }
   0xd   : > { %s3608_s26 = smov (!%p431_p3, %s2025_s26), 1  ;;  %840 = vmatpush1.bf16.msra.mxu0 %v715_v22  ;;  %v724_v39 = vpack.c.bf16 %v550_v35, %v544_v34  ;;  %v554_v40 = vld [vmem:[%s3596_s3 + $0x128] sm:$0xff]  ;;  %v560_v41 = vld [vmem:[%s3596_s3 + $0x158] sm:$0xff]  ;;  %v553_v42 = vld [vmem:[%s3596_s3 + $0x120] sm:$0xff]  ;;  %v723_v43 = vpack.c.bf16 %v549_v37, %v543_v36 }
   0xe   : > { %s2044_s27 = sshll.u32 %s3608_s26, 3  ;;  %881 = vmatpush1.bf16.msra.mxu1 %v717_v30  ;;  %841 = vmatprep.subr.bf16.mxu0 %v722_v31  ;;  %v728_v44 = vpack.c.bf16 %v560_v41, %v554_v40  ;;  %v559_v45 = vld [vmem:[%s3596_s3 + $0x150] sm:$0xff]  ;;  %v556_v46 = vld [vmem:[%s3596_s3 + $0x138] sm:$0xff]  ;;  %v562_v47 = vld [vmem:[%s3596_s3 + $0x168] sm:$0xff] }
   0xf   : > { %s2251_s30 = scalar_lea.vmem %s3593_s0, %s2044_s27  ;;  %882 = vmatprep.subr.bf16.mxu1 %v724_v39  ;;  %v730_v48 = vpack.c.bf16 %v562_v47, %v556_v46  ;;  %v555_v49 = vld [vmem:[%s3596_s3 + $0x130] sm:$0xff]  ;;  %v561_v50 = vld [vmem:[%s3596_s3 + $0x160] sm:$0xff]  ;;  %v566_v51 = vld [vmem:[%s3596_s3 + $0x188] sm:$0xff]  ;;  %v727_v53 = vpack.c.bf16 %v559_v45, %v553_v42 }
  0x10   : > { %v2254_v0 = vld [vmem:[%s2251_s30] sm:$0xff]  ;;  %v572_v52 = vld [vmem:[%s3596_s3 + $0x1b8] sm:$0xff]  ;;  %v574_v55 = vld [vmem:[%s3596_s3 + $0x1c8] sm:$0xff]  ;;  %v729_v56 = vpack.c.bf16 %v561_v50, %v555_v49 }
  0x11   : > { %v446_v1 = vcombine.high %v2254_v0, %v2254_v0  ;;  %v449_v2 = vsel %vm448_vm0, %v2254_v0, 0.0  ;;  %842 = vmatpush1.bf16.msra.mxu0 %v721_v38  ;;  %v568_v54 = vld [vmem:[%s3596_s3 + $0x198] sm:$0xff]  ;;  %v734_v57 = vpack.c.bf16 %v572_v52, %v566_v51  ;;  %v565_v58 = vld [vmem:[%s3596_s3 + $0x180] sm:$0xff]  ;;  %v571_v59 = vld [vmem:[%s3596_s3 + $0x1b0] sm:$0xff] }
  0x12   : > { %883 = vmatpush1.bf16.msra.mxu1 %v723_v43  ;;  %843 = vmatprep.subr.bf16.mxu0 %v728_v44  ;;  %v567_v60 = vld [vmem:[%s3596_s3 + $0x190] sm:$0xff]  ;;  %v736_v61 = vpack.c.bf16 %v574_v55, %v568_v54  ;;  %v573_v62 = vld [vmem:[%s3596_s3 + $0x1c0] sm:$0xff]  ;;  %v578_v63 = vld [vmem:[%s3596_s3 + $0x1e8] sm:$0xff]  ;;  %v460_v55 = vlaneseq }
  0x13   : > { %v450_v3 = vsel %vm448_vm0, %v446_v1, 0.0  ;;  %884 = vmatprep.subr.bf16.mxu1 %v730_v48  ;;  %v584_v1 = vld [vmem:[%s3596_s3 + $0x218] sm:$0xff]  ;;  %v735_v5 = vpack.c.bf16 %v573_v62, %v567_v60  ;;  %v577_v7 = vld [vmem:[%s3596_s3 + $0x1e0] sm:$0xff]  ;;  %v583_v8 = vld [vmem:[%s3596_s3 + $0x210] sm:$0xff] }
  0x14   : > { %v451_v4 = vadd.f32 %v450_v3, %v449_v2  ;;  %v580_v2 = vld [vmem:[%s3596_s3 + $0x1f8] sm:$0xff]  ;;  %v586_v3 = vld [vmem:[%s3596_s3 + $0x228] sm:$0xff]  ;;  %v740_v6 = vpack.c.bf16 %v584_v1, %v578_v63  ;;  %v579_v9 = vld [vmem:[%s3596_s3 + $0x1f0] sm:$0xff]  ;;  %v739_v16 = vpack.c.bf16 %v583_v8, %v577_v7 }
  0x15   : > { %844 = vmatpush1.bf16.msra.mxu0 %v727_v53  ;;  %v742_v10 = vpack.c.bf16 %v586_v3, %v580_v2  ;;  %v585_v11 = vld [vmem:[%s3596_s3 + $0x220] sm:$0xff]  ;;  %v590_v12 = vld [vmem:[%s3596_s3 + $0x248] sm:$0xff]  ;;  %v596_v13 = vld [vmem:[%s3596_s3 + $0x278] sm:$0xff]  ;;  %v2161_v53 = vmov 839922192  }
  0x16   : > { %452 = vadd.xlane.f32.xlu0 %v451_v4  ;;  %v733_v4 = vpack.c.bf16 %v571_v59, %v565_v58  ;;  %885 = vmatpush1.bf16.msra.mxu1 %v729_v56  ;;  %v592_v14 = vld [vmem:[%s3596_s3 + $0x258] sm:$0xff]  ;;  %v598_v15 = vld [vmem:[%s3596_s3 + $0x288] sm:$0xff]  ;;  %v741_v17 = vpack.c.bf16 %v585_v11, %v579_v9  ;;  %v746_v18 = vpack.c.bf16 %v596_v13, %v590_v12  ;;  %v589_v19 = vld [vmem:[%s3596_s3 + $0x240] sm:$0xff]  ;;  %v458_v54 = vunpack.c.l.s4 %v2161_v53 }
  0x17   : > { %845 = vmatprep.subr.bf16.mxu0 %v734_v57  ;;  %886 = vmatprep.subr.bf16.mxu1 %v736_v61  ;;  %v595_v20 = vld [vmem:[%s3596_s3 + $0x270] sm:$0xff]  ;;  %v748_v22 = vpack.c.bf16 %v598_v15, %v592_v14  ;;  %v597_v23 = vld [vmem:[%s3596_s3 + $0x280] sm:$0xff]  ;;  %v602_v24 = vld [vmem:[%s3596_s3 + $0x2a8] sm:$0xff]  ;;  %v2483_v57 = vshrl.u32 %v460_v55, 7 }
  0x18   : > { %v591_v21 = vld [vmem:[%s3596_s3 + $0x250] sm:$0xff]  ;;  %v608_v25 = vld [vmem:[%s3596_s3 + $0x2d8] sm:$0xff]  ;;  %v610_v27 = vld [vmem:[%s3596_s3 + $0x2e8] sm:$0xff]  ;;  %v745_v28 = vpack.c.bf16 %v595_v20, %v589_v19  ;;  %v459_v56 = vunpack.c.0.s8 %v458_v54 }
  0x19   : > { %846 = vmatpush1.bf16.msra.mxu0 %v733_v4  ;;  %v604_v26 = vld [vmem:[%s3596_s3 + $0x2b8] sm:$0xff]  ;;  %v747_v29 = vpack.c.bf16 %v597_v23, %v591_v21  ;;  %v752_v30 = vpack.c.bf16 %v608_v25, %v602_v24  ;;  %v601_v31 = vld [vmem:[%s3596_s3 + $0x2a0] sm:$0xff]  ;;  %v607_v32 = vld [vmem:[%s3596_s3 + $0x2d0] sm:$0xff] }
  0x1a   : > { %887 = vmatpush1.bf16.msra.mxu1 %v735_v5  ;;  %847 = vmatprep.subr.bf16.mxu0 %v740_v6  ;;  %v603_v33 = vld [vmem:[%s3596_s3 + $0x2b0] sm:$0xff]  ;;  %v754_v34 = vpack.c.bf16 %v610_v27, %v604_v26  ;;  %v609_v35 = vld [vmem:[%s3596_s3 + $0x2e0] sm:$0xff]  ;;  %v614_v36 = vld [vmem:[%s3596_s3 + $0x308] sm:$0xff]  ;;  %v751_v40 = vpack.c.bf16 %v607_v32, %v601_v31  ;;  %v2486_v58 = vsub.s32 %v459_v56, %v2483_v57 }
  0x1b   : > { %888 = vmatprep.subr.bf16.mxu1 %v742_v10  ;;  %v620_v37 = vld [vmem:[%s3596_s3 + $0x338] sm:$0xff]  ;;  %v622_v39 = vld [vmem:[%s3596_s3 + $0x348] sm:$0xff]  ;;  %v753_v41 = vpack.c.bf16 %v609_v35, %v603_v33  ;;  %v613_v43 = vld [vmem:[%s3596_s3 + $0x300] sm:$0xff] }
  0x1c   : > { %v616_v38 = vld [vmem:[%s3596_s3 + $0x318] sm:$0xff]  ;;  %v758_v42 = vpack.c.bf16 %v620_v37, %v614_v36  ;;  %v619_v44 = vld [vmem:[%s3596_s3 + $0x330] sm:$0xff]  ;;  %v621_v47 = vld [vmem:[%s3596_s3 + $0x340] sm:$0xff] }
  0x1d   : > { %848 = vmatpush1.bf16.msra.mxu0 %v739_v16  ;;  %v615_v45 = vld [vmem:[%s3596_s3 + $0x310] sm:$0xff]  ;;  %v760_v46 = vpack.c.bf16 %v622_v39, %v616_v38  ;;  %v626_v48 = vld [vmem:[%s3596_s3 + $0x368] sm:$0xff]  ;;  %v632_v49 = vld [vmem:[%s3596_s3 + $0x398] sm:$0xff]  ;;  %v757_v50 = vpack.c.bf16 %v619_v44, %v613_v43 }
  0x1e   : > { %889 = vmatpush1.bf16.msra.mxu1 %v741_v17  ;;  %849 = vmatprep.subr.bf16.mxu0 %v746_v18  ;;  %v759_v51 = vpack.c.bf16 %v621_v47, %v615_v45  ;;  %v764_v52 = vpack.c.bf16 %v632_v49, %v626_v48  ;;  %v625_v5 = vld [vmem:[%s3596_s3 + $0x360] sm:$0xff]  ;;  %v631_v6 = vld [vmem:[%s3596_s3 + $0x390] sm:$0xff]  ;;  %v634_v8 = vld [vmem:[%s3596_s3 + $0x3a8] sm:$0xff] }
  0x1f   : > { %890 = vmatprep.subr.bf16.mxu1 %v748_v22  ;;  %v763_v7 = vpack.c.bf16 %v631_v6, %v625_v5  ;;  %v627_v9 = vld [vmem:[%s3596_s3 + $0x370] sm:$0xff]  ;;  %v633_v10 = vld [vmem:[%s3596_s3 + $0x3a0] sm:$0xff]  ;;  %v638_v13 = vld [vmem:[%s3596_s3 + $0x3c8] sm:$0xff] }
  0x20   : > { %v765_v12 = vpack.c.bf16 %v633_v10, %v627_v9  ;;  %v644_v14 = vld [vmem:[%s3596_s3 + $0x3f8] sm:$0xff]  ;;  %v637_v16 = vld [vmem:[%s3596_s3 + $0x3c0] sm:$0xff]  ;;  %v643_v17 = vld [vmem:[%s3596_s3 + $0x3f0] sm:$0xff] }
  0x21   : > { %850 = vmatpush1.bf16.msra.mxu0 %v745_v28  ;;  %v770_v15 = vpack.c.bf16 %v644_v14, %v638_v13  ;;  %v640_v18 = vld [vmem:[%s3596_s3 + $0x3d8] sm:$0xff]  ;;  %v769_v19 = vpack.c.bf16 %v643_v17, %v637_v16  ;;  %v646_v20 = vld [vmem:[%s3596_s3 + $0x408] sm:$0xff]  ;;  %v639_v21 = vld [vmem:[%s3596_s3 + $0x3d0] sm:$0xff] }
  0x22   : > { %891 = vmatpush1.bf16.msra.mxu1 %v747_v29  ;;  %851 = vmatprep.subr.bf16.mxu0 %v752_v30  ;;  %v645_v22 = vld [vmem:[%s3596_s3 + $0x400] sm:$0xff]  ;;  %v772_v23 = vpack.c.bf16 %v646_v20, %v640_v18  ;;  %v650_v25 = vld [vmem:[%s3596_s3 + $0x428] sm:$0xff]  ;;  %v656_v26 = vld [vmem:[%s3596_s3 + $0x458] sm:$0xff] }
  0x23   : > { %892 = vmatprep.subr.bf16.mxu1 %v754_v34  ;;  %v771_v24 = vpack.c.bf16 %v645_v22, %v639_v21  ;;  %v649_v27 = vld [vmem:[%s3596_s3 + $0x420] sm:$0xff]  ;;  %v776_v28 = vpack.c.bf16 %v656_v26, %v650_v25  ;;  %v655_v29 = vld [vmem:[%s3596_s3 + $0x450] sm:$0xff]  ;;  %v652_v30 = vld [vmem:[%s3596_s3 + $0x438] sm:$0xff] }
  0x24   : > { %v658_v31 = vld [vmem:[%s3596_s3 + $0x468] sm:$0xff]  ;;  %v775_v32 = vpack.c.bf16 %v655_v29, %v649_v27  ;;  %v651_v34 = vld [vmem:[%s3596_s3 + $0x430] sm:$0xff]  ;;  %v657_v35 = vld [vmem:[%s3596_s3 + $0x460] sm:$0xff] }
  0x25   : > { %852 = vmatpush1.bf16.msra.mxu0 %v751_v40  ;;  %v778_v33 = vpack.c.bf16 %v658_v31, %v652_v30  ;;  %v662_v36 = vld [vmem:[%s3596_s3 + $0x488] sm:$0xff]  ;;  %v777_v37 = vpack.c.bf16 %v657_v35, %v651_v34  ;;  %v668_v38 = vld [vmem:[%s3596_s3 + $0x4b8] sm:$0xff]  ;;  %v661_v39 = vld [vmem:[%s3596_s3 + $0x480] sm:$0xff]  ;;  %v2665_v30 = vsub.s32 0, %v2483_v57  ;;  %v2668_v31 = vsub.s32 1, %v2483_v57 }
  0x26   : > { %893 = vmatpush1.bf16.msra.mxu1 %v753_v41  ;;  %853 = vmatprep.subr.bf16.mxu0 %v758_v42  ;;  %v667_v40 = vld [vmem:[%s3596_s3 + $0x4b0] sm:$0xff]  ;;  %v782_v41 = vpack.c.bf16 %v668_v38, %v662_v36  ;;  %v664_v43 = vld [vmem:[%s3596_s3 + $0x498] sm:$0xff]  ;;  %v670_v44 = vld [vmem:[%s3596_s3 + $0x4c8] sm:$0xff] }
  0x27   : > { %894 = vmatprep.subr.bf16.mxu1 %v760_v46  ;;  %v781_v42 = vpack.c.bf16 %v667_v40, %v661_v39  ;;  %v663_v45 = vld [vmem:[%s3596_s3 + $0x490] sm:$0xff]  ;;  %v784_v46 = vpack.c.bf16 %v670_v44, %v664_v43  ;;  %v669_v47 = vld [vmem:[%s3596_s3 + $0x4c0] sm:$0xff]  ;;  %v674_v48 = vld [vmem:[%s3596_s3 + $0x4e8] sm:$0xff] }
  0x28   : > { %v680_v49 = vld [vmem:[%s3596_s3 + $0x518] sm:$0xff]  ;;  %v679_v53 = vld [vmem:[%s3596_s3 + $0x510] sm:$0xff]  ;;  %v682_v55 = vld [vmem:[%s3596_s3 + $0x528] sm:$0xff] }
  0x29   : > { %854 = vmatpush1.bf16.msra.mxu0 %v757_v50  ;;  %v783_v50 = vpack.c.bf16 %v669_v47, %v663_v45  ;;  %v676_v54 = vld [vmem:[%s3596_s3 + $0x4f8] sm:$0xff]  ;;  %v675_v56 = vld [vmem:[%s3596_s3 + $0x4f0] sm:$0xff]  ;;  %v694_v6 = vld [vmem:[%s3596_s3 + $0x588] sm:$0xff] }
  0x2a   : > { %895 = vmatpush1.bf16.msra.mxu1 %v759_v51  ;;  %855 = vmatprep.subr.bf16.mxu0 %v764_v52  ;;  %v788_v51 = vpack.c.bf16 %v680_v49, %v674_v48  ;;  %v673_v52 = vld [vmem:[%s3596_s3 + $0x4e0] sm:$0xff]  ;;  %v688_v5 = vld [vmem:[%s3596_s3 + $0x558] sm:$0xff]  ;;  %v687_v9 = vld [vmem:[%s3596_s3 + $0x550] sm:$0xff] }
  0x2b   : > { %v693_v10 = vld [vmem:[%s3596_s3 + $0x580] sm:$0xff]  ;;  %v700_v13 = vld [vmem:[%s3596_s3 + $0x5b8] sm:$0xff]  ;;  %v706_v14 = vld [vmem:[%s3596_s3 + $0x5e8] sm:$0xff] }
  0x2c   : > { %v697_v16 = vld [vmem:[%s3596_s3 + $0x5a0] sm:$0xff]  ;;  %v703_v17 = vld [vmem:[%s3596_s3 + $0x5d0] sm:$0xff]  ;;  %v795_v18 = vpack.c.bf16 %v693_v10, %v687_v9  ;;  %v528_v25 = vld [vmem:[%s3596_s3 + $0x58] sm:$0xff] }
  0x2d   : > { %856 = vmatpush1.bf16.msra.mxu0 %v763_v7  ;;  %v698_v7 = vld [vmem:[%s3596_s3 + $0x5a8] sm:$0xff]  ;;  %v699_v20 = vld [vmem:[%s3596_s3 + $0x5b0] sm:$0xff]  ;;  %v705_v21 = vld [vmem:[%s3596_s3 + $0x5e0] sm:$0xff]  ;;  %v799_v22 = vpack.c.bf16 %v703_v17, %v697_v16 }
  0x2e   : > { %857 = vmatprep.subr.bf16.mxu0 %v770_v15  ;;  %v521_v45 = vld [vmem:[%s3596_s3 + $0x20] sm:$0xff]  ;;  %v534_v48 = vld [vmem:[%s3596_s3 + $0x88] sm:$0xff]  ;;  %v587_v17 = vld [vmem:[%s3596_s3 + $0x230] sm:$0xff] }
  0x2f   : > { %v569_v10 = vld [vmem:[%s3596_s3 + $0x1a0] sm:$0xff] }
  0x30   : > { %v581_v16 = vld [vmem:[%s3596_s3 + $0x200] sm:$0xff] }
  0x31   : > { %858 = vmatpush1.bf16.msra.mxu0 %v769_v19  ;;  %v802_v19 = vpack.c.bf16 %v706_v14, %v700_v13  ;;  %v588_v13 = vld [vmem:[%s3596_s3 + $0x238] sm:$0xff] }
  0x32   : > { %859 = vmatprep.subr.bf16.mxu0 %v776_v28 }
  0x35   : > { %860 = vmatpush1.bf16.msra.mxu0 %v775_v32  ;;  %v443_v32 = vld [vmem:[%s3594_s1] sm:$0x3] }
  0x36   : > { %861 = vmatprep.subr.bf16.mxu0 %v782_v41  ;;  %v492_v34 = vrot.slane %v443_v32, %v2665_v30  ;;  %v496_v35 = vrot.slane %v443_v32, %v2668_v31  ;;  %v618_v32 = vld [vmem:[%s3596_s3 + $0x328] sm:$0xff] }
  0x38   : > { %v497_v40 = vcombine.low %v492_v34, %v496_v35 }
  0x39   : > { %862 = vmatpush1.bf16.msra.mxu0 %v781_v42 }
  0x3a   : > { %863 = vmatprep.subr.bf16.mxu0 %v788_v51 }
  0xa3   : > { %v453_v59 = vpop.xlane.xlu0 %452 }
  0xa4   : > { %v455_v60 = vmul.f32 0.00390625, %v453_v59  ;;  %v681_v59 = vld [vmem:[%s3596_s3 + $0x520] sm:$0xff] }
  0xa6   : > { %v463_v61 = vrot.slane %v455_v60, %v2486_v58  ;;  %v787_v60 = vpack.c.bf16 %v679_v53, %v673_v52  ;;  %v533_v53 = vld [vmem:[%s3596_s3 + $0x80] sm:$0xff] }
  0xa8   : > { %v2490_v62 = vsub.f32 %v2254_v0, %v463_v61  ;;  %v628_v0 = vld [vmem:[%s3596_s3 + $0x378] sm:$0xff]  ;;  %v790_v61 = vpack.c.bf16 %v682_v55, %v676_v54  ;;  %864 = vmatpush1.bf16.msra.mxu0 %v787_v60  ;;  %v539_v54 = vld [vmem:[%s3596_s3 + $0xb0] sm:$0xff]  ;;  %v546_v55 = vld [vmem:[%s3596_s3 + $0xe8] sm:$0xff] }
  0xa9   : > { %v766_v11 = vpack.c.bf16 %v634_v8, %v628_v0  ;;  %v789_v0 = vpack.c.bf16 %v681_v59, %v675_v56  ;;  %v796_v8 = vpack.c.bf16 %v694_v6, %v688_v5  ;;  %v552_v56 = vld [vmem:[%s3596_s3 + $0x118] sm:$0xff]  ;;  %v719_v59 = vpack.c.bf16 %v539_v54, %v533_v53  ;;  %v557_v5 = vld [vmem:[%s3596_s3 + $0x140] sm:$0xff]  ;;  %v563_v6 = vld [vmem:[%s3596_s3 + $0x170] sm:$0xff] }
  0xaa   : > { %v466_v63 = vmul.f32 %v2490_v62, %v2490_v62  ;;  %v726_v60 = vpack.c.bf16 %v552_v56, %v546_v55  ;;  %v653_v54 = vld [vmem:[%s3596_s3 + $0x440] sm:$0xff]  ;;  %v659_v55 = vld [vmem:[%s3596_s3 + $0x470] sm:$0xff]  ;;  %v666_v56 = vld [vmem:[%s3596_s3 + $0x4a8] sm:$0xff] }
  0xab   : > { %896 = vmatprep.subr.bf16.mxu1 %v766_v11  ;;  %v704_v11 = vld [vmem:[%s3596_s3 + $0x5d8] sm:$0xff] }
  0xac   : > { %v468_v1 = vcombine.high %v466_v63, %v466_v63  ;;  %v470_v2 = vsel %vm448_vm0, %v466_v63, 0.0  ;;  %897 = vmatpush1.bf16.msra.mxu1 %v765_v12  ;;  %v686_v63 = vld [vmem:[%s3596_s3 + $0x548] sm:$0xff]  ;;  %v800_v15 = vpack.c.bf16 %v704_v11, %v698_v7  ;;  %v576_v7 = vld [vmem:[%s3596_s3 + $0x1d8] sm:$0xff]  ;;  %v575_v11 = vld [vmem:[%s3596_s3 + $0x1d0] sm:$0xff] }
  0xad   : > { %898 = vmatprep.subr.bf16.mxu1 %v772_v23  ;;  %v801_v23 = vpack.c.bf16 %v705_v21, %v699_v20  ;;  %v737_v14 = vpack.c.bf16 %v575_v11, %v569_v10  ;;  %v743_v20 = vpack.c.bf16 %v587_v17, %v581_v16  ;;  %v689_v11 = vld [vmem:[%s3596_s3 + $0x560] sm:$0xff] }
  0xae   : > { %v471_v3 = vsel %vm448_vm0, %v468_v1, 0.0  ;;  %v692_v1 = vld [vmem:[%s3596_s3 + $0x578] sm:$0xff]  ;;  %v701_v17 = vld [vmem:[%s3596_s3 + $0x5c0] sm:$0xff] }
  0xaf   : > { %v472_v4 = vadd.f32 %v471_v3, %v470_v2  ;;  %v685_v2 = vld [vmem:[%s3596_s3 + $0x540] sm:$0xff]  ;;  %v794_v3 = vpack.c.bf16 %v692_v1, %v686_v63  ;;  %v551_v63 = vld [vmem:[%s3596_s3 + $0x110] sm:$0xff]  ;;  %v558_v1 = vld [vmem:[%s3596_s3 + $0x148] sm:$0xff] }
  0xb0   : > { %899 = vmatpush1.bf16.msra.mxu1 %v771_v24  ;;  %v522_v24 = vld [vmem:[%s3596_s3 + $0x28] sm:$0xff] }
  0xb1   : > { %473 = vadd.xlane.f32.xlu0 %v472_v4  ;;  %900 = vmatprep.subr.bf16.mxu1 %v778_v33  ;;  %v691_v4 = vld [vmem:[%s3596_s3 + $0x570] sm:$0xff]  ;;  %v714_v26 = vpack.c.bf16 %v528_v25, %v522_v24  ;;  %v444_v33 = vld [vmem:[%s3595_s2] sm:$0x3]  ;;  %v606_v24 = vld [vmem:[%s3596_s3 + $0x2c8] sm:$0xff] }
  0xb2   : > { %v793_v12 = vpack.c.bf16 %v691_v4, %v685_v2  ;;  %865 = vmatprep.subr.bf16.mxu0 %v794_v3  ;;  %v504_v36 = vrot.slane %v444_v33, %v2665_v30  ;;  %v564_v2 = vld [vmem:[%s3596_s3 + $0x178] sm:$0xff] }
  0xb3   : > { %v732_v4 = vpack.c.bf16 %v564_v2, %v558_v1  ;;  %v612_v25 = vld [vmem:[%s3596_s3 + $0x2f8] sm:$0xff]  ;;  %v671_v1 = vld [vmem:[%s3596_s3 + $0x4d0] sm:$0xff]  ;;  %v678_v2 = vld [vmem:[%s3596_s3 + $0x508] sm:$0xff] }
  0xb4   : > { %901 = vmatpush1.bf16.msra.mxu1 %v777_v37  ;;  %866 = vmatpush1.bf16.msra.mxu0 %v793_v12  ;;  %v508_v37 = vrot.slane %v444_v33, %v2668_v31  ;;  %v582_v12 = vld [vmem:[%s3596_s3 + $0x208] sm:$0xff]  ;;  %v624_v33 = vld [vmem:[%s3596_s3 + $0x358] sm:$0xff] }
  0xb5   : > { %902 = vmatprep.subr.bf16.mxu1 %v784_v46  ;;  %867 = vmatprep.subr.bf16.mxu0 %v800_v15  ;;  %v527_v46 = vld [vmem:[%s3596_s3 + $0x50] sm:$0xff]  ;;  %v744_v15 = vpack.c.bf16 %v588_v13, %v582_v12  ;;  %v762_v35 = vpack.c.bf16 %v624_v33, %v618_v32  ;;  %v702_v13 = vld [vmem:[%s3596_s3 + $0x5c8] sm:$0xff] }
  0xb6   : > { %v509_v42 = vcombine.low %v504_v36, %v508_v37  ;;  %v617_v36 = vld [vmem:[%s3596_s3 + $0x320] sm:$0xff]  ;;  %v623_v37 = vld [vmem:[%s3596_s3 + $0x350] sm:$0xff] }
  0xb7   : > { %v695_v12 = vld [vmem:[%s3596_s3 + $0x590] sm:$0xff] }
  0xb8   : > { %903 = vmatpush1.bf16.msra.mxu1 %v783_v50  ;;  %868 = vmatpush1.bf16.msra.mxu0 %v799_v22  ;;  %v713_v50 = vpack.c.bf16 %v527_v46, %v521_v45  ;;  %v593_v22 = vld [vmem:[%s3596_s3 + $0x260] sm:$0xff]  ;;  %v648_v45 = vld [vmem:[%s3596_s3 + $0x418] sm:$0xff] }
  0xb9   : > { %904 = vmatprep.subr.bf16.mxu1 %v790_v61  ;;  %919 = vmatprep.subr.bf16.mxu0 %v714_v26  ;;  %v545_v61 = vld [vmem:[%s3596_s3 + $0xe0] sm:$0xff] }
  0xba   : > { %v725_v3 = vpack.c.bf16 %v551_v63, %v545_v61  ;;  %v665_v63 = vld [vmem:[%s3596_s3 + $0x4a0] sm:$0xff] }
  0xbc   : > { %905 = vmatpush1.bf16.msra.mxu1 %v789_v0  ;;  %v570_v0 = vld [vmem:[%s3596_s3 + $0x1a8] sm:$0xff] }
  0xbd   : > { %906 = vmatprep.subr.bf16.mxu1 %v796_v8  ;;  %v731_v8 = vpack.c.bf16 %v563_v6, %v557_v5  ;;  %v738_v9 = vpack.c.bf16 %v576_v7, %v570_v0  ;;  %v677_v6 = vld [vmem:[%s3596_s3 + $0x500] sm:$0xff]  ;;  %v683_v0 = vld [vmem:[%s3596_s3 + $0x530] sm:$0xff]  ;;  %v690_v7 = vld [vmem:[%s3596_s3 + $0x568] sm:$0xff] }
  0xc0   : > { %907 = vmatpush1.bf16.msra.mxu1 %v795_v18  ;;  %v594_v18 = vld [vmem:[%s3596_s3 + $0x268] sm:$0xff] }
  0xc1   : > { %908 = vmatprep.subr.bf16.mxu1 %v802_v19  ;;  %v600_v19 = vld [vmem:[%s3596_s3 + $0x298] sm:$0xff] }
  0xc2   : > { %v750_v21 = vpack.c.bf16 %v600_v19, %v594_v18  ;;  %v707_v18 = vld [vmem:[%s3596_s3 + $0x5f0] sm:$0xff] }
  0xc3   : > { %v803_v19 = vpack.c.bf16 %v707_v18, %v701_v17 }
  0xc4   : > { %909 = vmatpush1.bf16.msra.mxu1 %v801_v23  ;;  %v599_v23 = vld [vmem:[%s3596_s3 + $0x290] sm:$0xff] }
  0xc5   : > { %v749_v26 = vpack.c.bf16 %v599_v23, %v593_v22  ;;  %v2880_v22 = vld [vmem:[%s3597_s4] sm:$0x3f] }
  0xc6   : > { %v810_v32 = vrot.slane %v2880_v22, %v2665_v30 }
 0x13e   : > { %v474_v27 = vpop.xlane.xlu0 %473 }
 0x13f   : > { %v475_v28 = vmul.f32 0.00390625, %v474_v27  ;;  %v756_v27 = vpack.c.bf16 %v612_v25, %v606_v24 }
 0x141   : > { %v476_v29 = vadd.f32 1e-05, %v475_v28  ;;  %v605_v28 = vld [vmem:[%s3596_s3 + $0x2c0] sm:$0xff] }
 0x143   : > { %2128 = vrsqrt.f32 %v476_v29  ;;  %v611_v29 = vld [vmem:[%s3596_s3 + $0x2f0] sm:$0xff] }
 0x144   : > { %v755_v34 = vpack.c.bf16 %v611_v29, %v605_v28 }
 0x14d   : > { %v2129_v38 = vpop.eup %2128 }
 0x14e   : > { %v485_v39 = vrot.slane %v2129_v38, %v2486_v58  ;;  %v630_v38 = vld [vmem:[%s3596_s3 + $0x388] sm:$0xff] }
 0x150   : > { %v487_v41 = vmul.f32 %v485_v39, %v2490_v62  ;;  %v540_v62 = vld [vmem:[%s3596_s3 + $0xb8] sm:$0xff] }
 0x151   : > { %v720_v52 = vpack.c.bf16 %v540_v62, %v534_v48  ;;  %v636_v39 = vld [vmem:[%s3596_s3 + $0x3b8] sm:$0xff]  ;;  %v641_v48 = vld [vmem:[%s3596_s3 + $0x3e0] sm:$0xff]  ;;  %v647_v62 = vld [vmem:[%s3596_s3 + $0x410] sm:$0xff] }
 0x152   : > { %v499_v43 = vmul.f32 %v497_v40, %v487_v41  ;;  %v761_v40 = vpack.c.bf16 %v623_v37, %v617_v36  ;;  %v768_v41 = vpack.c.bf16 %v636_v39, %v630_v38  ;;  %v825_v39 = vsub.s32 4, %v2483_v57 }
 0x154   : > { %v511_v44 = vadd.f32 %v509_v42, %v499_v43  ;;  %v629_v42 = vld [vmem:[%s3596_s3 + $0x380] sm:$0xff]  ;;  %v635_v43 = vld [vmem:[%s3596_s3 + $0x3b0] sm:$0xff] }
 0x155   : > { %v767_v46 = vpack.c.bf16 %v635_v43, %v629_v42 }
 0x156   : > { %v513_v47 = vcombine.high %v511_v44, %v511_v44  ;;  %v2694_v51 = vpack.c.bf16 %v511_v44, %v511_v44  ;;  %v642_v44 = vld [vmem:[%s3596_s3 + $0x3e8] sm:$0xff] }
 0x158   : > { %v516_v49 = vpack.c.bf16 %v513_v47, %v513_v47  ;;  %v774_v47 = vpack.c.bf16 %v648_v45, %v642_v44 }
 0x15a   : > { %869 = vmatprep.mubr.bf16.mxu0 %v516_v49  ;;  %910 = vmatprep.mubr.bf16.mxu1 %v516_v49 }
 0x15b   : > { %870 = vmatmul.mubr.bf16.vlgmr.msra.gmra.mrb[0].mxu0 %v2694_v51  ;;  %911 = vmatmul.mubr.bf16.vlgmr.msra.gmra.mrb[0].mxu1 %v2694_v51 }
 0x15c   : > { %920 = vmatpush1.bf16.msra.mxu0 %v713_v50  ;;  %951 = vmatprep.mubr.bf16.mxu0 %v516_v49  ;;  %v654_v49 = vld [vmem:[%s3596_s3 + $0x448] sm:$0xff]  ;;  %v660_v50 = vld [vmem:[%s3596_s3 + $0x478] sm:$0xff] }
 0x15d   : > { %921 = vmatprep.subr.bf16.mxu0 %v720_v52  ;;  %v773_v52 = vpack.c.bf16 %v647_v62, %v641_v48  ;;  %v780_v53 = vpack.c.bf16 %v660_v50, %v654_v49 }
 0x160   : > { %922 = vmatpush1.bf16.msra.mxu0 %v719_v59  ;;  %v672_v59 = vld [vmem:[%s3596_s3 + $0x4d8] sm:$0xff] }
 0x161   : > { %923 = vmatprep.subr.bf16.mxu0 %v726_v60  ;;  %v779_v60 = vpack.c.bf16 %v659_v55, %v653_v54  ;;  %v786_v61 = vpack.c.bf16 %v672_v59, %v666_v56 }
 0x164   : > { %924 = vmatpush1.bf16.msra.mxu0 %v725_v3  ;;  %v684_v3 = vld [vmem:[%s3596_s3 + $0x538] sm:$0xff] }
 0x165   : > { %925 = vmatprep.subr.bf16.mxu0 %v732_v4  ;;  %v785_v4 = vpack.c.bf16 %v671_v1, %v665_v63  ;;  %v792_v5 = vpack.c.bf16 %v684_v3, %v678_v2 }
 0x168   : > { %926 = vmatpush1.bf16.msra.mxu0 %v731_v8  ;;  %v696_v8 = vld [vmem:[%s3596_s3 + $0x598] sm:$0xff] }
 0x169   : > { %927 = vmatprep.subr.bf16.mxu0 %v738_v9  ;;  %v791_v9 = vpack.c.bf16 %v683_v0, %v677_v6  ;;  %v798_v10 = vpack.c.bf16 %v696_v8, %v690_v7 }
 0x16c   : > { %928 = vmatpush1.bf16.msra.mxu0 %v737_v14  ;;  %v708_v14 = vld [vmem:[%s3596_s3 + $0x5f8] sm:$0xff] }
 0x16d   : > { %929 = vmatprep.subr.bf16.mxu0 %v744_v15  ;;  %v797_v15 = vpack.c.bf16 %v695_v12, %v689_v11  ;;  %v804_v16 = vpack.c.bf16 %v708_v14, %v702_v13 }
 0x170   : > { %930 = vmatpush1.bf16.msra.mxu0 %v743_v20  ;;  %v2162_v20 = vmov 0.0  }
 0x171   : > { %931 = vmatprep.subr.bf16.mxu0 %v750_v21  ;;  %2062 = vmatprep.subr.bf16.mxu1 %v2162_v20  ;;  %v817_v21 = vsub.s32 2, %v2483_v57 }
 0x172   : > { %2064 = vmatprep.mubr.msk.bf16.mxu1 %vm2163_vm1, %v2162_v20 }
 0x173   : > { %v818_v23 = vrot.slane %v2880_v22, %v817_v21  ;;  %v814_v21 = vrot.slane %v2880_v22, %v2668_v31 }
 0x174   : > { %932 = vmatpush1.bf16.msra.mxu0 %v749_v26 }
 0x175   : > { %933 = vmatprep.subr.bf16.mxu0 %v756_v27 }
 0x178   : > { %934 = vmatpush1.bf16.msra.mxu0 %v755_v34 }
 0x179   : > { %935 = vmatprep.subr.bf16.mxu0 %v762_v35 }
 0x17c   : > { %936 = vmatpush1.bf16.msra.mxu0 %v761_v40  ;;  %v826_v40 = vrot.slane %v2880_v22, %v825_v39 }
 0x17d   : > { %937 = vmatprep.subr.bf16.mxu0 %v768_v41 }
 0x180   : > { %938 = vmatpush1.bf16.msra.mxu0 %v767_v46 }
 0x181   : > { %939 = vmatprep.subr.bf16.mxu0 %v774_v47 }
 0x184   : > { %940 = vmatpush1.bf16.msra.mxu0 %v773_v52 }
 0x185   : > { %941 = vmatprep.subr.bf16.mxu0 %v780_v53 }
 0x188   : > { %942 = vmatpush1.bf16.msra.mxu0 %v779_v60 }
 0x189   : > { %943 = vmatprep.subr.bf16.mxu0 %v786_v61 }
 0x18c   : > { %944 = vmatpush1.bf16.msra.mxu0 %v785_v4 }
 0x18d   : > { %945 = vmatprep.subr.bf16.mxu0 %v792_v5 }
 0x190   : > { %946 = vmatpush1.bf16.msra.mxu0 %v791_v9 }
 0x191   : > { %947 = vmatprep.subr.bf16.mxu0 %v798_v10 }
 0x194   : > { %948 = vmatpush1.bf16.msra.mxu0 %v797_v15 }
 0x195   : > { %949 = vmatprep.subr.bf16.mxu0 %v804_v16 }
 0x198   : > { %950 = vmatpush1.bf16.msra.mxu0 %v803_v19 }
 0x19b   : > { %952 = vmatmul.mubr.bf16.vlgmr.msra.gmra.mrb[4].mxu0 %v2694_v51 }
 0x22e   : > { %v871_v24 = vpop.f32.mrb[0].mxu0  ;;  %v912_v25 = vpop.f32.mrb[0].mxu1 }
 0x22f   : > { %v913_v26 = vadd.f32 %v912_v25, %v818_v23  ;;  %v2883_v51 = vpop.f32.mrb[1].mxu0  ;;  %v2885_v27 = vpop.f32.mrb[1].mxu1  ;;  %v872_v37 = vadd.f32 %v871_v24, %v810_v32  ;;  %v821_v25 = vsub.s32 3, %v2483_v57 }
 0x230   : > { %v875_v28 = vpop.f32.mrb[2].mxu0  ;;  %v916_v29 = vpop.f32.mrb[2].mxu1  ;;  %v874_v23 = vadd.f32 %v2883_v51, %v814_v21  ;;  %v829_v51 = vsub.s32 5, %v2483_v57 }
 0x231   : > { %v961_v33 = vpack.c.bf16 %v913_v26, %v913_v26  ;;  %v876_v34 = vpop.f32.mrb[3].mxu0  ;;  %v917_v35 = vpop.f32.mrb[3].mxu1  ;;  %v960_v38 = vpack.c.bf16 %v872_v37, %v872_v37  ;;  %v822_v28 = vrot.slane %v2880_v22, %v821_v25  ;;  %v1423_v25 = vld [vmem:[%s3598_s5 + $0x18] sm:$0xff] }
 0x232   : > { %v1186_v24 = vpack.c.bf16 %v874_v23, %v874_v23 }
 0x233   : > { %v967_v36 = vsel %vm962_vm2, %v961_v33, 0  ;;  %1076 = vrot.lane.b32.xlu0 %v961_v33, %s2164_s14  ;;  %v915_v33 = vadd.f32 %v2885_v27, %v822_v28 }
 0x234   : > { %2063 = vmatpush3.bf16.xpose.msra.mxu1 %v967_v36  ;;  %v830_v36 = vrot.slane %v2880_v22, %v829_v51 }
 0x235   : > { %2068 = vmatprep.subr.bf16.mxu1 %v2162_v20  ;;  %v1187_v35 = vpack.c.bf16 %v915_v33, %v915_v33  ;;  %v1427_v33 = vld [vmem:[%s3598_s5 + $0x38] sm:$0xff] }
 0x237   : > { %v1192_v39 = vsel %vm962_vm2, %v1187_v35, 0 }
 0x23b   : > { %2065 = vmatmul.mubr.msk.bf16.vlgmr.msra.gmra.mrb[4].mxu1 %vm962_vm2, %v960_v38 }
 0x23c   : > { %2070 = vmatprep.mubr.msk.bf16.mxu1 %vm2163_vm1, %v2162_v20 }
 0x26e   : > { %v953_v41 = vpop.f32.mrb[4].mxu0 }
 0x26f   : > { %v954_v42 = vadd.f32 %v953_v41, %v826_v40  ;;  %v2897_v43 = vpop.f32.mrb[5].mxu0 }
 0x270   : > { %v957_v44 = vpop.f32.mrb[6].mxu0  ;;  %v956_v40 = vadd.f32 %v2897_v43, %v830_v36  ;;  %v1426_v36 = vld [vmem:[%s3598_s5 + $0x30] sm:$0xff] }
 0x271   : > { %v1023_v45 = vpack.c.bf16 %v954_v42, %v954_v42  ;;  %v958_v46 = vpop.f32.mrb[7].mxu0 }
 0x272   : > { %v1247_v27 = vpack.c.bf16 %v956_v40, %v956_v40 }
 0x273   : > { %v1030_v47 = vsel %vm1028_vm3, %v1023_v45, 0 }
 0x274   : > { %2069 = vmatpush3.bf16.msra.mxu1 %v1030_v47  ;;  %v1252_v57 = vsel %vm1028_vm3, %v1247_v27, 0 }
 0x275   : > { %2074 = vmatprep.subr.bf16.mxu1 %v2162_v20 }
 0x2a5   : > { %v1077_v2 = vpop.permute.xlu0 %1076 }
 0x2a6   : > { %v1082_v4 = vsel %vm962_vm2, %v1077_v2, 0 }
 0x30e   : > { %v1003_v48 = vpop.f32.mrb[4].mxu1 }
 0x30f   : > { %v1009_v62 = vmul.f32 0.125, %v1003_v48  ;;  %v2066_v49 = vpop.f32.mrb[5].mxu1 }
 0x310   : > { %v1006_v50 = vpop.f32.mrb[6].mxu1 }
 0x311   : > { %v2067_v52 = vpop.f32.mrb[7].mxu1  ;;  %v1011_v53 = vsel %vm1010_vm4, %v1009_v62, -inf }
 0x312   : > { %1012 = vmax.xlane.f32.xlu1 %v1011_v53 }
 0x39f   : > { %v1013_v54 = vpop.xlane.xlu1 %1012 }
 0x3a0   : > { %v1014_v55 = vsub.f32 %v1009_v62, %v1013_v54 }
 0x3a2   : > { %v1015_v56 = vmul.f32 1.442695, %v1014_v55 }
 0x3a4   : > { %2130 = vpow2.f32 %v1015_v56 }
 0x3ae   : > { %v2131_v59 = vpop.eup %2130 }
 0x3af   : > { %v1017_v60 = vsel %vm1010_vm4, %v2131_v59, 0.0 }
 0x3b0   : > { %1018 = vadd.xlane.f32.xlu1 %v1017_v60 }
 0x3c1   : > { %1073 = vrot.lane.b32.xlu1 %v960_v38, %s2164_s14 }
 0x43d   : > { %v1019_v61 = vpop.xlane.xlu1 %1018 }
 0x43e   : > { %2132 = vrcp.f32 %v1019_v61 }
 0x441   : > { %v1074_v5 = vpop.permute.xlu1 %1073 }
 0x448   : > { %v2133_v63 = vpop.eup %2132 }
 0x449   : > { %v1021_v1 = vmul.f32 %v2133_v63, %v2131_v59 }
 0x44b   : > { %v1022_v3 = vpack.c.bf16 %v1021_v1, %v1021_v1 }
 0x44d   : > { %2071 = vmatmul.mubr.msk.bf16.vlgmr.msra.gmra.mrb[8].mxu1 %vm1024_vm5, %v1022_v3 }
 0x44e   : > { %2075 = vmatpush3.bf16.xpose.msra.mxu1 %v1082_v4  ;;  %2076 = vmatprep.mubr.msk.bf16.mxu1 %vm2163_vm1, %v2162_v20 }
 0x44f   : > { %2080 = vmatprep.subr.bf16.mxu1 %v2162_v20 }
 0x455   : > { %2077 = vmatmul.mubr.msk.bf16.vlgmr.msra.gmra.mrb[12].mxu1 %vm962_vm2, %v1074_v5 }
 0x456   : > { %2082 = vmatprep.mubr.msk.bf16.mxu1 %vm2163_vm1, %v2162_v20 }
 0x520   : > { %v2912_v6 = vpop.f32.mrb[8].mxu1 }
 0x521   : > { %v2072_v0 = vpop.f32.mrb[9].mxu1 }
 0x522   : > { %v1069_v7 = vpop.f32.mrb[10].mxu1 }
 0x523   : > { %v2073_v8 = vpop.f32.mrb[11].mxu1 }
 0x528   : > { %v1118_v9 = vpop.f32.mrb[12].mxu1 }
 0x529   : > { %v1124_v10 = vmul.f32 0.125, %v1118_v9  ;;  %v2078_v11 = vpop.f32.mrb[13].mxu1 }
 0x52a   : > { %v1121_v12 = vpop.f32.mrb[14].mxu1 }
 0x52b   : > { %v2079_v13 = vpop.f32.mrb[15].mxu1  ;;  %v1125_v14 = vsel %vm1010_vm4, %v1124_v10, -inf }
 0x52c   : > { %1126 = vmax.xlane.f32.xlu1 %v1125_v14 }
 0x5b9   : > { %v1127_v15 = vpop.xlane.xlu1 %1126 }
 0x5ba   : > { %v1128_v16 = vsub.f32 %v1124_v10, %v1127_v15 }
 0x5bc   : > { %v1129_v17 = vmul.f32 1.442695, %v1128_v16 }
 0x5be   : > { %2134 = vpow2.f32 %v1129_v17 }
 0x5c8   : > { %v2135_v18 = vpop.eup %2134 }
 0x5c9   : > { %v1131_v19 = vsel %vm1010_vm4, %v2135_v18, 0.0 }
 0x5ca   : > { %1132 = vadd.xlane.f32.xlu0 %v1131_v19 }
 0x5e0   : > { %1138 = vrot.lane.b32.xlu0 %v1023_v45, %s2164_s14 }
 0x5e4   : > { %1295 = vrot.lane.b32.xlu0 %v1186_v24, %s2164_s14 }
 0x657   : > { %v1133_v26 = vpop.xlane.xlu0 %1132 }
 0x658   : > { %2136 = vrcp.f32 %v1133_v26  ;;  %v1420_v26 = vld [vmem:[%s3598_s5] sm:$0xff] }
 0x65b   : > { %v1139_v29 = vpop.permute.xlu0 %1138 }
 0x65c   : > { %v1144_v32 = vsel %vm1028_vm3, %v1139_v29, 0  ;;  %v1422_v29 = vld [vmem:[%s3598_s5 + $0x10] sm:$0xff] }
 0x65d   : > { %2081 = vmatpush3.bf16.msra.mxu1 %v1144_v32  ;;  %v1425_v32 = vld [vmem:[%s3598_s5 + $0x28] sm:$0xff]  ;;  %v1484_v51 = vpack.c.bf16 %v1422_v29, %v1420_v26  ;;  %v1463_v26 = vld [vmem:[%s3598_s5 + $0x158] sm:$0xff] }
 0x65e   : > { %2086 = vmatprep.subr.bf16.mxu1 %v2162_v20 }
 0x65f   : > { %v1296_v1 = vpop.permute.xlu0 %1295 }
 0x662   : > { %v2137_v34 = vpop.eup %2136 }
 0x663   : > { %v1135_v37 = vmul.f32 %v2137_v34, %v2135_v18  ;;  %v1487_v34 = vpack.c.bf16 %v1427_v33, %v1425_v32  ;;  %v1460_v32 = vld [vmem:[%s3598_s5 + $0x140] sm:$0xff]  ;;  %v1462_v33 = vld [vmem:[%s3598_s5 + $0x150] sm:$0xff] }
 0x665   : > { %v1136_v38 = vpack.c.bf16 %v1135_v37, %v1135_v37  ;;  %v1429_v37 = vld [vmem:[%s3598_s5 + $0x48] sm:$0xff] }
 0x667   : > { %2083 = vmatmul.mubr.msk.bf16.vlgmr.msra.gmra.mrb[16].mxu1 %vm1024_vm5, %v1136_v38  ;;  %v1431_v38 = vld [vmem:[%s3598_s5 + $0x58] sm:$0xff] }
 0x668   : > { %2087 = vmatpush3.bf16.xpose.msra.mxu1 %v1192_v39  ;;  %2088 = vmatprep.mubr.msk.bf16.mxu1 %vm2163_vm1, %v2162_v20  ;;  %v1489_v40 = vpack.c.bf16 %v1431_v38, %v1429_v37  ;;  %v1464_v37 = vld [vmem:[%s3598_s5 + $0x160] sm:$0xff]  ;;  %v1466_v38 = vld [vmem:[%s3598_s5 + $0x170] sm:$0xff] }
 0x669   : > { %2092 = vmatprep.subr.bf16.mxu1 %v2162_v20 }
 0x66f   : > { %2089 = vmatmul.mubr.msk.bf16.vlgmr.msra.gmra.mrb[20].mxu1 %vm962_vm2, %v1186_v24  ;;  %v1421_v24 = vld [vmem:[%s3598_s5 + $0x8] sm:$0xff] }
 0x670   : > { %2093 = vmatpush3.bf16.msra.mxu1 %v1252_v57  ;;  %2094 = vmatprep.mubr.msk.bf16.mxu1 %vm2163_vm1, %v2162_v20  ;;  %v1485_v28 = vpack.c.bf16 %v1423_v25, %v1421_v24  ;;  %v1430_v57 = vld [vmem:[%s3598_s5 + $0x50] sm:$0xff]  ;;  %v1461_v25 = vld [vmem:[%s3598_s5 + $0x148] sm:$0xff] }
 0x671   : > { %2098 = vmatprep.subr.bf16.mxu1 %v2162_v20  ;;  %v1458_v24 = vld [vmem:[%s3598_s5 + $0x130] sm:$0xff]  ;;  %v1505_v29 = vpack.c.bf16 %v1463_v26, %v1461_v25 }
 0x672   : > { %1528 = vmatprep.subr.bf16.mxu0 %v1485_v28 }
 0x673   : > { %1529 = vmatpush1.bf16.msra.mxu0 %v1484_v51  ;;  %v1465_v51 = vld [vmem:[%s3598_s5 + $0x168] sm:$0xff] }
 0x674   : > { %1530 = vmatprep.subr.bf16.mxu0 %v1487_v34  ;;  %v1467_v34 = vld [vmem:[%s3598_s5 + $0x178] sm:$0xff] }
 0x73a   : > { %v2939_v22 = vpop.f32.mrb[16].mxu1 }
 0x73b   : > { %v2084_v41 = vpop.f32.mrb[17].mxu1 }
 0x73c   : > { %v1183_v42 = vpop.f32.mrb[18].mxu1  ;;  %v1433_v41 = vld [vmem:[%s3598_s5 + $0x68] sm:$0xff] }
 0x73d   : > { %v2085_v43 = vpop.f32.mrb[19].mxu1  ;;  %v1435_v42 = vld [vmem:[%s3598_s5 + $0x78] sm:$0xff] }
 0x742   : > { %v1228_v44 = vpop.f32.mrb[20].mxu1 }
 0x743   : > { %v1234_v45 = vmul.f32 0.125, %v1228_v44  ;;  %v2090_v46 = vpop.f32.mrb[21].mxu1  ;;  %v1491_v44 = vpack.c.bf16 %v1435_v42, %v1433_v41  ;;  %v1468_v41 = vld [vmem:[%s3598_s5 + $0x180] sm:$0xff]  ;;  %v1470_v42 = vld [vmem:[%s3598_s5 + $0x190] sm:$0xff] }
 0x744   : > { %v1231_v47 = vpop.f32.mrb[22].mxu1  ;;  %v1434_v46 = vld [vmem:[%s3598_s5 + $0x70] sm:$0xff] }
 0x745   : > { %v2091_v48 = vpop.f32.mrb[23].mxu1  ;;  %v1235_v62 = vsel %vm1010_vm4, %v1234_v45, -inf  ;;  %v1437_v47 = vld [vmem:[%s3598_s5 + $0x88] sm:$0xff] }
 0x746   : > { %1236 = vmax.xlane.f32.xlu1 %v1235_v62  ;;  %v1439_v48 = vld [vmem:[%s3598_s5 + $0x98] sm:$0xff] }
 0x7d3   : > { %v1237_v49 = vpop.xlane.xlu1 %1236 }
 0x7d4   : > { %v1238_v50 = vsub.f32 %v1234_v45, %v1237_v49  ;;  %v1432_v45 = vld [vmem:[%s3598_s5 + $0x60] sm:$0xff]  ;;  %v1493_v49 = vpack.c.bf16 %v1439_v48, %v1437_v47  ;;  %v1474_v48 = vld [vmem:[%s3598_s5 + $0x1b0] sm:$0xff] }
 0x7d5   : > { %v1490_v62 = vpack.c.bf16 %v1434_v46, %v1432_v45  ;;  %v1508_v45 = vpack.c.bf16 %v1470_v42, %v1468_v41  ;;  %v1472_v47 = vld [vmem:[%s3598_s5 + $0x1a0] sm:$0xff]  ;;  %v1657_v41 = vld [vmem:[%s3602_s9 + $0x58] sm:$0xff] }
 0x7d6   : > { %v1239_v52 = vmul.f32 1.442695, %v1238_v50  ;;  %v1436_v50 = vld [vmem:[%s3598_s5 + $0x80] sm:$0xff] }
 0x7d8   : > { %2138 = vpow2.f32 %v1239_v52  ;;  %v1438_v52 = vld [vmem:[%s3598_s5 + $0x90] sm:$0xff] }
 0x7e2   : > { %v2139_v53 = vpop.eup %2138 }
 0x7e3   : > { %v1241_v54 = vsel %vm1010_vm4, %v2139_v53, 0.0 }
 0x7e4   : > { %1242 = vadd.xlane.f32.xlu1 %v1241_v54  ;;  %v1443_v54 = vld [vmem:[%s3598_s5 + $0xb8] sm:$0xff] }
 0x7f5   : > { %1298 = vrot.lane.b32.xlu1 %v1187_v35, %s2164_s14  ;;  %v1424_v35 = vld [vmem:[%s3598_s5 + $0x20] sm:$0xff] }
 0x7f6   : > { %v1486_v39 = vpack.c.bf16 %v1426_v36, %v1424_v35  ;;  %v1504_v35 = vpack.c.bf16 %v1462_v33, %v1460_v32  ;;  %v1507_v36 = vpack.c.bf16 %v1467_v34, %v1465_v51  ;;  %v1647_v32 = vld [vmem:[%s3602_s9 + $0x8] sm:$0xff]  ;;  %v1649_v33 = vld [vmem:[%s3602_s9 + $0x18] sm:$0xff]  ;;  %v1646_v51 = vld [vmem:[%s3602_s9] sm:$0xff] }
 0x7f7   : > { %v1711_v34 = vpack.c.bf16 %v1649_v33, %v1647_v32 }
 0x7f8   : > { %1531 = vmatpush1.bf16.msra.mxu0 %v1486_v39  ;;  %v1469_v39 = vld [vmem:[%s3598_s5 + $0x188] sm:$0xff] }
 0x7f9   : > { %1532 = vmatprep.subr.bf16.mxu0 %v1489_v40  ;;  %v1471_v40 = vld [vmem:[%s3598_s5 + $0x198] sm:$0xff] }
 0x871   : > { %v1243_v55 = vpop.xlane.xlu1 %1242 }
 0x872   : > { %2140 = vrcp.f32 %v1243_v55  ;;  %v1492_v55 = vpack.c.bf16 %v1438_v52, %v1436_v50  ;;  %v1510_v50 = vpack.c.bf16 %v1474_v48, %v1472_v47  ;;  %v1661_v47 = vld [vmem:[%s3602_s9 + $0x78] sm:$0xff] }
 0x875   : > { %v1299_v60 = vpop.permute.xlu1 %1298 }
 0x876   : > { %v1304_v63 = vsel %vm962_vm2, %v1299_v60, 0  ;;  %v1442_v60 = vld [vmem:[%s3598_s5 + $0xb0] sm:$0xff] }
 0x87c   : > { %v2141_v56 = vpop.eup %2140 }
 0x87d   : > { %v1245_v59 = vmul.f32 %v2141_v56, %v2139_v53  ;;  %v1441_v53 = vld [vmem:[%s3598_s5 + $0xa8] sm:$0xff] }
 0x87e   : > { %v1495_v56 = vpack.c.bf16 %v1443_v54, %v1441_v53  ;;  %v1476_v53 = vld [vmem:[%s3598_s5 + $0x1c0] sm:$0xff]  ;;  %v1478_v54 = vld [vmem:[%s3598_s5 + $0x1d0] sm:$0xff] }
 0x87f   : > { %v1246_v61 = vpack.c.bf16 %v1245_v59, %v1245_v59  ;;  %v1440_v59 = vld [vmem:[%s3598_s5 + $0xa0] sm:$0xff] }
 0x881   : > { %2095 = vmatmul.mubr.msk.bf16.vlgmr.msra.gmra.mrb[24].mxu1 %vm1024_vm5, %v1246_v61  ;;  %v1445_v61 = vld [vmem:[%s3598_s5 + $0xc8] sm:$0xff] }
 0x882   : > { %2099 = vmatpush3.bf16.xpose.msra.mxu1 %v1304_v63  ;;  %2100 = vmatprep.mubr.msk.bf16.mxu1 %vm2163_vm1, %v2162_v20  ;;  %v1447_v63 = vld [vmem:[%s3598_s5 + $0xd8] sm:$0xff] }
 0x883   : > { %2104 = vmatprep.subr.bf16.mxu1 %v2162_v20 }
 0x889   : > { %2101 = vmatmul.mubr.msk.bf16.vlgmr.msra.gmra.mrb[28].mxu1 %vm962_vm2, %v1296_v1  ;;  %v1494_v1 = vpack.c.bf16 %v1442_v60, %v1440_v59  ;;  %v1483_v59 = vld [vmem:[%s3598_s5 + $0x1f8] sm:$0xff] }
 0x88a   : > { %2106 = vmatprep.mubr.msk.bf16.mxu1 %vm2163_vm1, %v2162_v20 }
 0x954   : > { %v2952_v2 = vpop.f32.mrb[24].mxu1 }
 0x955   : > { %v2096_v3 = vpop.f32.mrb[25].mxu1 }
 0x956   : > { %v1291_v4 = vpop.f32.mrb[26].mxu1  ;;  %v1497_v3 = vpack.c.bf16 %v1447_v63, %v1445_v61  ;;  %v1480_v61 = vld [vmem:[%s3598_s5 + $0x1e0] sm:$0xff]  ;;  %v1482_v63 = vld [vmem:[%s3598_s5 + $0x1f0] sm:$0xff] }
 0x957   : > { %v2097_v5 = vpop.f32.mrb[27].mxu1  ;;  %v1444_v4 = vld [vmem:[%s3598_s5 + $0xc0] sm:$0xff] }
 0x958   : > { %v1446_v5 = vld [vmem:[%s3598_s5 + $0xd0] sm:$0xff] }
 0x95c   : > { %v1340_v0 = vpop.f32.mrb[28].mxu1 }
 0x95d   : > { %v1346_v7 = vmul.f32 0.125, %v1340_v0  ;;  %v2102_v8 = vpop.f32.mrb[29].mxu1  ;;  %v1449_v0 = vld [vmem:[%s3598_s5 + $0xe8] sm:$0xff] }
 0x95e   : > { %v1343_v9 = vpop.f32.mrb[30].mxu1  ;;  %v1496_v8 = vpack.c.bf16 %v1446_v5, %v1444_v4 }
 0x95f   : > { %v2103_v10 = vpop.f32.mrb[31].mxu1  ;;  %v1347_v11 = vsel %vm1010_vm4, %v1346_v7, -inf }
 0x960   : > { %1348 = vmax.xlane.f32.xlu1 %v1347_v11  ;;  %v1448_v10 = vld [vmem:[%s3598_s5 + $0xe0] sm:$0xff]  ;;  %v1450_v11 = vld [vmem:[%s3598_s5 + $0xf0] sm:$0xff] }
 0x9ed   : > { %v1349_v12 = vpop.xlane.xlu1 %1348 }
 0x9ee   : > { %v1350_v13 = vsub.f32 %v1346_v7, %v1349_v12  ;;  %v1451_v7 = vld [vmem:[%s3598_s5 + $0xf8] sm:$0xff]  ;;  %v1453_v12 = vld [vmem:[%s3598_s5 + $0x108] sm:$0xff] }
 0x9ef   : > { %v1499_v9 = vpack.c.bf16 %v1451_v7, %v1449_v0 }
 0x9f0   : > { %v1351_v14 = vmul.f32 1.442695, %v1350_v13  ;;  %v1455_v13 = vld [vmem:[%s3598_s5 + $0x118] sm:$0xff] }
 0x9f2   : > { %2142 = vpow2.f32 %v1351_v14  ;;  %v1498_v14 = vpack.c.bf16 %v1450_v11, %v1448_v10 }
 0x9fc   : > { %v2143_v15 = vpop.eup %2142 }
 0x9fd   : > { %v1353_v20 = vsel %vm1010_vm4, %v2143_v15, 0.0 }
 0x9fe   : > { %1354 = vadd.xlane.f32.xlu0 %v1353_v20  ;;  %v1452_v20 = vld [vmem:[%s3598_s5 + $0x100] sm:$0xff] }
 0xa14   : > { %1360 = vrot.lane.b32.xlu0 %v1247_v27, %s2164_s14  ;;  %v1428_v27 = vld [vmem:[%s3598_s5 + $0x40] sm:$0xff] }
 0xa15   : > { %v1488_v43 = vpack.c.bf16 %v1430_v57, %v1428_v27  ;;  %v1506_v27 = vpack.c.bf16 %v1466_v38, %v1464_v37  ;;  %v1509_v57 = vpack.c.bf16 %v1471_v40, %v1469_v39  ;;  %v1653_v37 = vld [vmem:[%s3602_s9 + $0x38] sm:$0xff]  ;;  %v1650_v40 = vld [vmem:[%s3602_s9 + $0x20] sm:$0xff] }
 0xa17   : > { %1533 = vmatpush1.bf16.msra.mxu0 %v1488_v43  ;;  %v1473_v43 = vld [vmem:[%s3598_s5 + $0x1a8] sm:$0xff] }
 0xa18   : > { %1534 = vmatprep.subr.bf16.mxu0 %v1491_v44  ;;  %v1475_v44 = vld [vmem:[%s3598_s5 + $0x1b8] sm:$0xff] }
 0xa19   : > { %v1511_v46 = vpack.c.bf16 %v1475_v44, %v1473_v43  ;;  %v1654_v44 = vld [vmem:[%s3602_s9 + $0x40] sm:$0xff] }
 0xa1b   : > { %1535 = vmatpush1.bf16.msra.mxu0 %v1490_v62  ;;  %v1477_v62 = vld [vmem:[%s3598_s5 + $0x1c8] sm:$0xff] }
 0xa1c   : > { %1536 = vmatprep.subr.bf16.mxu0 %v1493_v49  ;;  %v1479_v49 = vld [vmem:[%s3598_s5 + $0x1d8] sm:$0xff] }
 0xa1d   : > { %v1513_v52 = vpack.c.bf16 %v1479_v49, %v1477_v62  ;;  %v1658_v49 = vld [vmem:[%s3602_s9 + $0x60] sm:$0xff] }
 0xa1f   : > { %1537 = vmatpush1.bf16.msra.mxu0 %v1492_v55  ;;  %v1512_v55 = vpack.c.bf16 %v1478_v54, %v1476_v53  ;;  %v1665_v53 = vld [vmem:[%s3602_s9 + $0x98] sm:$0xff] }
 0xa20   : > { %1538 = vmatprep.subr.bf16.mxu0 %v1495_v56  ;;  %v1481_v56 = vld [vmem:[%s3598_s5 + $0x1e8] sm:$0xff] }
 0xa21   : > { %v1515_v60 = vpack.c.bf16 %v1483_v59, %v1481_v56  ;;  %v1662_v56 = vld [vmem:[%s3602_s9 + $0x80] sm:$0xff]  ;;  %v1664_v59 = vld [vmem:[%s3602_s9 + $0x90] sm:$0xff] }
 0xa23   : > { %1539 = vmatpush1.bf16.msra.mxu0 %v1494_v1  ;;  %v1514_v1 = vpack.c.bf16 %v1482_v63, %v1480_v61  ;;  %v1669_v61 = vld [vmem:[%s3602_s9 + $0xb8] sm:$0xff]  ;;  %v1718_v63 = vpack.c.bf16 %v1664_v59, %v1662_v56  ;;  %v1699_v56 = vld [vmem:[%s3602_s9 + $0x1a8] sm:$0xff] }
 0xa24   : > { %1540 = vmatprep.subr.bf16.mxu0 %v1497_v3  ;;  %v1701_v59 = vld [vmem:[%s3602_s9 + $0x1b8] sm:$0xff] }
 0xa27   : > { %1541 = vmatpush1.bf16.msra.mxu0 %v1496_v8 }
 0xa28   : > { %1542 = vmatprep.subr.bf16.mxu0 %v1499_v9 }
 0xa2b   : > { %1543 = vmatpush1.bf16.msra.mxu0 %v1498_v14 }
 0xa8b   : > { %v1355_v16 = vpop.xlane.xlu0 %1354 }
 0xa8c   : > { %2144 = vrcp.f32 %v1355_v16  ;;  %v1454_v16 = vld [vmem:[%s3598_s5 + $0x110] sm:$0xff] }
 0xa8f   : > { %v1361_v17 = vpop.permute.xlu0 %1360 }
 0xa90   : > { %v1366_v18 = vsel %vm1028_vm3, %v1361_v17, 0  ;;  %v1457_v17 = vld [vmem:[%s3598_s5 + $0x128] sm:$0xff] }
 0xa91   : > { %2105 = vmatpush3.bf16.msra.mxu1 %v1366_v18  ;;  %v1459_v18 = vld [vmem:[%s3598_s5 + $0x138] sm:$0xff] }
 0xa92   : > { %1754 = vmatprep.subr.bf16.mxu1 %v1711_v34  ;;  %v1683_v34 = vld [vmem:[%s3602_s9 + $0x128] sm:$0xff] }
 0xa96   : > { %v2145_v19 = vpop.eup %2144 }
 0xa97   : > { %v1357_v21 = vmul.f32 %v2145_v19, %v2143_v15  ;;  %v1501_v15 = vpack.c.bf16 %v1455_v13, %v1453_v12  ;;  %v1500_v19 = vpack.c.bf16 %v1454_v16, %v1452_v20 }
 0xa99   : > { %v1358_v23 = vpack.c.bf16 %v1357_v21, %v1357_v21  ;;  %1544 = vmatprep.subr.bf16.mxu0 %v1501_v15  ;;  %v1503_v21 = vpack.c.bf16 %v1459_v18, %v1457_v17 }
 0xa9a   : > { %1545 = vmatpush1.bf16.msra.mxu0 %v1500_v19 }
 0xa9b   : > { %2107 = vmatmul.mubr.msk.bf16.vlgmr.msra.gmra.mrb[32].mxu1 %vm1024_vm5, %v1358_v23  ;;  %v1456_v23 = vld [vmem:[%s3598_s5 + $0x120] sm:$0xff]  ;;  %1546 = vmatprep.subr.bf16.mxu0 %v1503_v21 }
 0xa9c   : > { %v1502_v28 = vpack.c.bf16 %v1458_v24, %v1456_v23 }
 0xa9e   : > { %1547 = vmatpush1.bf16.msra.mxu0 %v1502_v28 }
 0xa9f   : > { %1548 = vmatprep.subr.bf16.mxu0 %v1505_v29 }
 0xaa2   : > { %1549 = vmatpush1.bf16.msra.mxu0 %v1504_v35  ;;  %v1648_v35 = vld [vmem:[%s3602_s9 + $0x10] sm:$0xff] }
 0xaa3   : > { %1550 = vmatprep.subr.bf16.mxu0 %v1507_v36  ;;  %v1651_v36 = vld [vmem:[%s3602_s9 + $0x28] sm:$0xff]  ;;  %v1710_v38 = vpack.c.bf16 %v1648_v35, %v1646_v51  ;;  %v1685_v35 = vld [vmem:[%s3602_s9 + $0x138] sm:$0xff] }
 0xaa4   : > { %v1713_v39 = vpack.c.bf16 %v1653_v37, %v1651_v36  ;;  %v1729_v36 = vpack.c.bf16 %v1685_v35, %v1683_v34  ;;  %v1682_v37 = vld [vmem:[%s3602_s9 + $0x120] sm:$0xff]  ;;  %v1828_v34 = vld [vmem:[%s3604_s11 + $0x68] sm:$0xff]  ;;  %v1830_v35 = vld [vmem:[%s3604_s11 + $0x78] sm:$0xff] }
 0xaa5   : > { %1755 = vmatpush1.bf16.msra.mxu1 %v1710_v38  ;;  %v1684_v38 = vld [vmem:[%s3602_s9 + $0x130] sm:$0xff] }
 0xaa6   : > { %1551 = vmatpush1.bf16.msra.mxu0 %v1506_v27  ;;  %v1652_v27 = vld [vmem:[%s3602_s9 + $0x30] sm:$0xff]  ;;  %1756 = vmatprep.subr.bf16.mxu1 %v1713_v39  ;;  %v1728_v39 = vpack.c.bf16 %v1684_v38, %v1682_v37  ;;  %v1886_v37 = vpack.c.bf16 %v1830_v35, %v1828_v34  ;;  %v1827_v38 = vld [vmem:[%s3604_s11 + $0x60] sm:$0xff]  ;;  %v1856_v35 = vld [vmem:[%s3604_s11 + $0x148] sm:$0xff] }
 0xaa7   : > { %1552 = vmatprep.subr.bf16.mxu0 %v1509_v57  ;;  %v1655_v57 = vld [vmem:[%s3602_s9 + $0x48] sm:$0xff]  ;;  %v1712_v42 = vpack.c.bf16 %v1652_v27, %v1650_v40  ;;  %v1689_v27 = vld [vmem:[%s3602_s9 + $0x158] sm:$0xff] }
 0xaa8   : > { %v1715_v43 = vpack.c.bf16 %v1657_v41, %v1655_v57  ;;  %v1687_v40 = vld [vmem:[%s3602_s9 + $0x148] sm:$0xff]  ;;  %v1686_v41 = vld [vmem:[%s3602_s9 + $0x140] sm:$0xff] }
 0xaa9   : > { %1757 = vmatpush1.bf16.msra.mxu1 %v1712_v42  ;;  %v1731_v57 = vpack.c.bf16 %v1689_v27, %v1687_v40  ;;  %v1688_v42 = vld [vmem:[%s3602_s9 + $0x150] sm:$0xff]  ;;  %v1832_v40 = vld [vmem:[%s3604_s11 + $0x88] sm:$0xff]  ;;  %v1834_v27 = vld [vmem:[%s3604_s11 + $0x98] sm:$0xff] }
 0xaaa   : > { %1553 = vmatpush1.bf16.msra.mxu0 %v1508_v45  ;;  %v1656_v45 = vld [vmem:[%s3602_s9 + $0x50] sm:$0xff]  ;;  %1758 = vmatprep.subr.bf16.mxu1 %v1715_v43  ;;  %v1730_v43 = vpack.c.bf16 %v1688_v42, %v1686_v41  ;;  %v1888_v41 = vpack.c.bf16 %v1834_v27, %v1832_v40  ;;  %v1831_v42 = vld [vmem:[%s3604_s11 + $0x80] sm:$0xff]  ;;  %v1860_v27 = vld [vmem:[%s3604_s11 + $0x168] sm:$0xff] }
 0xaab   : > { %1554 = vmatprep.subr.bf16.mxu0 %v1511_v46  ;;  %v1659_v46 = vld [vmem:[%s3602_s9 + $0x68] sm:$0xff]  ;;  %v1714_v48 = vpack.c.bf16 %v1656_v45, %v1654_v44  ;;  %v1693_v45 = vld [vmem:[%s3602_s9 + $0x178] sm:$0xff] }
 0xaac   : > { %v1717_v62 = vpack.c.bf16 %v1661_v47, %v1659_v46  ;;  %v1691_v44 = vld [vmem:[%s3602_s9 + $0x168] sm:$0xff]  ;;  %v1690_v47 = vld [vmem:[%s3602_s9 + $0x160] sm:$0xff] }
 0xaad   : > { %1759 = vmatpush1.bf16.msra.mxu1 %v1714_v48  ;;  %v1733_v46 = vpack.c.bf16 %v1693_v45, %v1691_v44  ;;  %v1692_v48 = vld [vmem:[%s3602_s9 + $0x170] sm:$0xff]  ;;  %v1836_v44 = vld [vmem:[%s3604_s11 + $0xa8] sm:$0xff]  ;;  %v1838_v45 = vld [vmem:[%s3604_s11 + $0xb8] sm:$0xff] }
 0xaae   : > { %1555 = vmatpush1.bf16.msra.mxu0 %v1510_v50  ;;  %v1660_v50 = vld [vmem:[%s3602_s9 + $0x70] sm:$0xff]  ;;  %1760 = vmatprep.subr.bf16.mxu1 %v1717_v62  ;;  %v1732_v62 = vpack.c.bf16 %v1692_v48, %v1690_v47  ;;  %v1890_v47 = vpack.c.bf16 %v1838_v45, %v1836_v44  ;;  %v1835_v48 = vld [vmem:[%s3604_s11 + $0xa0] sm:$0xff]  ;;  %v1864_v44 = vld [vmem:[%s3604_s11 + $0x188] sm:$0xff] }
 0xaaf   : > { %1556 = vmatprep.subr.bf16.mxu0 %v1513_v52  ;;  %v1663_v52 = vld [vmem:[%s3602_s9 + $0x88] sm:$0xff]  ;;  %v1716_v54 = vpack.c.bf16 %v1660_v50, %v1658_v49  ;;  %v1697_v50 = vld [vmem:[%s3602_s9 + $0x198] sm:$0xff] }
 0xab0   : > { %v1695_v49 = vld [vmem:[%s3602_s9 + $0x188] sm:$0xff]  ;;  %v1866_v45 = vld [vmem:[%s3604_s11 + $0x198] sm:$0xff] }
 0xab1   : > { %1761 = vmatpush1.bf16.msra.mxu1 %v1716_v54  ;;  %v1696_v54 = vld [vmem:[%s3602_s9 + $0x190] sm:$0xff] }
 0xab2   : > { %1557 = vmatpush1.bf16.msra.mxu0 %v1512_v55  ;;  %v1719_v55 = vpack.c.bf16 %v1665_v53, %v1663_v52  ;;  %v1735_v52 = vpack.c.bf16 %v1697_v50, %v1695_v49  ;;  %v1694_v53 = vld [vmem:[%s3602_s9 + $0x180] sm:$0xff]  ;;  %v1840_v49 = vld [vmem:[%s3604_s11 + $0xc8] sm:$0xff]  ;;  %v1842_v50 = vld [vmem:[%s3604_s11 + $0xd8] sm:$0xff] }
 0xab3   : > { %1558 = vmatprep.subr.bf16.mxu0 %v1515_v60  ;;  %v1667_v60 = vld [vmem:[%s3602_s9 + $0xa8] sm:$0xff] }
 0xab4   : > { %1762 = vmatprep.subr.bf16.mxu1 %v1719_v55  ;;  %v1734_v55 = vpack.c.bf16 %v1696_v54, %v1694_v53  ;;  %v1892_v53 = vpack.c.bf16 %v1842_v50, %v1840_v49  ;;  %v1839_v54 = vld [vmem:[%s3604_s11 + $0xc0] sm:$0xff]  ;;  %v1868_v49 = vld [vmem:[%s3604_s11 + $0x1a8] sm:$0xff]  ;;  %v1870_v50 = vld [vmem:[%s3604_s11 + $0x1b8] sm:$0xff] }
 0xab5   : > { %1763 = vmatpush1.bf16.msra.mxu1 %v1718_v63  ;;  %v1700_v63 = vld [vmem:[%s3602_s9 + $0x1b0] sm:$0xff] }
 0xab6   : > { %1559 = vmatpush1.bf16.msra.mxu0 %v1514_v1  ;;  %v1721_v1 = vpack.c.bf16 %v1669_v61, %v1667_v60  ;;  %v1737_v60 = vpack.c.bf16 %v1701_v59, %v1699_v56  ;;  %v1698_v61 = vld [vmem:[%s3602_s9 + $0x1a0] sm:$0xff]  ;;  %v1844_v56 = vld [vmem:[%s3604_s11 + $0xe8] sm:$0xff]  ;;  %v1846_v59 = vld [vmem:[%s3604_s11 + $0xf8] sm:$0xff] }
 0xab8   : > { %1764 = vmatprep.subr.bf16.mxu1 %v1721_v1  ;;  %v1703_v1 = vld [vmem:[%s3602_s9 + $0x1c8] sm:$0xff] }
 0xb6e   : > { %v1402_v3 = vpop.f32.mrb[32].mxu1 }
 0xb6f   : > { %v2122_v4 = vpack.i.bf16 %v2939_v22, %v1402_v3  ;;  %v2108_v5 = vpop.f32.mrb[33].mxu1  ;;  %v1516_v22 = vld [vmem:[%s3599_s6] sm:$0x3] }
 0xb70   : > { %v1405_v0 = vpop.f32.mrb[34].mxu1  ;;  %v1521_v15 = vrot.slane %v1516_v22, %v2665_v30  ;;  %v1525_v20 = vrot.slane %v1516_v22, %v2668_v31  ;;  %v1666_v3 = vld [vmem:[%s3602_s9 + $0xa0] sm:$0xff]  ;;  %v1671_v5 = vld [vmem:[%s3602_s9 + $0xc8] sm:$0xff] }
 0xb71   : > { %2123 = vrot.lane.b32.xlu1 %v2122_v4, %s2164_s14  ;;  %v2109_v7 = vpop.f32.mrb[35].mxu1  ;;  %v1668_v4 = vld [vmem:[%s3602_s9 + $0xb0] sm:$0xff]  ;;  %v1673_v0 = vld [vmem:[%s3602_s9 + $0xd8] sm:$0xff]  ;;  %v1674_v22 = vld [vmem:[%s3602_s9 + $0xe0] sm:$0xff]  ;;  %s440_s14 = scalar_lea.vmem %s3606_s13, %s2044_s27 }
 0xb72   : > { %v1720_v7 = vpack.c.bf16 %v1668_v4, %v1666_v3  ;;  %v1736_v3 = vpack.c.bf16 %v1700_v63, %v1698_v61  ;;  %v1705_v4 = vld [vmem:[%s3602_s9 + $0x1d8] sm:$0xff]  ;;  %v1894_v61 = vpack.c.bf16 %v1846_v59, %v1844_v56  ;;  %v1843_v63 = vld [vmem:[%s3604_s11 + $0xe0] sm:$0xff]  ;;  %v1872_v56 = vld [vmem:[%s3604_s11 + $0x1c8] sm:$0xff] }
 0xb73   : > { %v1874_v59 = vld [vmem:[%s3604_s11 + $0x1d8] sm:$0xff] }
 0xb74   : > { %1765 = vmatpush1.bf16.msra.mxu1 %v1720_v7  ;;  %v1739_v7 = vpack.c.bf16 %v1705_v4, %v1703_v1  ;;  %v1845_v1 = vld [vmem:[%s3604_s11 + $0xf0] sm:$0xff] }
 0xbe3   : > { %v2124_v8 = vpop.permute.xlu1 %2123 }
 0xbe4   : > { %v2126_v9 = vunpack.i.h.bf16 %v2124_v8  ;;  %v2125_v10 = vunpack.i.l.bf16 %v2124_v8  ;;  %v1723_v8 = vpack.c.bf16 %v1673_v0, %v1671_v5  ;;  %v1702_v5 = vld [vmem:[%s3602_s9 + $0x1c0] sm:$0xff]  ;;  %v1704_v0 = vld [vmem:[%s3602_s9 + $0x1d0] sm:$0xff] }
 0xbe6   : > { %v1416_v11 = vsel %vm962_vm2, %v2912_v6, %v2126_v9  ;;  %v1417_v12 = vsel %vm962_vm2, %v2952_v2, %v2125_v10  ;;  %v2152_v2 = vld [vmem:[%s2251_s30] sm:$0xff]  ;;  %v1672_v10 = vld [vmem:[%s3602_s9 + $0xd0] sm:$0xff]  ;;  %1766 = vmatprep.subr.bf16.mxu1 %v1723_v8  ;;  %v1707_v8 = vld [vmem:[%s3602_s9 + $0x1e8] sm:$0xff] }
 0xbe7   : > { %v1418_v13 = vpack.c.bf16 %v1416_v11, %v1416_v11  ;;  %v1419_v14 = vpack.c.bf16 %v1417_v12, %v1417_v12  ;;  %v1670_v9 = vld [vmem:[%s3602_s9 + $0xc0] sm:$0xff]  ;;  %v1675_v11 = vld [vmem:[%s3602_s9 + $0xe8] sm:$0xff]  ;;  %v1677_v12 = vld [vmem:[%s3602_s9 + $0xf8] sm:$0xff] }
 0xbe9   : > { %1560 = vmatprep.mubr.bf16.mxu0 %v1419_v14  ;;  %v1725_v14 = vpack.c.bf16 %v1677_v12, %v1675_v11  ;;  %v1706_v12 = vld [vmem:[%s3602_s9 + $0x1e0] sm:$0xff] }
 0xbea   : > { %1561 = vmatmul.mubr.bf16.vlgmr.msra.gmra.mrb[8].mxu0 %v1418_v13  ;;  %v1722_v13 = vpack.c.bf16 %v1672_v10, %v1670_v9  ;;  %v1709_v9 = vld [vmem:[%s3602_s9 + $0x1f8] sm:$0xff]  ;;  %v1738_v10 = vpack.c.bf16 %v1704_v0, %v1702_v5 }
 0xbeb   : > { %v1741_v11 = vpack.c.bf16 %v1709_v9, %v1707_v8  ;;  %v1575_v8 = vld [vmem:[%s3601_s8] sm:$0x3] }
 0xbec   : > { %1767 = vmatpush1.bf16.msra.mxu1 %v1722_v13  ;;  %v1708_v13 = vld [vmem:[%s3602_s9 + $0x1f0] sm:$0xff] }
 0xbed   : > { %1768 = vmatprep.subr.bf16.mxu1 %v1725_v14  ;;  %v1740_v14 = vpack.c.bf16 %v1708_v13, %v1706_v12  ;;  %v1637_v12 = vrot.slane %v1575_v8, %v2668_v31 }
 0xcbd   : > { %v1562_v16 = vpop.f32.mrb[8].mxu0 }
 0xcbe   : > { %v1563_v17 = vadd.f32 %v1562_v16, %v1521_v15  ;;  %v1564_v18 = vpop.f32.mrb[9].mxu0  ;;  %v1676_v15 = vld [vmem:[%s3602_s9 + $0xf0] sm:$0xff]  ;;  %v1681_v16 = vld [vmem:[%s3602_s9 + $0x118] sm:$0xff] }
 0xcbf   : > { %v1565_v6 = vadd.f32 %v1564_v18, %v1525_v20  ;;  %v1566_v19 = vpop.f32.mrb[10].mxu0  ;;  %v1679_v20 = vld [vmem:[%s3602_s9 + $0x108] sm:$0xff] }
 0xcc0   : > { %v1567_v21 = vpop.f32.mrb[11].mxu0  ;;  %v1727_v18 = vpack.c.bf16 %v1681_v16, %v1679_v20  ;;  %v1680_v19 = vld [vmem:[%s3602_s9 + $0x110] sm:$0xff]  ;;  %v1815_v20 = vld [vmem:[%s3604_s11] sm:$0xff] }
 0xcc1   : > { %v1571_v23 = vcombine.low %v1563_v17, %v1565_v6  ;;  %v1724_v17 = vpack.c.bf16 %v1676_v15, %v1674_v22  ;;  %v1678_v6 = vld [vmem:[%s3602_s9 + $0x100] sm:$0xff]  ;;  %v1816_v22 = vld [vmem:[%s3604_s11 + $0x8] sm:$0xff]  ;;  %v1818_v15 = vld [vmem:[%s3604_s11 + $0x18] sm:$0xff] }
 0xcc2   : > { %v1726_v21 = vpack.c.bf16 %v1680_v19, %v1678_v6  ;;  %v1880_v16 = vpack.c.bf16 %v1818_v15, %v1816_v22  ;;  %v1822_v6 = vld [vmem:[%s3604_s11 + $0x38] sm:$0xff] }
 0xcc3   : > { %v3163_v24 = vadd.f32 %v2152_v2, %v1571_v23  ;;  %1769 = vmatpush1.bf16.msra.mxu1 %v1724_v17  ;;  %v1817_v17 = vld [vmem:[%s3604_s11 + $0x10] sm:$0xff] }
 0xcc4   : > { %1770 = vmatprep.subr.bf16.mxu1 %v1727_v18  ;;  %v1820_v18 = vld [vmem:[%s3604_s11 + $0x28] sm:$0xff]  ;;  %v1879_v19 = vpack.c.bf16 %v1817_v17, %v1815_v20  ;;  %1923 = vmatprep.subr.bf16.mxu0 %v1880_v16 }
 0xcc5   : > { %v1577_v25 = vcombine.high %v3163_v24, %v3163_v24  ;;  %v1579_v26 = vsel %vm448_vm0, %v3163_v24, 0.0 }
 0xcc6   : > { %1924 = vmatpush1.bf16.msra.mxu0 %v1879_v19 }
 0xcc7   : > { %v1580_v28 = vsel %vm448_vm0, %v1577_v25, 0.0  ;;  %1771 = vmatpush1.bf16.msra.mxu1 %v1726_v21  ;;  %v1882_v21 = vpack.c.bf16 %v1822_v6, %v1820_v18 }
 0xcc8   : > { %v1581_v29 = vadd.f32 %v1580_v28, %v1579_v26  ;;  %1772 = vmatprep.subr.bf16.mxu1 %v1729_v36 }
 0xcc9   : > { %1925 = vmatprep.subr.bf16.mxu0 %v1882_v21  ;;  %v1848_v21 = vld [vmem:[%s3604_s11 + $0x108] sm:$0xff] }
 0xcca   : > { %1582 = vadd.xlane.f32.xlu1 %v1581_v29 }
 0xccb   : > { %1773 = vmatpush1.bf16.msra.mxu1 %v1728_v39  ;;  %v1829_v39 = vld [vmem:[%s3604_s11 + $0x70] sm:$0xff] }
 0xccc   : > { %1774 = vmatprep.subr.bf16.mxu1 %v1731_v57  ;;  %v1885_v57 = vpack.c.bf16 %v1829_v39, %v1827_v38  ;;  %v1855_v38 = vld [vmem:[%s3604_s11 + $0x140] sm:$0xff]  ;;  %v1857_v39 = vld [vmem:[%s3604_s11 + $0x150] sm:$0xff] }
 0xccd   : > { %v1899_v40 = vpack.c.bf16 %v1857_v39, %v1855_v38  ;;  %v1911_v39 = vld [vmem:[%s3605_s12] sm:$0x3] }
 0xccf   : > { %1775 = vmatpush1.bf16.msra.mxu1 %v1730_v43  ;;  %v1833_v43 = vld [vmem:[%s3604_s11 + $0x90] sm:$0xff] }
 0xcd0   : > { %1776 = vmatprep.subr.bf16.mxu1 %v1733_v46  ;;  %v1887_v46 = vpack.c.bf16 %v1833_v43, %v1831_v42  ;;  %v1861_v43 = vld [vmem:[%s3604_s11 + $0x170] sm:$0xff] }
 0xcd3   : > { %1777 = vmatpush1.bf16.msra.mxu1 %v1732_v62  ;;  %v1837_v62 = vld [vmem:[%s3604_s11 + $0xb0] sm:$0xff] }
 0xcd4   : > { %1778 = vmatprep.subr.bf16.mxu1 %v1735_v52  ;;  %v1889_v52 = vpack.c.bf16 %v1837_v62, %v1835_v48  ;;  %v1863_v48 = vld [vmem:[%s3604_s11 + $0x180] sm:$0xff]  ;;  %v1865_v62 = vld [vmem:[%s3604_s11 + $0x190] sm:$0xff] }
 0xcd7   : > { %1779 = vmatpush1.bf16.msra.mxu1 %v1734_v55  ;;  %v1841_v55 = vld [vmem:[%s3604_s11 + $0xd0] sm:$0xff] }
 0xcd8   : > { %1780 = vmatprep.subr.bf16.mxu1 %v1737_v60  ;;  %v1891_v60 = vpack.c.bf16 %v1841_v55, %v1839_v54  ;;  %v1867_v54 = vld [vmem:[%s3604_s11 + $0x1a0] sm:$0xff]  ;;  %v1869_v55 = vld [vmem:[%s3604_s11 + $0x1b0] sm:$0xff] }
 0xcdb   : > { %1781 = vmatpush1.bf16.msra.mxu1 %v1736_v3  ;;  %v1893_v3 = vpack.c.bf16 %v1845_v1, %v1843_v63  ;;  %v1871_v63 = vld [vmem:[%s3604_s11 + $0x1c0] sm:$0xff]  ;;  %v1873_v1 = vld [vmem:[%s3604_s11 + $0x1d0] sm:$0xff] }
 0xcdc   : > { %1782 = vmatprep.subr.bf16.mxu1 %v1739_v7  ;;  %v1574_v7 = vld [vmem:[%s3600_s7] sm:$0x3] }
 0xcdd   : > { %v1621_v9 = vrot.slane %v1574_v7, %v2665_v30 }
 0xcdf   : > { %1783 = vmatpush1.bf16.msra.mxu1 %v1738_v10  ;;  %v1625_v10 = vrot.slane %v1574_v7, %v2668_v31  ;;  %v1875_v7 = vld [vmem:[%s3604_s11 + $0x1e0] sm:$0xff] }
 0xce0   : > { %1784 = vmatprep.subr.bf16.mxu1 %v1741_v11  ;;  %v1633_v11 = vrot.slane %v1575_v8, %v2665_v30  ;;  %v1877_v8 = vld [vmem:[%s3604_s11 + $0x1f0] sm:$0xff] }
 0xce1   : > { %v1626_v22 = vcombine.low %v1621_v9, %v1625_v10  ;;  %v1909_v9 = vpack.c.bf16 %v1877_v8, %v1875_v7  ;;  %v1742_v10 = vld [vmem:[%s3603_s10] sm:$0x3] }
 0xce2   : > { %v1638_v20 = vcombine.low %v1633_v11, %v1637_v12  ;;  %v1747_v11 = vrot.slane %v1742_v10, %v2665_v30  ;;  %v1751_v12 = vrot.slane %v1742_v10, %v2668_v31 }
 0xce3   : > { %1785 = vmatpush1.bf16.msra.mxu1 %v1740_v14 }
 0xd57   : > { %v1583_v23 = vpop.xlane.xlu1 %1582 }
 0xd58   : > { %v1584_v2 = vmul.f32 0.00390625, %v1583_v23  ;;  %v1819_v23 = vld [vmem:[%s3604_s11 + $0x20] sm:$0xff] }
 0xd5a   : > { %v1592_v25 = vrot.slane %v1584_v2, %v2486_v58  ;;  %v1821_v2 = vld [vmem:[%s3604_s11 + $0x30] sm:$0xff] }
 0xd5c   : > { %v3280_v26 = vsub.f32 %v3163_v24, %v1592_v25  ;;  %v1824_v25 = vld [vmem:[%s3604_s11 + $0x48] sm:$0xff] }
 0xd5e   : > { %v1595_v28 = vmul.f32 %v3280_v26, %v3280_v26 }
 0xd60   : > { %v1597_v29 = vcombine.high %v1595_v28, %v1595_v28  ;;  %v1599_v32 = vsel %vm448_vm0, %v1595_v28, 0.0  ;;  %v1826_v28 = vld [vmem:[%s3604_s11 + $0x58] sm:$0xff] }
 0xd62   : > { %v1600_v33 = vsel %vm448_vm0, %v1597_v29, 0.0  ;;  %v1881_v29 = vpack.c.bf16 %v1821_v2, %v1819_v23  ;;  %v1850_v23 = vld [vmem:[%s3604_s11 + $0x118] sm:$0xff]  ;;  %v1849_v2 = vld [vmem:[%s3604_s11 + $0x110] sm:$0xff] }
 0xd63   : > { %v1601_v51 = vadd.f32 %v1600_v33, %v1599_v32  ;;  %v1884_v32 = vpack.c.bf16 %v1826_v28, %v1824_v25  ;;  %v1823_v33 = vld [vmem:[%s3604_s11 + $0x40] sm:$0xff]  ;;  %v1852_v28 = vld [vmem:[%s3604_s11 + $0x128] sm:$0xff] }
 0xd64   : > { %1926 = vmatpush1.bf16.msra.mxu0 %v1881_v29  ;;  %v1854_v29 = vld [vmem:[%s3604_s11 + $0x138] sm:$0xff] }
 0xd65   : > { %1602 = vadd.xlane.f32.xlu0 %v1601_v51  ;;  %v1825_v51 = vld [vmem:[%s3604_s11 + $0x50] sm:$0xff]  ;;  %1927 = vmatprep.subr.bf16.mxu0 %v1884_v32  ;;  %v1898_v32 = vpack.c.bf16 %v1854_v29, %v1852_v28 }
 0xd66   : > { %v1883_v36 = vpack.c.bf16 %v1825_v51, %v1823_v33  ;;  %v1851_v33 = vld [vmem:[%s3604_s11 + $0x120] sm:$0xff]  ;;  %v1853_v51 = vld [vmem:[%s3604_s11 + $0x130] sm:$0xff] }
 0xd67   : > { %v1897_v34 = vpack.c.bf16 %v1853_v51, %v1851_v33 }
 0xd68   : > { %1928 = vmatpush1.bf16.msra.mxu0 %v1883_v36  ;;  %v1858_v36 = vld [vmem:[%s3604_s11 + $0x158] sm:$0xff] }
 0xd69   : > { %1929 = vmatprep.subr.bf16.mxu0 %v1886_v37  ;;  %v1900_v37 = vpack.c.bf16 %v1858_v36, %v1856_v35 }
 0xd6c   : > { %1930 = vmatpush1.bf16.msra.mxu0 %v1885_v57  ;;  %v1862_v57 = vld [vmem:[%s3604_s11 + $0x178] sm:$0xff] }
 0xd6d   : > { %1931 = vmatprep.subr.bf16.mxu0 %v1888_v41  ;;  %v1859_v41 = vld [vmem:[%s3604_s11 + $0x160] sm:$0xff]  ;;  %v1902_v42 = vpack.c.bf16 %v1862_v57, %v1860_v27  ;;  %v1920_v27 = vrot.slane %v1911_v39, %v2668_v31 }
 0xd70   : > { %1932 = vmatpush1.bf16.msra.mxu0 %v1887_v46  ;;  %v1901_v46 = vpack.c.bf16 %v1861_v43, %v1859_v41 }
 0xd71   : > { %1933 = vmatprep.subr.bf16.mxu0 %v1890_v47  ;;  %v1904_v47 = vpack.c.bf16 %v1866_v45, %v1864_v44 }
 0xd74   : > { %1934 = vmatpush1.bf16.msra.mxu0 %v1889_v52  ;;  %v1903_v52 = vpack.c.bf16 %v1865_v62, %v1863_v48 }
 0xd75   : > { %1935 = vmatprep.subr.bf16.mxu0 %v1892_v53  ;;  %v1906_v53 = vpack.c.bf16 %v1870_v50, %v1868_v49 }
 0xd78   : > { %1936 = vmatpush1.bf16.msra.mxu0 %v1891_v60  ;;  %v1905_v60 = vpack.c.bf16 %v1869_v55, %v1867_v54 }
 0xd79   : > { %1937 = vmatprep.subr.bf16.mxu0 %v1894_v61  ;;  %v1908_v61 = vpack.c.bf16 %v1874_v59, %v1872_v56 }
 0xd7c   : > { %1938 = vmatpush1.bf16.msra.mxu0 %v1893_v3  ;;  %v1876_v3 = vld [vmem:[%s3604_s11 + $0x1e8] sm:$0xff] }
 0xdf2   : > { %v1603_v4 = vpop.xlane.xlu0 %1602 }
 0xdf3   : > { %v1604_v5 = vmul.f32 0.00390625, %v1603_v4  ;;  %v1878_v4 = vld [vmem:[%s3604_s11 + $0x1f8] sm:$0xff] }
 0xdf5   : > { %v1605_v0 = vadd.f32 1e-05, %v1604_v5  ;;  %v1907_v5 = vpack.c.bf16 %v1873_v1, %v1871_v63 }
 0xdf7   : > { %2146 = vrsqrt.f32 %v1605_v0  ;;  %v1910_v0 = vpack.c.bf16 %v1878_v4, %v1876_v3 }
 0xe01   : > { %v2147_v13 = vpop.eup %2146 }
 0xe02   : > { %v1614_v14 = vrot.slane %v2147_v13, %v2486_v58  ;;  %v1896_v58 = vpack.c.bf16 %v1850_v23, %v1848_v21 }
 0xe04   : > { %v1616_v15 = vmul.f32 %v1614_v14, %v3280_v26  ;;  %v1847_v26 = vld [vmem:[%s3604_s11 + $0x100] sm:$0xff]  ;;  %1939 = vmatprep.subr.bf16.mxu0 %v1896_v58 }
 0xe05   : > { %v1895_v25 = vpack.c.bf16 %v1849_v2, %v1847_v26 }
 0xe06   : > { %v1628_v16 = vmul.f32 %v1626_v22, %v1616_v15 }
 0xe07   : > { %1940 = vmatpush1.bf16.msra.mxu0 %v1895_v25 }
 0xe08   : > { %v1640_v17 = vadd.f32 %v1638_v20, %v1628_v16  ;;  %1941 = vmatprep.subr.bf16.mxu0 %v1898_v32 }
 0xe0a   : > { %v1642_v18 = vcombine.high %v1640_v17, %v1640_v17  ;;  %v1644_v19 = vpack.c.bf16 %v1640_v17, %v1640_v17 }
 0xe0b   : > { %1942 = vmatpush1.bf16.msra.mxu0 %v1897_v34 }
 0xe0c   : > { %v1645_v6 = vpack.c.bf16 %v1642_v18, %v1642_v18  ;;  %1943 = vmatprep.subr.bf16.mxu0 %v1900_v37 }
 0xe0e   : > { %1786 = vmatprep.mubr.bf16.mxu1 %v1645_v6 }
 0xe0f   : > { %1787 = vmatmul.mubr.bf16.vlgmr.msra.gmra.mrb[36].mxu1 %v1644_v19  ;;  %1944 = vmatpush1.bf16.msra.mxu0 %v1899_v40  ;;  %v1916_v40 = vrot.slane %v1911_v39, %v2665_v30 }
 0xe10   : > { %1945 = vmatprep.subr.bf16.mxu0 %v1902_v42 }
 0xe13   : > { %1946 = vmatpush1.bf16.msra.mxu0 %v1901_v46 }
 0xe14   : > { %1947 = vmatprep.subr.bf16.mxu0 %v1904_v47 }
 0xe17   : > { %1948 = vmatpush1.bf16.msra.mxu0 %v1903_v52 }
 0xe18   : > { %1949 = vmatprep.subr.bf16.mxu0 %v1906_v53 }
 0xe1b   : > { %1950 = vmatpush1.bf16.msra.mxu0 %v1905_v60 }
 0xe1c   : > { %1951 = vmatprep.subr.bf16.mxu0 %v1908_v61 }
 0xe1f   : > { %1952 = vmatpush1.bf16.msra.mxu0 %v1907_v5 }
 0xe20   : > { %1953 = vmatprep.subr.bf16.mxu0 %v1910_v0 }
 0xe23   : > { %1954 = vmatpush1.bf16.msra.mxu0 %v1909_v9 }
 0xee2   : > { %v1788_v13 = vpop.f32.mrb[36].mxu1 }
 0xee3   : > { %v1789_v14 = vadd.f32 %v1788_v13, %v1747_v11  ;;  %v1790_v22 = vpop.f32.mrb[37].mxu1 }
 0xee4   : > { %v1791_v15 = vadd.f32 %v1790_v22, %v1751_v12  ;;  %v1792_v20 = vpop.f32.mrb[38].mxu1 }
 0xee5   : > { %v1797_v16 = vmul.f32 0.044715, %v1789_v14  ;;  %v1793_v17 = vpop.f32.mrb[39].mxu1  ;;  %v1795_v32 = vmul.f32 0.5, %v1789_v14 }
 0xee6   : > { %v1798_v18 = vmul.f32 0.044715, %v1791_v15  ;;  %v1796_v51 = vmul.f32 0.5, %v1791_v15 }
 0xee7   : > { %v1799_v6 = vmul.f32 %v1797_v16, %v1789_v14 }
 0xee8   : > { %v1800_v19 = vmul.f32 %v1798_v18, %v1791_v15 }
 0xee9   : > { %v1801_v21 = vmul.f32 %v1799_v6, %v1789_v14 }
 0xeea   : > { %v1802_v23 = vmul.f32 %v1800_v19, %v1791_v15 }
 0xeeb   : > { %v1803_v58 = vadd.f32 %v1801_v21, %v1789_v14 }
 0xeec   : > { %v1804_v26 = vadd.f32 %v1802_v23, %v1791_v15 }
 0xeed   : > { %v1805_v2 = vmul.f32 0.7978846, %v1803_v58 }
 0xeee   : > { %v1806_v25 = vmul.f32 0.7978846, %v1804_v26 }
 0xeef   : > { %2148 = vtanh.f32 %v1805_v2 }
 0xef0   : > { %2150 = vtanh.f32 %v1806_v25 }
 0xef9   : > { %v2149_v28 = vpop.eup %2148 }
 0xefa   : > { %v2151_v29 = vpop.eup %2150  ;;  %v1809_v33 = vadd.f32 1.0, %v2149_v28 }
 0xefb   : > { %v1810_v34 = vadd.f32 1.0, %v2151_v29 }
 0xefc   : > { %v1811_v35 = vmul.f32 %v1809_v33, %v1795_v32 }
 0xefd   : > { %v1812_v36 = vmul.f32 %v1810_v34, %v1796_v51 }
 0xefe   : > { %v1813_v38 = vpack.c.bf16 %v1811_v35, %v1811_v35 }
 0xeff   : > { %v1814_v37 = vpack.c.bf16 %v1812_v36, %v1812_v36 }
 0xf01   : > { %1955 = vmatprep.mubr.bf16.mxu0 %v1814_v37 }
 0xf02   : > { %1956 = vmatmul.mubr.bf16.vlgmr.msra.gmra.mrb[12].mxu0 %v1813_v38 }
 0xfd5   : > { %v1957_v57 = vpop.f32.mrb[12].mxu0 }
 0xfd6   : > { %v1958_v41 = vadd.f32 %v1957_v57, %v1916_v40  ;;  %v1959_v42 = vpop.f32.mrb[13].mxu0 }
 0xfd7   : > { %v1960_v43 = vadd.f32 %v1959_v42, %v1920_v27  ;;  %v1961_v44 = vpop.f32.mrb[14].mxu0 }
 0xfd8   : > { %v1962_v45 = vpop.f32.mrb[15].mxu0 }
 0xfd9   : > { %v1966_v46 = vcombine.low %v1958_v41, %v1960_v43 }
 0xfdb   : > { %v1968_v47 = vadd.f32 %v1966_v46, %v3163_v24 }
 0xfdd   : > { %1969 = vst [vmem:[%s440_s14] sm:$0xff] %v1968_v47 }
 0xfde PF: > { %s23_s25 = sadd.s32 1, %s2159_s25  }
 0xfdf   : > { %p20_p4 = scmp.ge.s32.totalorder %s23_s25, 4  }
 0xfe1   :  { %22 = sbr.rel (!%p20_p4) target bundleno = 1 (0x1), region = 102 }

</bundles_post_ra>
